<compile_context>
chip_gen: v6e
topology: v6e:2x2x1
jax: 0.10.0
libtpu: 0.0.40
codegen_flags: <defaults>
</compile_context>

<pallas_src>
import functools
import math

import jax
import jax.numpy as jnp
from jax import lax
from jax.experimental import pallas as pl
from jax.experimental.pallas import tpu as pltpu


def _softplus(x):
    # numerically-stable softplus: never evaluates exp() of a large positive value
    return jnp.maximum(x, 0.0) + jnp.log(1.0 + jnp.exp(-jnp.abs(x)))


# ----------------------------------------------------------------------------------
# Pallas kernel: one grid step == one Mamba Block (prenorm residual + mixer).
# ----------------------------------------------------------------------------------
def mamba_stack_kernel(x_ref,
                       ln_g_ref, ln_b_ref,
                       w_in_ref,                      # (1, D, 2*d_inner)  bf16 [x|z]
                       conv_w_ref, conv_b_ref,        # (1, d_conv, d_inner), (1,1,d_inner)
                       w_xbc_ref,                     # (1, d_inner, dt_rank+2*d_state) bf16
                       w_dt_ref, b_dt_ref,            # (1, dt_rank, d_inner) bf16, (1,1,d_inner)
                       a_log_t_ref,                   # (1, d_state, d_inner)  pre-transposed
                       d_p_ref,                       # (1, 1, d_inner)
                       w_out_ref,                     # (1, d_inner, D)  bf16
                       o_ref,                         # (Bt, L, D) f32  (layer output, carried)
                       r_s, xpad_s, u_s, z_s, dt_s, bb_s, cc_s, y_s,
                       *, chunk, di_tile, exp_bf16):
    l = pl.program_id(1)
    Bt, L, D = x_ref.shape
    d_conv, d_inner = conv_w_ref.shape[1], conv_w_ref.shape[2]
    d_state = a_log_t_ref.shape[1]
    dt_rank = w_dt_ref.shape[1]

    # ---- residual stream (Block: residual = hidden + residual) ----
    @pl.when(l == 0)
    def _():
        r_s[...] = x_ref[...].astype(jnp.float32)

    @pl.when(l > 0)
    def _():
        r_s[...] = r_s[...] + o_ref[...]

    resid = r_s[...]

    # ---- LayerNorm(eps=1e-5) over D ----
    mean = jnp.mean(resid, axis=-1, keepdims=True)
    cent = resid - mean
    var = jnp.mean(cent * cent, axis=-1, keepdims=True)
    xn = cent * lax.rsqrt(var + 1e-5)
    xn = xn * ln_g_ref[0][None, :, :] + ln_b_ref[0][None, :, :]

    # ---- fused in_proj: single bf16 MXU matmul producing [x | z] ----
    xz = jnp.dot(xn.reshape(Bt * L, D).astype(jnp.bfloat16), w_in_ref[0],
                 preferred_element_type=jnp.float32)
    x_in = xz[:, :d_inner].reshape(Bt, L, d_inner)
    # gate input kept in bf16 scratch; the SiLU(z) gate is applied inside the scan
    z_s[...] = xz[:, d_inner:].reshape(Bt, L, d_inner).astype(jnp.bfloat16)

    # ---- depthwise causal conv along L + SiLU (padded scratch, static slice taps) --
    xpad_s[:, :d_conv - 1, :] = jnp.zeros((Bt, d_conv - 1, d_inner), jnp.float32)
    xpad_s[:, d_conv - 1:, :] = x_in
    conv_w = conv_w_ref[0]                                   # (d_conv, d_inner)
    xc = jnp.broadcast_to(conv_b_ref[0][None, :, :], (Bt, L, d_inner))
    for k in range(d_conv):
        xc = xc + conv_w[k:k + 1, :][None, :, :] * xpad_s[:, k:k + L, :]
    u = xc * jax.nn.sigmoid(xc)                              # SiLU
    u_s[...] = u

    # ---- fused x_proj ([dt_low | B | C]) + dt_proj + stable softplus ----
    dbc = jnp.dot(u.reshape(Bt * L, d_inner).astype(jnp.bfloat16), w_xbc_ref[0],
                  preferred_element_type=jnp.float32)
    bb_s[...] = dbc[:, dt_rank:dt_rank + d_state].reshape(Bt, L, d_state)
    cc_s[...] = dbc[:, dt_rank + d_state:].reshape(Bt, L, d_state)
    dt = jnp.dot(dbc[:, :dt_rank].astype(jnp.bfloat16), w_dt_ref[0],
                 preferred_element_type=jnp.float32) + b_dt_ref[0]
    dt_s[...] = _softplus(dt).reshape(Bt, L, d_inner)

    # ---- selective scan: d_inner tiled, hstate vreg-resident across all of L ----
    n_chunks = L // chunk
    a_log_full = a_log_t_ref[0]                              # (d_state, d_inner)
    d_skip_full = d_p_ref[0]                                 # (1, d_inner)

    for di0 in range(0, d_inner, di_tile):                   # static d_inner tiles
        dw = min(di_tile, d_inner - di0)
        A_t = -jnp.exp(a_log_full[:, di0:di0 + dw])          # (d_state, dw)
        d_skip = d_skip_full[:, di0:di0 + dw][None, :, :]    # (1, 1, dw)

        def chunk_body(c, hstate):
            start = pl.multiple_of(c * chunk, chunk)
            dt_c = dt_s[:, pl.ds(start, chunk), pl.ds(di0, dw)]    # (Bt, chunk, dw)
            u_c = u_s[:, pl.ds(start, chunk), pl.ds(di0, dw)]
            b_c = bb_s[:, pl.ds(start, chunk), :]                  # (Bt, chunk, d_state)
            c_c = cc_s[:, pl.ds(start, chunk), :]
            z_c = z_s[:, pl.ds(start, chunk), pl.ds(di0, dw)].astype(jnp.float32)

            dtA = dt_c[:, :, None, :] * A_t[None, None, :, :]      # (Bt,chunk,S,dw)
            if exp_bf16:
                # v6e/v7x: EUP bf16 exp ~2x f32; keep the fma in f32.
                dA_c = jnp.exp(dtA.astype(jnp.bfloat16)).astype(jnp.float32)
            else:
                dA_c = jnp.exp(dtA)
            du_c = dt_c * u_c                                      # (Bt, chunk, dw)

            # minimal sequential recurrence: fma + cross-sublane reduce per step;
            # B broadcast fused into the fma (no dBu materialization).
            h = hstate
            ys = []
            for k in range(chunk):
                h = dA_c[:, k] * h + du_c[:, k][:, None, :] * b_c[:, k, :, None]
                ys.append(jnp.sum(h * c_c[:, k, :, None], axis=1))   # (Bt, dw)
            y_c = jnp.stack(ys, axis=1)                              # (Bt, chunk, dw)
            # fused D-skip + SiLU(z) gate + bf16 cast, dense slab store
            y_g = (y_c + u_c * d_skip) * (z_c * jax.nn.sigmoid(z_c))
            y_s[:, pl.ds(start, chunk), pl.ds(di0, dw)] = y_g.astype(jnp.bfloat16)
            return h

        lax.fori_loop(0, n_chunks, chunk_body,
                      jnp.zeros((Bt, d_state, dw), jnp.float32))

    # ---- out_proj (bf16 MXU) ----
    out = jnp.dot(y_s[...].reshape(Bt * L, d_inner), w_out_ref[0],
                  preferred_element_type=jnp.float32)
    o_ref[...] = out.reshape(Bt, L, D)


# ----------------------------------------------------------------------------------
# Wrapper
# ----------------------------------------------------------------------------------
def _vmem_limit_bytes(bt, L, D, d_inner, d_state, dt_rank, d_conv, chunk, di_tile):
    f32, bf16 = 4, 2
    io = 2 * 2 * bt * L * D * f32                            # x + out, double-buffered
    wts = 2 * ((D * 2 * d_inner + d_inner * (dt_rank + 2 * d_state)
                + dt_rank * d_inner + d_inner * D) * bf16
               + (2 * D + (d_conv + 3) * d_inner + d_state * d_inner) * f32)
    scratch = ((bt * L * D                                   # residual stream
                + bt * (L + d_conv - 1) * d_inner            # padded conv input
                + 2 * bt * L * d_inner                       # u, dt
                + 2 * bt * L * d_state) * f32                # B, C
               + 2 * bt * L * d_inner * bf16)                # z, y (bf16)
    temps = (bt * L * (2 * d_inner + D) * f32                # xz / dbc / out temps
             + 2 * bt * chunk * d_state * di_tile * f32)     # per-chunk dA etc.
    need = io + wts + scratch + temps
    cap = 128 << 20
    try:
        cap = int(pltpu.get_tpu_info().vmem_capacity_bytes)  # 64 MiB/TC on v7x
    except Exception:
        pass
    return int(max(min(int(need * 1.4) + (8 << 20), cap - (4 << 20)), 32 << 20))


def multilayer_mamba(x, p, batch_tile=None, di_tile=None, exp_bf16=False):
    B, L, D = x.shape
    n_layer = p["ln_g"].shape[0]
    d_inner = p["d_p"].shape[-1]
    d_state = p["a_log_t"].shape[1]
    d_conv = p["conv_w"].shape[1]
    dt_rank = p["w_dt"].shape[1]

    # nbt = 1 by default: on 1-TC chips (v5e/v6e) extra batch tiles only re-stream
    # the per-layer weights from HBM.  On v7x pass batch_tile=B//2 so the "parallel"
    # batch axis feeds both TensorCores.
    if batch_tile is None:
        batch_tile = B
    assert B % batch_tile == 0
    nbt = B // batch_tile

    # pad L to a multiple of the scan chunk (causal: tail cannot affect real rows)
    chunk = 16
    L_pad = ((L + chunk - 1) // chunk) * chunk
    if L_pad != L:
        x = jnp.pad(x, ((0, 0), (0, L_pad - L), (0, 0)))

    # d_inner tile sized so the carried SSM state (bt, d_state, di_tile) stays small
    # enough to live in vregs across the whole L recurrence.
    if di_tile is None:
        di_tile = max(128, 1024 // batch_tile)
    di_tile = min(di_tile, d_inner)
    if d_inner >= 128:
        di_tile = max(128, (di_tile // 128) * 128)

    def per_layer(s1, s2):
        return pl.BlockSpec((1, s1, s2), lambda b, l: (l, 0, 0))

    act_spec = pl.BlockSpec((batch_tile, L_pad, D), lambda b, l: (b, 0, 0))

    in_specs = [
        act_spec,                                              # x
        per_layer(1, D), per_layer(1, D),                      # LayerNorm gamma / beta
        per_layer(D, 2 * d_inner),                             # fused in_proj [x|z] (bf16)
        per_layer(d_conv, d_inner), per_layer(1, d_inner),     # conv weight / bias
        per_layer(d_inner, dt_rank + 2 * d_state),             # fused x_proj [dt|B|C] (bf16)
        per_layer(dt_rank, d_inner), per_layer(1, d_inner),    # dt_proj weight(bf16)/bias
        per_layer(d_state, d_inner),                           # A_log (pre-transposed)
        per_layer(1, d_inner),                                 # D skip
        per_layer(d_inner, D),                                 # out_proj (bf16)
    ]

    grid_spec = pltpu.PrefetchScalarGridSpec(
        num_scalar_prefetch=0,
        grid=(nbt, n_layer),
        in_specs=in_specs,
        out_specs=act_spec,
        scratch_shapes=[
            pltpu.VMEM((batch_tile, L_pad, D), jnp.float32),                     # residual
            pltpu.VMEM((batch_tile, L_pad + d_conv - 1, d_inner), jnp.float32),  # conv pad
            pltpu.VMEM((batch_tile, L_pad, d_inner), jnp.float32),               # u
            pltpu.VMEM((batch_tile, L_pad, d_inner), jnp.bfloat16),              # z gate
            pltpu.VMEM((batch_tile, L_pad, d_inner), jnp.float32),               # dt
            pltpu.VMEM((batch_tile, L_pad, d_state), jnp.float32),               # B(t)
            pltpu.VMEM((batch_tile, L_pad, d_state), jnp.float32),               # C(t)
            pltpu.VMEM((batch_tile, L_pad, d_inner), jnp.bfloat16),              # y (gated)
        ],
    )

    kernel = functools.partial(mamba_stack_kernel, chunk=chunk,
                               di_tile=di_tile, exp_bf16=exp_bf16)
    out = pl.pallas_call(
        kernel,
        out_shape=jax.ShapeDtypeStruct((B, L_pad, D), jnp.float32),
        grid_spec=grid_spec,
        compiler_params=pltpu.CompilerParams(
            dimension_semantics=("parallel", "arbitrary"),
            vmem_limit_bytes=_vmem_limit_bytes(batch_tile, L_pad, D, d_inner,
                                               d_state, dt_rank, d_conv,
                                               chunk, di_tile)),
    )(x, p["ln_g"], p["ln_b"], p["w_in"], p["conv_w"], p["conv_b"],
      p["w_xbc"], p["w_dt"], p["b_dt"], p["a_log_t"], p["d_p"], p["w_out"])
    return out if L_pad == L else out[:, :L, :]


# ----------------------------------------------------------------------------------
# Deterministic synthetic parameter init (Mamba defaults: d_state=16, d_conv=4,
# expand=2, dt_rank=ceil(d_model/16)).  Projection weights are pre-fused and stored
# in bf16 (weight streaming); A_log is pre-transposed to (d_state, d_inner).
# ----------------------------------------------------------------------------------
def init_params(key, n_layer, d_model, d_state=16, d_conv=4, expand=2):
    d_inner = expand * d_model
    dt_rank = math.ceil(d_model / 16)
    ks = jax.random.split(key, 8)

    def nrm(k, shape, scale):
        return jax.random.normal(k, shape, jnp.float32) * scale

    dt_init = jnp.linspace(1e-3, 1e-1, d_inner, dtype=jnp.float32)
    b_dt = jnp.log(jnp.expm1(dt_init))                      # inverse softplus
    a_log = jnp.log(jnp.arange(1, d_state + 1, dtype=jnp.float32))

    w_in_x = nrm(ks[0], (n_layer, d_model, d_inner), d_model ** -0.5)
    w_in_z = nrm(ks[1], (n_layer, d_model, d_inner), d_model ** -0.5)
    w_dtl = nrm(ks[3], (n_layer, d_inner, dt_rank), d_inner ** -0.5)
    w_B = nrm(ks[4], (n_layer, d_inner, d_state), d_inner ** -0.5)
    w_C = nrm(ks[5], (n_layer, d_inner, d_state), d_inner ** -0.5)

    return dict(
        ln_g=jnp.ones((n_layer, 1, d_model), jnp.float32),
        ln_b=jnp.zeros((n_layer, 1, d_model), jnp.float32),
        w_in=jnp.concatenate([w_in_x, w_in_z], axis=-1).astype(jnp.bfloat16),
        conv_w=nrm(ks[2], (n_layer, d_conv, d_inner), 0.2),
        conv_b=jnp.broadcast_to(jnp.linspace(-0.05, 0.05, d_inner, dtype=jnp.float32),
                                (n_layer, 1, d_inner)),
        w_xbc=jnp.concatenate([w_dtl, w_B, w_C], axis=-1).astype(jnp.bfloat16),
        w_dt=nrm(ks[6], (n_layer, dt_rank, d_inner), dt_rank ** -0.5).astype(jnp.bfloat16),
        b_dt=jnp.broadcast_to(b_dt, (n_layer, 1, d_inner)),
        a_log_t=jnp.broadcast_to(a_log[None, :, None], (n_layer, d_state, d_inner)),
        d_p=jnp.ones((n_layer, 1, d_inner), jnp.float32),
        # out_proj rescaled by 1/sqrt(n_layer) per _init_weights
        w_out=(nrm(ks[7], (n_layer, d_inner, d_model), d_inner ** -0.5)
               / math.sqrt(n_layer)).astype(jnp.bfloat16),
    )


# ----------------------------------------------------------------------------------
# Pure-JAX reference (same math, same bf16 quantization points) to verify the kernel
# ----------------------------------------------------------------------------------
def ref_forward(x, p):
    f32 = jnp.float32
    q = lambda a: a.astype(jnp.bfloat16).astype(f32)   # mirror kernel's bf16 casts
    n_layer = p["ln_g"].shape[0]
    d_inner = p["d_p"].shape[-1]
    d_state = p["a_log_t"].shape[1]
    d_conv = p["conv_w"].shape[1]
    dt_rank = p["w_dt"].shape[1]
    B, L, D = x.shape

    residual = None
    h_out = x
    for l in range(n_layer):
        residual = h_out if residual is None else h_out + residual
        mean = residual.mean(-1, keepdims=True)
        cent = residual - mean
        var = (cent * cent).mean(-1, keepdims=True)
        hs = cent * lax.rsqrt(var + 1e-5) * p["ln_g"][l, 0] + p["ln_b"][l, 0]

        xz = q(hs) @ p["w_in"][l].astype(f32)
        x_in, z = xz[..., :d_inner], xz[..., d_inner:]
        zq = q(z)                                       # kernel stores the gate in bf16
        xc = jnp.broadcast_to(p["conv_b"][l, 0][None, None, :], (B, L, d_inner))
        for k in range(d_conv):
            s = d_conv - 1 - k
            tap = x_in if s == 0 else jnp.concatenate(
                [jnp.zeros((B, s, d_inner), f32), x_in[:, :L - s]], axis=1)
            xc = xc + p["conv_w"][l, k][None, None, :] * tap
        u = xc * jax.nn.sigmoid(xc)

        dbc = q(u) @ p["w_xbc"][l].astype(f32)
        dt_low = dbc[..., :dt_rank]
        Bm = dbc[..., dt_rank:dt_rank + d_state]
        Cm = dbc[..., dt_rank + d_state:]
        dt = _softplus(q(dt_low) @ p["w_dt"][l].astype(f32) + p["b_dt"][l, 0])

        A = -jnp.exp(p["a_log_t"][l])                   # (d_state, d_inner)
        hstate = jnp.zeros((B, d_state, d_inner), f32)
        ys = []
        for t in range(L):
            dA = jnp.exp(dt[:, t, None, :] * A[None])
            dBu = (dt[:, t] * u[:, t])[:, None, :] * Bm[:, t, :, None]
            hstate = dA * hstate + dBu
            ys.append(jnp.sum(hstate * Cm[:, t, :, None], axis=1))
        y = jnp.stack(ys, axis=1)
        y = y + u * p["d_p"][l, 0]
        y = y * (zq * jax.nn.sigmoid(zq))
        h_out = q(y) @ p["w_out"][l].astype(f32)
    return h_out


if __name__ == "__main__":
    B, L, d_model, n_layer = 2, 8, 32, 2
    key = jax.random.PRNGKey(0)
    kx, kp = jax.random.split(key)
    x = jax.random.normal(kx, (B, L, d_model), jnp.float32)
    params = init_params(kp, n_layer=n_layer, d_model=d_model)

    out = multilayer_mamba(x, params)
    out = jax.block_until_ready(out)
    assert out.shape == (B, L, d_model)

    ref = ref_forward(x, params)
    err = float(jnp.max(jnp.abs(out - ref)))
    if not (err < 1e-2):
        raise AssertionError(f"kernel mismatch vs reference: max abs err {err}")
    print("KERNEL_OK")
</pallas_src>

<mosaic_0001>
module attributes {stable_mosaic.version = 11 : i64} {
  func.func @mamba_stack_kernel(%arg0: i32, %arg1: i32, %arg2: memref<2x16x32xf32, #tpu.memory_space<vmem>>, %arg3: memref<1x1x32xf32, #tpu.memory_space<vmem>>, %arg4: memref<1x1x32xf32, #tpu.memory_space<vmem>>, %arg5: memref<1x32x128xbf16, #tpu.memory_space<vmem>>, %arg6: memref<1x4x64xf32, #tpu.memory_space<vmem>>, %arg7: memref<1x1x64xf32, #tpu.memory_space<vmem>>, %arg8: memref<1x64x34xbf16, #tpu.memory_space<vmem>>, %arg9: memref<1x2x64xbf16, #tpu.memory_space<vmem>>, %arg10: memref<1x1x64xf32, #tpu.memory_space<vmem>>, %arg11: memref<1x16x64xf32, #tpu.memory_space<vmem>>, %arg12: memref<1x1x64xf32, #tpu.memory_space<vmem>>, %arg13: memref<1x64x32xbf16, #tpu.memory_space<vmem>>, %arg14: memref<2x16x32xf32, #tpu.memory_space<vmem>>, %arg15: memref<2x16x32xf32, #tpu.memory_space<vmem>>, %arg16: memref<2x19x64xf32, #tpu.memory_space<vmem>>, %arg17: memref<2x16x64xf32, #tpu.memory_space<vmem>>, %arg18: memref<2x16x64xbf16, #tpu.memory_space<vmem>>, %arg19: memref<2x16x64xf32, #tpu.memory_space<vmem>>, %arg20: memref<2x16x16xf32, #tpu.memory_space<vmem>>, %arg21: memref<2x16x16xf32, #tpu.memory_space<vmem>>, %arg22: memref<2x16x64xbf16, #tpu.memory_space<vmem>>) attributes {dimension_semantics = [#tpu.dimension_semantics<parallel>, #tpu.dimension_semantics<arbitrary>], iteration_bounds = array<i64: 1, 2>, scalar_prefetch = 0 : i64, scratch_operands = 8 : i64, tpu.core_type = #tpu.core_type<tc>, window_params = [{transform_indices = @transform_0, window_bounds = array<i64: 2, 16, 32>}, {transform_indices = @transform_1, window_bounds = array<i64: 1, 1, 32>}, {transform_indices = @transform_2, window_bounds = array<i64: 1, 1, 32>}, {transform_indices = @transform_3, window_bounds = array<i64: 1, 32, 128>}, {transform_indices = @transform_4, window_bounds = array<i64: 1, 4, 64>}, {transform_indices = @transform_5, window_bounds = array<i64: 1, 1, 64>}, {transform_indices = @transform_6, window_bounds = array<i64: 1, 64, 34>}, {transform_indices = @transform_7, window_bounds = array<i64: 1, 2, 64>}, {transform_indices = @transform_8, window_bounds = array<i64: 1, 1, 64>}, {transform_indices = @transform_9, window_bounds = array<i64: 1, 16, 64>}, {transform_indices = @transform_10, window_bounds = array<i64: 1, 1, 64>}, {transform_indices = @transform_11, window_bounds = array<i64: 1, 64, 32>}, {transform_indices = @transform_12, window_bounds = array<i64: 2, 16, 32>}]} {
    %c0_i32 = arith.constant 0 : i32
    %0 = arith.cmpi eq, %arg1, %c0_i32 : i32
    %1 = arith.extui %0 : i1 to i32
    %c0_i32_0 = arith.constant 0 : i32
    %2 = arith.cmpi ne, %1, %c0_i32_0 : i32
    scf.if %2 {
      %c0_119 = arith.constant 0 : index
      %c0_120 = arith.constant 0 : index
      %c0_121 = arith.constant 0 : index
      %487 = vector.load %arg2[%c0_119, %c0_120, %c0_121] : memref<2x16x32xf32, #tpu.memory_space<vmem>>, vector<2x16x32xf32>
      %c0_122 = arith.constant 0 : index
      %c0_123 = arith.constant 0 : index
      %c0_124 = arith.constant 0 : index
      %488 = vector.load %arg15[%c0_122, %c0_123, %c0_124] : memref<2x16x32xf32, #tpu.memory_space<vmem>>, vector<2x16x32xf32>
      tpu.vector_store %arg15[%c0_122, %c0_123, %c0_124], %487 {strides = array<i32>} : memref<2x16x32xf32, #tpu.memory_space<vmem>>, vector<2x16x32xf32>,
    } else {
    }
    %c0_i32_1 = arith.constant 0 : i32
    %3 = arith.cmpi sgt, %arg1, %c0_i32_1 : i32
    %4 = arith.extui %3 : i1 to i32
    %c0_i32_2 = arith.constant 0 : i32
    %5 = arith.cmpi ne, %4, %c0_i32_2 : i32
    scf.if %5 {
      %c0_119 = arith.constant 0 : index
      %c0_120 = arith.constant 0 : index
      %c0_121 = arith.constant 0 : index
      %487 = vector.load %arg15[%c0_119, %c0_120, %c0_121] : memref<2x16x32xf32, #tpu.memory_space<vmem>>, vector<2x16x32xf32>
      %c0_122 = arith.constant 0 : index
      %c0_123 = arith.constant 0 : index
      %c0_124 = arith.constant 0 : index
      %488 = vector.load %arg14[%c0_122, %c0_123, %c0_124] : memref<2x16x32xf32, #tpu.memory_space<vmem>>, vector<2x16x32xf32>
      %489 = arith.addf %487, %488 : vector<2x16x32xf32>
      %c0_125 = arith.constant 0 : index
      %c0_126 = arith.constant 0 : index
      %c0_127 = arith.constant 0 : index
      %490 = vector.load %arg15[%c0_125, %c0_126, %c0_127] : memref<2x16x32xf32, #tpu.memory_space<vmem>>, vector<2x16x32xf32>
      tpu.vector_store %arg15[%c0_125, %c0_126, %c0_127], %489 {strides = array<i32>} : memref<2x16x32xf32, #tpu.memory_space<vmem>>, vector<2x16x32xf32>,
    } else {
    }
    %c0 = arith.constant 0 : index
    %c0_3 = arith.constant 0 : index
    %c0_4 = arith.constant 0 : index
    %6 = vector.load %arg15[%c0, %c0_3, %c0_4] : memref<2x16x32xf32, #tpu.memory_space<vmem>>, vector<2x16x32xf32>
    %cst = arith.constant dense<0.000000e+00> : vector<2x16xf32>
    %7 = vector.multi_reduction <add>, %6, %cst [2] : vector<2x16x32xf32> to vector<2x16xf32>
    %8 = vector.shape_cast %7 : vector<2x16xf32> to vector<2x16x1xf32>
    %cst_5 = arith.constant 3.200000e+01 : f32
    %9 = vector.broadcast %cst_5 : f32 to vector<2x16x1xf32>
    %10 = arith.divf %8, %9 : vector<2x16x1xf32>
    %11 = vector.broadcast %10 : vector<2x16x1xf32> to vector<2x16x32xf32>
    %12 = arith.subf %6, %11 : vector<2x16x32xf32>
    %13 = arith.mulf %12, %12 : vector<2x16x32xf32>
    %cst_6 = arith.constant dense<0.000000e+00> : vector<2x16xf32>
    %14 = vector.multi_reduction <add>, %13, %cst_6 [2] : vector<2x16x32xf32> to vector<2x16xf32>
    %15 = vector.shape_cast %14 : vector<2x16xf32> to vector<2x16x1xf32>
    %cst_7 = arith.constant 3.200000e+01 : f32
    %16 = vector.broadcast %cst_7 : f32 to vector<2x16x1xf32>
    %17 = arith.divf %15, %16 : vector<2x16x1xf32>
    %cst_8 = arith.constant 9.99999974E-6 : f32
    %18 = vector.broadcast %cst_8 : f32 to vector<2x16x1xf32>
    %19 = arith.addf %17, %18 : vector<2x16x1xf32>
    %20 = math.rsqrt %19 : vector<2x16x1xf32>
    %21 = vector.broadcast %20 : vector<2x16x1xf32> to vector<2x16x32xf32>
    %22 = arith.mulf %12, %21 : vector<2x16x32xf32>
    %c0_9 = arith.constant 0 : index
    %c0_10 = arith.constant 0 : index
    %c0_11 = arith.constant 0 : index
    %23 = vector.load %arg3[%c0_9, %c0_10, %c0_11] : memref<1x1x32xf32, #tpu.memory_space<vmem>>, vector<1x1x32xf32>
    %24 = vector.shape_cast %23 : vector<1x1x32xf32> to vector<1x32xf32>
    %25 = vector.shape_cast %24 : vector<1x32xf32> to vector<1x1x32xf32>
    %26 = vector.broadcast %25 : vector<1x1x32xf32> to vector<2x16x32xf32>
    %27 = arith.mulf %22, %26 : vector<2x16x32xf32>
    %c0_12 = arith.constant 0 : index
    %c0_13 = arith.constant 0 : index
    %c0_14 = arith.constant 0 : index
    %28 = vector.load %arg4[%c0_12, %c0_13, %c0_14] : memref<1x1x32xf32, #tpu.memory_space<vmem>>, vector<1x1x32xf32>
    %29 = vector.shape_cast %28 : vector<1x1x32xf32> to vector<1x32xf32>
    %30 = vector.shape_cast %29 : vector<1x32xf32> to vector<1x1x32xf32>
    %31 = vector.broadcast %30 : vector<1x1x32xf32> to vector<2x16x32xf32>
    %32 = arith.addf %27, %31 : vector<2x16x32xf32>
    %33 = vector.shape_cast %32 : vector<2x16x32xf32> to vector<32x32xf32>
    %34 = arith.truncf %33 : vector<32x32xf32> to vector<32x32xbf16>
    %c0_15 = arith.constant 0 : index
    %c0_16 = arith.constant 0 : index
    %c0_17 = arith.constant 0 : index
    %35 = vector.load %arg5[%c0_15, %c0_16, %c0_17] : memref<1x32x128xbf16, #tpu.memory_space<vmem>>, vector<1x32x128xbf16>
    %36 = vector.shape_cast %35 : vector<1x32x128xbf16> to vector<32x128xbf16>
    %cst_18 = arith.constant dense<0.000000e+00> : vector<32x128xf32>
    %37 = tpu.matmul %34, %36, %cst_18 {dimension_numbers = #tpu.dot_dimension_numbers<[1], [0], [0], [1], [0, 0, 1, 1], [], []>} : vector<32x32xbf16>, vector<32x128xbf16>, vector<32x128xf32> -> vector<32x128xf32>
    %38 = vector.extract_strided_slice %37 {offsets = [0, 0], sizes = [32, 64], strides = [1, 1]} : vector<32x128xf32> to vector<32x64xf32>
    %39 = vector.shape_cast %38 : vector<32x64xf32> to vector<2x16x64xf32>
    %40 = vector.extract_strided_slice %37 {offsets = [0, 64], sizes = [32, 64], strides = [1, 1]} : vector<32x128xf32> to vector<32x64xf32>
    %41 = vector.shape_cast %40 : vector<32x64xf32> to vector<2x16x64xf32>
    %42 = arith.truncf %41 : vector<2x16x64xf32> to vector<2x16x64xbf16>
    %c0_19 = arith.constant 0 : index
    %c0_20 = arith.constant 0 : index
    %c0_21 = arith.constant 0 : index
    %43 = vector.load %arg18[%c0_19, %c0_20, %c0_21] : memref<2x16x64xbf16, #tpu.memory_space<vmem>>, vector<2x16x64xbf16>
    tpu.vector_store %arg18[%c0_19, %c0_20, %c0_21], %42 {strides = array<i32>} : memref<2x16x64xbf16, #tpu.memory_space<vmem>>, vector<2x16x64xbf16>,
    %cst_22 = arith.constant 0.000000e+00 : f32
    %44 = vector.broadcast %cst_22 : f32 to vector<2x3x64xf32>
    %c0_23 = arith.constant 0 : index
    %c0_24 = arith.constant 0 : index
    %c0_25 = arith.constant 0 : index
    %45 = vector.load %arg16[%c0_23, %c0_24, %c0_25] : memref<2x19x64xf32, #tpu.memory_space<vmem>>, vector<2x3x64xf32>
    tpu.vector_store %arg16[%c0_23, %c0_24, %c0_25], %44 {strides = array<i32>} : memref<2x19x64xf32, #tpu.memory_space<vmem>>, vector<2x3x64xf32>,
    %c0_26 = arith.constant 0 : index
    %c3 = arith.constant 3 : index
    %c0_27 = arith.constant 0 : index
    %46 = vector.load %arg16[%c0_26, %c3, %c0_27] : memref<2x19x64xf32, #tpu.memory_space<vmem>>, vector<2x16x64xf32>
    tpu.vector_store %arg16[%c0_26, %c3, %c0_27], %39 {strides = array<i32>} : memref<2x19x64xf32, #tpu.memory_space<vmem>>, vector<2x16x64xf32>,
    %c0_28 = arith.constant 0 : index
    %c0_29 = arith.constant 0 : index
    %c0_30 = arith.constant 0 : index
    %47 = vector.load %arg6[%c0_28, %c0_29, %c0_30] : memref<1x4x64xf32, #tpu.memory_space<vmem>>, vector<1x4x64xf32>
    %48 = vector.shape_cast %47 : vector<1x4x64xf32> to vector<4x64xf32>
    %c0_31 = arith.constant 0 : index
    %c0_32 = arith.constant 0 : index
    %c0_33 = arith.constant 0 : index
    %49 = vector.load %arg7[%c0_31, %c0_32, %c0_33] : memref<1x1x64xf32, #tpu.memory_space<vmem>>, vector<1x1x64xf32>
    %50 = vector.shape_cast %49 : vector<1x1x64xf32> to vector<1x64xf32>
    %51 = vector.shape_cast %50 : vector<1x64xf32> to vector<1x1x64xf32>
    %52 = vector.shape_cast %51 : vector<1x1x64xf32> to vector<1x1x64xf32>
    %53 = vector.broadcast %52 : vector<1x1x64xf32> to vector<2x16x64xf32>
    %54 = vector.extract_strided_slice %48 {offsets = [0, 0], sizes = [1, 64], strides = [1, 1]} : vector<4x64xf32> to vector<1x64xf32>
    %55 = vector.shape_cast %54 : vector<1x64xf32> to vector<1x1x64xf32>
    %c0_34 = arith.constant 0 : index
    %c0_35 = arith.constant 0 : index
    %c0_36 = arith.constant 0 : index
    %56 = vector.load %arg16[%c0_34, %c0_35, %c0_36] : memref<2x19x64xf32, #tpu.memory_space<vmem>>, vector<2x16x64xf32>
    %57 = vector.broadcast %55 : vector<1x1x64xf32> to vector<2x16x64xf32>
    %58 = arith.mulf %57, %56 : vector<2x16x64xf32>
    %59 = arith.addf %53, %58 : vector<2x16x64xf32>
    %60 = vector.extract_strided_slice %48 {offsets = [1, 0], sizes = [1, 64], strides = [1, 1]} : vector<4x64xf32> to vector<1x64xf32>
    %61 = vector.shape_cast %60 : vector<1x64xf32> to vector<1x1x64xf32>
    %c0_37 = arith.constant 0 : index
    %c1 = arith.constant 1 : index
    %c0_38 = arith.constant 0 : index
    %62 = vector.load %arg16[%c0_37, %c1, %c0_38] : memref<2x19x64xf32, #tpu.memory_space<vmem>>, vector<2x16x64xf32>
    %63 = vector.broadcast %61 : vector<1x1x64xf32> to vector<2x16x64xf32>
    %64 = arith.mulf %63, %62 : vector<2x16x64xf32>
    %65 = arith.addf %59, %64 : vector<2x16x64xf32>
    %66 = vector.extract_strided_slice %48 {offsets = [2, 0], sizes = [1, 64], strides = [1, 1]} : vector<4x64xf32> to vector<1x64xf32>
    %67 = vector.shape_cast %66 : vector<1x64xf32> to vector<1x1x64xf32>
    %c0_39 = arith.constant 0 : index
    %c2 = arith.constant 2 : index
    %c0_40 = arith.constant 0 : index
    %68 = vector.load %arg16[%c0_39, %c2, %c0_40] : memref<2x19x64xf32, #tpu.memory_space<vmem>>, vector<2x16x64xf32>
    %69 = vector.broadcast %67 : vector<1x1x64xf32> to vector<2x16x64xf32>
    %70 = arith.mulf %69, %68 : vector<2x16x64xf32>
    %71 = arith.addf %65, %70 : vector<2x16x64xf32>
    %72 = vector.extract_strided_slice %48 {offsets = [3, 0], sizes = [1, 64], strides = [1, 1]} : vector<4x64xf32> to vector<1x64xf32>
    %73 = vector.shape_cast %72 : vector<1x64xf32> to vector<1x1x64xf32>
    %c0_41 = arith.constant 0 : index
    %c3_42 = arith.constant 3 : index
    %c0_43 = arith.constant 0 : index
    %74 = vector.load %arg16[%c0_41, %c3_42, %c0_43] : memref<2x19x64xf32, #tpu.memory_space<vmem>>, vector<2x16x64xf32>
    %75 = vector.broadcast %73 : vector<1x1x64xf32> to vector<2x16x64xf32>
    %76 = arith.mulf %75, %74 : vector<2x16x64xf32>
    %77 = arith.addf %71, %76 : vector<2x16x64xf32>
    %78 = arith.negf %77 : vector<2x16x64xf32>
    %79 = math.exp %78 : vector<2x16x64xf32>
    %cst_44 = arith.constant 1.000000e+00 : f32
    %80 = vector.broadcast %cst_44 : f32 to vector<2x16x64xf32>
    %81 = arith.addf %80, %79 : vector<2x16x64xf32>
    %82 = arith.divf %80, %81 : vector<2x16x64xf32>
    %83 = arith.mulf %77, %82 : vector<2x16x64xf32>
    %c0_45 = arith.constant 0 : index
    %c0_46 = arith.constant 0 : index
    %c0_47 = arith.constant 0 : index
    %84 = vector.load %arg17[%c0_45, %c0_46, %c0_47] : memref<2x16x64xf32, #tpu.memory_space<vmem>>, vector<2x16x64xf32>
    tpu.vector_store %arg17[%c0_45, %c0_46, %c0_47], %83 {strides = array<i32>} : memref<2x16x64xf32, #tpu.memory_space<vmem>>, vector<2x16x64xf32>,
    %85 = vector.shape_cast %83 : vector<2x16x64xf32> to vector<32x64xf32>
    %86 = arith.truncf %85 : vector<32x64xf32> to vector<32x64xbf16>
    %c0_48 = arith.constant 0 : index
    %c0_49 = arith.constant 0 : index
    %c0_50 = arith.constant 0 : index
    %87 = vector.load %arg8[%c0_48, %c0_49, %c0_50] : memref<1x64x34xbf16, #tpu.memory_space<vmem>>, vector<1x64x34xbf16>
    %88 = vector.shape_cast %87 : vector<1x64x34xbf16> to vector<64x34xbf16>
    %cst_51 = arith.constant dense<0.000000e+00> : vector<32x34xf32>
    %89 = tpu.matmul %86, %88, %cst_51 {dimension_numbers = #tpu.dot_dimension_numbers<[1], [0], [0], [1], [0, 0, 1, 1], [], []>} : vector<32x64xbf16>, vector<64x34xbf16>, vector<32x34xf32> -> vector<32x34xf32>
    %90 = vector.extract_strided_slice %89 {offsets = [0, 2], sizes = [32, 16], strides = [1, 1]} : vector<32x34xf32> to vector<32x16xf32>
    %91 = vector.shape_cast %90 : vector<32x16xf32> to vector<2x16x16xf32>
    %c0_52 = arith.constant 0 : index
    %c0_53 = arith.constant 0 : index
    %c0_54 = arith.constant 0 : index
    %92 = vector.load %arg20[%c0_52, %c0_53, %c0_54] : memref<2x16x16xf32, #tpu.memory_space<vmem>>, vector<2x16x16xf32>
    tpu.vector_store %arg20[%c0_52, %c0_53, %c0_54], %91 {strides = array<i32>} : memref<2x16x16xf32, #tpu.memory_space<vmem>>, vector<2x16x16xf32>,
    %93 = vector.extract_strided_slice %89 {offsets = [0, 18], sizes = [32, 16], strides = [1, 1]} : vector<32x34xf32> to vector<32x16xf32>
    %94 = vector.shape_cast %93 : vector<32x16xf32> to vector<2x16x16xf32>
    %c0_55 = arith.constant 0 : index
    %c0_56 = arith.constant 0 : index
    %c0_57 = arith.constant 0 : index
    %95 = vector.load %arg21[%c0_55, %c0_56, %c0_57] : memref<2x16x16xf32, #tpu.memory_space<vmem>>, vector<2x16x16xf32>
    tpu.vector_store %arg21[%c0_55, %c0_56, %c0_57], %94 {strides = array<i32>} : memref<2x16x16xf32, #tpu.memory_space<vmem>>, vector<2x16x16xf32>,
    %96 = vector.extract_strided_slice %89 {offsets = [0, 0], sizes = [32, 2], strides = [1, 1]} : vector<32x34xf32> to vector<32x2xf32>
    %97 = arith.truncf %96 : vector<32x2xf32> to vector<32x2xbf16>
    %c0_58 = arith.constant 0 : index
    %c0_59 = arith.constant 0 : index
    %c0_60 = arith.constant 0 : index
    %98 = vector.load %arg9[%c0_58, %c0_59, %c0_60] : memref<1x2x64xbf16, #tpu.memory_space<vmem>>, vector<1x2x64xbf16>
    %99 = vector.shape_cast %98 : vector<1x2x64xbf16> to vector<2x64xbf16>
    %cst_61 = arith.constant dense<0.000000e+00> : vector<32x64xf32>
    %100 = tpu.matmul %97, %99, %cst_61 {dimension_numbers = #tpu.dot_dimension_numbers<[1], [0], [0], [1], [0, 0, 1, 1], [], []>} : vector<32x2xbf16>, vector<2x64xbf16>, vector<32x64xf32> -> vector<32x64xf32>
    %c0_62 = arith.constant 0 : index
    %c0_63 = arith.constant 0 : index
    %c0_64 = arith.constant 0 : index
    %101 = vector.load %arg10[%c0_62, %c0_63, %c0_64] : memref<1x1x64xf32, #tpu.memory_space<vmem>>, vector<1x1x64xf32>
    %102 = vector.shape_cast %101 : vector<1x1x64xf32> to vector<1x64xf32>
    %103 = vector.broadcast %102 : vector<1x64xf32> to vector<32x64xf32>
    %104 = arith.addf %100, %103 : vector<32x64xf32>
    %cst_65 = arith.constant 0.000000e+00 : f32
    %105 = vector.broadcast %cst_65 : f32 to vector<32x64xf32>
    %106 = arith.maximumf %104, %105 : vector<32x64xf32>
    %107 = math.absf %104 : vector<32x64xf32>
    %cst_66 = arith.constant 0.000000e+00 : f32
    %108 = vector.broadcast %cst_66 : f32 to vector<32x64xf32>
    %109 = arith.subf %108, %107 : vector<32x64xf32>
    %110 = math.exp %109 : vector<32x64xf32>
    %cst_67 = arith.constant 1.000000e+00 : f32
    %111 = vector.broadcast %cst_67 : f32 to vector<32x64xf32>
    %112 = arith.addf %111, %110 : vector<32x64xf32>
    %113 = math.log %112 : vector<32x64xf32>
    %114 = arith.addf %106, %113 : vector<32x64xf32>
    %115 = vector.shape_cast %114 : vector<32x64xf32> to vector<2x16x64xf32>
    %c0_68 = arith.constant 0 : index
    %c0_69 = arith.constant 0 : index
    %c0_70 = arith.constant 0 : index
    %116 = vector.load %arg19[%c0_68, %c0_69, %c0_70] : memref<2x16x64xf32, #tpu.memory_space<vmem>>, vector<2x16x64xf32>
    tpu.vector_store %arg19[%c0_68, %c0_69, %c0_70], %115 {strides = array<i32>} : memref<2x16x64xf32, #tpu.memory_space<vmem>>, vector<2x16x64xf32>,
    %c0_71 = arith.constant 0 : index
    %c0_72 = arith.constant 0 : index
    %c0_73 = arith.constant 0 : index
    %117 = vector.load %arg11[%c0_71, %c0_72, %c0_73] : memref<1x16x64xf32, #tpu.memory_space<vmem>>, vector<1x16x64xf32>
    %118 = vector.shape_cast %117 : vector<1x16x64xf32> to vector<16x64xf32>
    %c0_74 = arith.constant 0 : index
    %c0_75 = arith.constant 0 : index
    %c0_76 = arith.constant 0 : index
    %119 = vector.load %arg12[%c0_74, %c0_75, %c0_76] : memref<1x1x64xf32, #tpu.memory_space<vmem>>, vector<1x1x64xf32>
    %120 = vector.shape_cast %119 : vector<1x1x64xf32> to vector<1x64xf32>
    %121 = math.exp %118 : vector<16x64xf32>
    %cst_77 = arith.constant 0.000000e+00 : f32
    %122 = vector.broadcast %cst_77 : f32 to vector<16x64xf32>
    %123 = arith.subf %122, %121 : vector<16x64xf32>
    %124 = vector.shape_cast %120 : vector<1x64xf32> to vector<1x1x64xf32>
    %cst_78 = arith.constant 0.000000e+00 : f32
    %125 = vector.broadcast %cst_78 : f32 to vector<2x16x64xf32>
    %c0_i32_79 = arith.constant 0 : i32
    %c16_i32 = arith.constant 16 : i32
    %126 = arith.muli %c0_i32_79, %c16_i32 : i32
    %127 = tpu.assume_multiple %126, 16 : i32
    %c0_80 = arith.constant 0 : index
    %128 = arith.index_cast %127 : i32 to index
    %c0_81 = arith.constant 0 : index
    %129 = vector.load %arg19[%c0_80, %128, %c0_81] : memref<2x16x64xf32, #tpu.memory_space<vmem>>, vector<2x16x64xf32>
    %c0_82 = arith.constant 0 : index
    %130 = arith.index_cast %127 : i32 to index
    %c0_83 = arith.constant 0 : index
    %131 = vector.load %arg17[%c0_82, %130, %c0_83] : memref<2x16x64xf32, #tpu.memory_space<vmem>>, vector<2x16x64xf32>
    %c0_84 = arith.constant 0 : index
    %132 = arith.index_cast %127 : i32 to index
    %c0_85 = arith.constant 0 : index
    %133 = vector.load %arg20[%c0_84, %132, %c0_85] : memref<2x16x16xf32, #tpu.memory_space<vmem>>, vector<2x16x16xf32>
    %c0_86 = arith.constant 0 : index
    %134 = arith.index_cast %127 : i32 to index
    %c0_87 = arith.constant 0 : index
    %135 = vector.load %arg21[%c0_86, %134, %c0_87] : memref<2x16x16xf32, #tpu.memory_space<vmem>>, vector<2x16x16xf32>
    %c0_88 = arith.constant 0 : index
    %136 = arith.index_cast %127 : i32 to index
    %c0_89 = arith.constant 0 : index
    %137 = vector.load %arg18[%c0_88, %136, %c0_89] : memref<2x16x64xbf16, #tpu.memory_space<vmem>>, vector<2x16x64xbf16>
    %138 = arith.extf %137 : vector<2x16x64xbf16> to vector<2x16x64xf32>
    %139 = vector.shape_cast %129 : vector<2x16x64xf32> to vector<2x16x1x64xf32>
    %140 = vector.shape_cast %123 : vector<16x64xf32> to vector<1x1x16x64xf32>
    %141 = vector.broadcast %139 : vector<2x16x1x64xf32> to vector<2x16x16x64xf32>
    %142 = vector.broadcast %140 : vector<1x1x16x64xf32> to vector<2x16x16x64xf32>
    %143 = arith.mulf %141, %142 : vector<2x16x16x64xf32>
    %144 = math.exp %143 : vector<2x16x16x64xf32>
    %145 = arith.mulf %129, %131 : vector<2x16x64xf32>
    %146 = vector.extract_strided_slice %144 {offsets = [0, 0, 0, 0], sizes = [2, 1, 16, 64], strides = [1, 1, 1, 1]} : vector<2x16x16x64xf32> to vector<2x1x16x64xf32>
    %147 = vector.shape_cast %146 : vector<2x1x16x64xf32> to vector<2x16x64xf32>
    %148 = arith.mulf %147, %125 : vector<2x16x64xf32>
    %149 = vector.extract_strided_slice %145 {offsets = [0, 0, 0], sizes = [2, 1, 64], strides = [1, 1, 1]} : vector<2x16x64xf32> to vector<2x1x64xf32>
    %150 = vector.shape_cast %149 : vector<2x1x64xf32> to vector<2x64xf32>
    %151 = vector.shape_cast %150 : vector<2x64xf32> to vector<2x1x64xf32>
    %152 = vector.extract_strided_slice %133 {offsets = [0, 0, 0], sizes = [2, 1, 16], strides = [1, 1, 1]} : vector<2x16x16xf32> to vector<2x1x16xf32>
    %153 = vector.shape_cast %152 : vector<2x1x16xf32> to vector<2x16xf32>
    %154 = vector.shape_cast %153 : vector<2x16xf32> to vector<2x16x1xf32>
    %155 = vector.broadcast %151 : vector<2x1x64xf32> to vector<2x16x64xf32>
    %156 = vector.broadcast %154 : vector<2x16x1xf32> to vector<2x16x64xf32>
    %157 = arith.mulf %155, %156 : vector<2x16x64xf32>
    %158 = arith.addf %148, %157 : vector<2x16x64xf32>
    %159 = vector.extract_strided_slice %135 {offsets = [0, 0, 0], sizes = [2, 1, 16], strides = [1, 1, 1]} : vector<2x16x16xf32> to vector<2x1x16xf32>
    %160 = vector.shape_cast %159 : vector<2x1x16xf32> to vector<2x16xf32>
    %161 = vector.shape_cast %160 : vector<2x16xf32> to vector<2x16x1xf32>
    %162 = vector.broadcast %161 : vector<2x16x1xf32> to vector<2x16x64xf32>
    %163 = arith.mulf %158, %162 : vector<2x16x64xf32>
    %cst_90 = arith.constant dense<0.000000e+00> : vector<2x64xf32>
    %164 = vector.multi_reduction <add>, %163, %cst_90 [1] : vector<2x16x64xf32> to vector<2x64xf32>
    %165 = vector.extract_strided_slice %144 {offsets = [0, 1, 0, 0], sizes = [2, 1, 16, 64], strides = [1, 1, 1, 1]} : vector<2x16x16x64xf32> to vector<2x1x16x64xf32>
    %166 = vector.shape_cast %165 : vector<2x1x16x64xf32> to vector<2x16x64xf32>
    %167 = arith.mulf %166, %158 : vector<2x16x64xf32>
    %168 = vector.extract_strided_slice %145 {offsets = [0, 1, 0], sizes = [2, 1, 64], strides = [1, 1, 1]} : vector<2x16x64xf32> to vector<2x1x64xf32>
    %169 = vector.shape_cast %168 : vector<2x1x64xf32> to vector<2x64xf32>
    %170 = vector.shape_cast %169 : vector<2x64xf32> to vector<2x1x64xf32>
    %171 = vector.extract_strided_slice %133 {offsets = [0, 1, 0], sizes = [2, 1, 16], strides = [1, 1, 1]} : vector<2x16x16xf32> to vector<2x1x16xf32>
    %172 = vector.shape_cast %171 : vector<2x1x16xf32> to vector<2x16xf32>
    %173 = vector.shape_cast %172 : vector<2x16xf32> to vector<2x16x1xf32>
    %174 = vector.broadcast %170 : vector<2x1x64xf32> to vector<2x16x64xf32>
    %175 = vector.broadcast %173 : vector<2x16x1xf32> to vector<2x16x64xf32>
    %176 = arith.mulf %174, %175 : vector<2x16x64xf32>
    %177 = arith.addf %167, %176 : vector<2x16x64xf32>
    %178 = vector.extract_strided_slice %135 {offsets = [0, 1, 0], sizes = [2, 1, 16], strides = [1, 1, 1]} : vector<2x16x16xf32> to vector<2x1x16xf32>
    %179 = vector.shape_cast %178 : vector<2x1x16xf32> to vector<2x16xf32>
    %180 = vector.shape_cast %179 : vector<2x16xf32> to vector<2x16x1xf32>
    %181 = vector.broadcast %180 : vector<2x16x1xf32> to vector<2x16x64xf32>
    %182 = arith.mulf %177, %181 : vector<2x16x64xf32>
    %cst_91 = arith.constant dense<0.000000e+00> : vector<2x64xf32>
    %183 = vector.multi_reduction <add>, %182, %cst_91 [1] : vector<2x16x64xf32> to vector<2x64xf32>
    %184 = vector.extract_strided_slice %144 {offsets = [0, 2, 0, 0], sizes = [2, 1, 16, 64], strides = [1, 1, 1, 1]} : vector<2x16x16x64xf32> to vector<2x1x16x64xf32>
    %185 = vector.shape_cast %184 : vector<2x1x16x64xf32> to vector<2x16x64xf32>
    %186 = arith.mulf %185, %177 : vector<2x16x64xf32>
    %187 = vector.extract_strided_slice %145 {offsets = [0, 2, 0], sizes = [2, 1, 64], strides = [1, 1, 1]} : vector<2x16x64xf32> to vector<2x1x64xf32>
    %188 = vector.shape_cast %187 : vector<2x1x64xf32> to vector<2x64xf32>
    %189 = vector.shape_cast %188 : vector<2x64xf32> to vector<2x1x64xf32>
    %190 = vector.extract_strided_slice %133 {offsets = [0, 2, 0], sizes = [2, 1, 16], strides = [1, 1, 1]} : vector<2x16x16xf32> to vector<2x1x16xf32>
    %191 = vector.shape_cast %190 : vector<2x1x16xf32> to vector<2x16xf32>
    %192 = vector.shape_cast %191 : vector<2x16xf32> to vector<2x16x1xf32>
    %193 = vector.broadcast %189 : vector<2x1x64xf32> to vector<2x16x64xf32>
    %194 = vector.broadcast %192 : vector<2x16x1xf32> to vector<2x16x64xf32>
    %195 = arith.mulf %193, %194 : vector<2x16x64xf32>
    %196 = arith.addf %186, %195 : vector<2x16x64xf32>
    %197 = vector.extract_strided_slice %135 {offsets = [0, 2, 0], sizes = [2, 1, 16], strides = [1, 1, 1]} : vector<2x16x16xf32> to vector<2x1x16xf32>
    %198 = vector.shape_cast %197 : vector<2x1x16xf32> to vector<2x16xf32>
    %199 = vector.shape_cast %198 : vector<2x16xf32> to vector<2x16x1xf32>
    %200 = vector.broadcast %199 : vector<2x16x1xf32> to vector<2x16x64xf32>
    %201 = arith.mulf %196, %200 : vector<2x16x64xf32>
    %cst_92 = arith.constant dense<0.000000e+00> : vector<2x64xf32>
    %202 = vector.multi_reduction <add>, %201, %cst_92 [1] : vector<2x16x64xf32> to vector<2x64xf32>
    %203 = vector.extract_strided_slice %144 {offsets = [0, 3, 0, 0], sizes = [2, 1, 16, 64], strides = [1, 1, 1, 1]} : vector<2x16x16x64xf32> to vector<2x1x16x64xf32>
    %204 = vector.shape_cast %203 : vector<2x1x16x64xf32> to vector<2x16x64xf32>
    %205 = arith.mulf %204, %196 : vector<2x16x64xf32>
    %206 = vector.extract_strided_slice %145 {offsets = [0, 3, 0], sizes = [2, 1, 64], strides = [1, 1, 1]} : vector<2x16x64xf32> to vector<2x1x64xf32>
    %207 = vector.shape_cast %206 : vector<2x1x64xf32> to vector<2x64xf32>
    %208 = vector.shape_cast %207 : vector<2x64xf32> to vector<2x1x64xf32>
    %209 = vector.extract_strided_slice %133 {offsets = [0, 3, 0], sizes = [2, 1, 16], strides = [1, 1, 1]} : vector<2x16x16xf32> to vector<2x1x16xf32>
    %210 = vector.shape_cast %209 : vector<2x1x16xf32> to vector<2x16xf32>
    %211 = vector.shape_cast %210 : vector<2x16xf32> to vector<2x16x1xf32>
    %212 = vector.broadcast %208 : vector<2x1x64xf32> to vector<2x16x64xf32>
    %213 = vector.broadcast %211 : vector<2x16x1xf32> to vector<2x16x64xf32>
    %214 = arith.mulf %212, %213 : vector<2x16x64xf32>
    %215 = arith.addf %205, %214 : vector<2x16x64xf32>
    %216 = vector.extract_strided_slice %135 {offsets = [0, 3, 0], sizes = [2, 1, 16], strides = [1, 1, 1]} : vector<2x16x16xf32> to vector<2x1x16xf32>
    %217 = vector.shape_cast %216 : vector<2x1x16xf32> to vector<2x16xf32>
    %218 = vector.shape_cast %217 : vector<2x16xf32> to vector<2x16x1xf32>
    %219 = vector.broadcast %218 : vector<2x16x1xf32> to vector<2x16x64xf32>
    %220 = arith.mulf %215, %219 : vector<2x16x64xf32>
    %cst_93 = arith.constant dense<0.000000e+00> : vector<2x64xf32>
    %221 = vector.multi_reduction <add>, %220, %cst_93 [1] : vector<2x16x64xf32> to vector<2x64xf32>
    %222 = vector.extract_strided_slice %144 {offsets = [0, 4, 0, 0], sizes = [2, 1, 16, 64], strides = [1, 1, 1, 1]} : vector<2x16x16x64xf32> to vector<2x1x16x64xf32>
    %223 = vector.shape_cast %222 : vector<2x1x16x64xf32> to vector<2x16x64xf32>
    %224 = arith.mulf %223, %215 : vector<2x16x64xf32>
    %225 = vector.extract_strided_slice %145 {offsets = [0, 4, 0], sizes = [2, 1, 64], strides = [1, 1, 1]} : vector<2x16x64xf32> to vector<2x1x64xf32>
    %226 = vector.shape_cast %225 : vector<2x1x64xf32> to vector<2x64xf32>
    %227 = vector.shape_cast %226 : vector<2x64xf32> to vector<2x1x64xf32>
    %228 = vector.extract_strided_slice %133 {offsets = [0, 4, 0], sizes = [2, 1, 16], strides = [1, 1, 1]} : vector<2x16x16xf32> to vector<2x1x16xf32>
    %229 = vector.shape_cast %228 : vector<2x1x16xf32> to vector<2x16xf32>
    %230 = vector.shape_cast %229 : vector<2x16xf32> to vector<2x16x1xf32>
    %231 = vector.broadcast %227 : vector<2x1x64xf32> to vector<2x16x64xf32>
    %232 = vector.broadcast %230 : vector<2x16x1xf32> to vector<2x16x64xf32>
    %233 = arith.mulf %231, %232 : vector<2x16x64xf32>
    %234 = arith.addf %224, %233 : vector<2x16x64xf32>
    %235 = vector.extract_strided_slice %135 {offsets = [0, 4, 0], sizes = [2, 1, 16], strides = [1, 1, 1]} : vector<2x16x16xf32> to vector<2x1x16xf32>
    %236 = vector.shape_cast %235 : vector<2x1x16xf32> to vector<2x16xf32>
    %237 = vector.shape_cast %236 : vector<2x16xf32> to vector<2x16x1xf32>
    %238 = vector.broadcast %237 : vector<2x16x1xf32> to vector<2x16x64xf32>
    %239 = arith.mulf %234, %238 : vector<2x16x64xf32>
    %cst_94 = arith.constant dense<0.000000e+00> : vector<2x64xf32>
    %240 = vector.multi_reduction <add>, %239, %cst_94 [1] : vector<2x16x64xf32> to vector<2x64xf32>
    %241 = vector.extract_strided_slice %144 {offsets = [0, 5, 0, 0], sizes = [2, 1, 16, 64], strides = [1, 1, 1, 1]} : vector<2x16x16x64xf32> to vector<2x1x16x64xf32>
    %242 = vector.shape_cast %241 : vector<2x1x16x64xf32> to vector<2x16x64xf32>
    %243 = arith.mulf %242, %234 : vector<2x16x64xf32>
    %244 = vector.extract_strided_slice %145 {offsets = [0, 5, 0], sizes = [2, 1, 64], strides = [1, 1, 1]} : vector<2x16x64xf32> to vector<2x1x64xf32>
    %245 = vector.shape_cast %244 : vector<2x1x64xf32> to vector<2x64xf32>
    %246 = vector.shape_cast %245 : vector<2x64xf32> to vector<2x1x64xf32>
    %247 = vector.extract_strided_slice %133 {offsets = [0, 5, 0], sizes = [2, 1, 16], strides = [1, 1, 1]} : vector<2x16x16xf32> to vector<2x1x16xf32>
    %248 = vector.shape_cast %247 : vector<2x1x16xf32> to vector<2x16xf32>
    %249 = vector.shape_cast %248 : vector<2x16xf32> to vector<2x16x1xf32>
    %250 = vector.broadcast %246 : vector<2x1x64xf32> to vector<2x16x64xf32>
    %251 = vector.broadcast %249 : vector<2x16x1xf32> to vector<2x16x64xf32>
    %252 = arith.mulf %250, %251 : vector<2x16x64xf32>
    %253 = arith.addf %243, %252 : vector<2x16x64xf32>
    %254 = vector.extract_strided_slice %135 {offsets = [0, 5, 0], sizes = [2, 1, 16], strides = [1, 1, 1]} : vector<2x16x16xf32> to vector<2x1x16xf32>
    %255 = vector.shape_cast %254 : vector<2x1x16xf32> to vector<2x16xf32>
    %256 = vector.shape_cast %255 : vector<2x16xf32> to vector<2x16x1xf32>
    %257 = vector.broadcast %256 : vector<2x16x1xf32> to vector<2x16x64xf32>
    %258 = arith.mulf %253, %257 : vector<2x16x64xf32>
    %cst_95 = arith.constant dense<0.000000e+00> : vector<2x64xf32>
    %259 = vector.multi_reduction <add>, %258, %cst_95 [1] : vector<2x16x64xf32> to vector<2x64xf32>
    %260 = vector.extract_strided_slice %144 {offsets = [0, 6, 0, 0], sizes = [2, 1, 16, 64], strides = [1, 1, 1, 1]} : vector<2x16x16x64xf32> to vector<2x1x16x64xf32>
    %261 = vector.shape_cast %260 : vector<2x1x16x64xf32> to vector<2x16x64xf32>
    %262 = arith.mulf %261, %253 : vector<2x16x64xf32>
    %263 = vector.extract_strided_slice %145 {offsets = [0, 6, 0], sizes = [2, 1, 64], strides = [1, 1, 1]} : vector<2x16x64xf32> to vector<2x1x64xf32>
    %264 = vector.shape_cast %263 : vector<2x1x64xf32> to vector<2x64xf32>
    %265 = vector.shape_cast %264 : vector<2x64xf32> to vector<2x1x64xf32>
    %266 = vector.extract_strided_slice %133 {offsets = [0, 6, 0], sizes = [2, 1, 16], strides = [1, 1, 1]} : vector<2x16x16xf32> to vector<2x1x16xf32>
    %267 = vector.shape_cast %266 : vector<2x1x16xf32> to vector<2x16xf32>
    %268 = vector.shape_cast %267 : vector<2x16xf32> to vector<2x16x1xf32>
    %269 = vector.broadcast %265 : vector<2x1x64xf32> to vector<2x16x64xf32>
    %270 = vector.broadcast %268 : vector<2x16x1xf32> to vector<2x16x64xf32>
    %271 = arith.mulf %269, %270 : vector<2x16x64xf32>
    %272 = arith.addf %262, %271 : vector<2x16x64xf32>
    %273 = vector.extract_strided_slice %135 {offsets = [0, 6, 0], sizes = [2, 1, 16], strides = [1, 1, 1]} : vector<2x16x16xf32> to vector<2x1x16xf32>
    %274 = vector.shape_cast %273 : vector<2x1x16xf32> to vector<2x16xf32>
    %275 = vector.shape_cast %274 : vector<2x16xf32> to vector<2x16x1xf32>
    %276 = vector.broadcast %275 : vector<2x16x1xf32> to vector<2x16x64xf32>
    %277 = arith.mulf %272, %276 : vector<2x16x64xf32>
    %cst_96 = arith.constant dense<0.000000e+00> : vector<2x64xf32>
    %278 = vector.multi_reduction <add>, %277, %cst_96 [1] : vector<2x16x64xf32> to vector<2x64xf32>
    %279 = vector.extract_strided_slice %144 {offsets = [0, 7, 0, 0], sizes = [2, 1, 16, 64], strides = [1, 1, 1, 1]} : vector<2x16x16x64xf32> to vector<2x1x16x64xf32>
    %280 = vector.shape_cast %279 : vector<2x1x16x64xf32> to vector<2x16x64xf32>
    %281 = arith.mulf %280, %272 : vector<2x16x64xf32>
    %282 = vector.extract_strided_slice %145 {offsets = [0, 7, 0], sizes = [2, 1, 64], strides = [1, 1, 1]} : vector<2x16x64xf32> to vector<2x1x64xf32>
    %283 = vector.shape_cast %282 : vector<2x1x64xf32> to vector<2x64xf32>
    %284 = vector.shape_cast %283 : vector<2x64xf32> to vector<2x1x64xf32>
    %285 = vector.extract_strided_slice %133 {offsets = [0, 7, 0], sizes = [2, 1, 16], strides = [1, 1, 1]} : vector<2x16x16xf32> to vector<2x1x16xf32>
    %286 = vector.shape_cast %285 : vector<2x1x16xf32> to vector<2x16xf32>
    %287 = vector.shape_cast %286 : vector<2x16xf32> to vector<2x16x1xf32>
    %288 = vector.broadcast %284 : vector<2x1x64xf32> to vector<2x16x64xf32>
    %289 = vector.broadcast %287 : vector<2x16x1xf32> to vector<2x16x64xf32>
    %290 = arith.mulf %288, %289 : vector<2x16x64xf32>
    %291 = arith.addf %281, %290 : vector<2x16x64xf32>
    %292 = vector.extract_strided_slice %135 {offsets = [0, 7, 0], sizes = [2, 1, 16], strides = [1, 1, 1]} : vector<2x16x16xf32> to vector<2x1x16xf32>
    %293 = vector.shape_cast %292 : vector<2x1x16xf32> to vector<2x16xf32>
    %294 = vector.shape_cast %293 : vector<2x16xf32> to vector<2x16x1xf32>
    %295 = vector.broadcast %294 : vector<2x16x1xf32> to vector<2x16x64xf32>
    %296 = arith.mulf %291, %295 : vector<2x16x64xf32>
    %cst_97 = arith.constant dense<0.000000e+00> : vector<2x64xf32>
    %297 = vector.multi_reduction <add>, %296, %cst_97 [1] : vector<2x16x64xf32> to vector<2x64xf32>
    %298 = vector.extract_strided_slice %144 {offsets = [0, 8, 0, 0], sizes = [2, 1, 16, 64], strides = [1, 1, 1, 1]} : vector<2x16x16x64xf32> to vector<2x1x16x64xf32>
    %299 = vector.shape_cast %298 : vector<2x1x16x64xf32> to vector<2x16x64xf32>
    %300 = arith.mulf %299, %291 : vector<2x16x64xf32>
    %301 = vector.extract_strided_slice %145 {offsets = [0, 8, 0], sizes = [2, 1, 64], strides = [1, 1, 1]} : vector<2x16x64xf32> to vector<2x1x64xf32>
    %302 = vector.shape_cast %301 : vector<2x1x64xf32> to vector<2x64xf32>
    %303 = vector.shape_cast %302 : vector<2x64xf32> to vector<2x1x64xf32>
    %304 = vector.extract_strided_slice %133 {offsets = [0, 8, 0], sizes = [2, 1, 16], strides = [1, 1, 1]} : vector<2x16x16xf32> to vector<2x1x16xf32>
    %305 = vector.shape_cast %304 : vector<2x1x16xf32> to vector<2x16xf32>
    %306 = vector.shape_cast %305 : vector<2x16xf32> to vector<2x16x1xf32>
    %307 = vector.broadcast %303 : vector<2x1x64xf32> to vector<2x16x64xf32>
    %308 = vector.broadcast %306 : vector<2x16x1xf32> to vector<2x16x64xf32>
    %309 = arith.mulf %307, %308 : vector<2x16x64xf32>
    %310 = arith.addf %300, %309 : vector<2x16x64xf32>
    %311 = vector.extract_strided_slice %135 {offsets = [0, 8, 0], sizes = [2, 1, 16], strides = [1, 1, 1]} : vector<2x16x16xf32> to vector<2x1x16xf32>
    %312 = vector.shape_cast %311 : vector<2x1x16xf32> to vector<2x16xf32>
    %313 = vector.shape_cast %312 : vector<2x16xf32> to vector<2x16x1xf32>
    %314 = vector.broadcast %313 : vector<2x16x1xf32> to vector<2x16x64xf32>
    %315 = arith.mulf %310, %314 : vector<2x16x64xf32>
    %cst_98 = arith.constant dense<0.000000e+00> : vector<2x64xf32>
    %316 = vector.multi_reduction <add>, %315, %cst_98 [1] : vector<2x16x64xf32> to vector<2x64xf32>
    %317 = vector.extract_strided_slice %144 {offsets = [0, 9, 0, 0], sizes = [2, 1, 16, 64], strides = [1, 1, 1, 1]} : vector<2x16x16x64xf32> to vector<2x1x16x64xf32>
    %318 = vector.shape_cast %317 : vector<2x1x16x64xf32> to vector<2x16x64xf32>
    %319 = arith.mulf %318, %310 : vector<2x16x64xf32>
    %320 = vector.extract_strided_slice %145 {offsets = [0, 9, 0], sizes = [2, 1, 64], strides = [1, 1, 1]} : vector<2x16x64xf32> to vector<2x1x64xf32>
    %321 = vector.shape_cast %320 : vector<2x1x64xf32> to vector<2x64xf32>
    %322 = vector.shape_cast %321 : vector<2x64xf32> to vector<2x1x64xf32>
    %323 = vector.extract_strided_slice %133 {offsets = [0, 9, 0], sizes = [2, 1, 16], strides = [1, 1, 1]} : vector<2x16x16xf32> to vector<2x1x16xf32>
    %324 = vector.shape_cast %323 : vector<2x1x16xf32> to vector<2x16xf32>
    %325 = vector.shape_cast %324 : vector<2x16xf32> to vector<2x16x1xf32>
    %326 = vector.broadcast %322 : vector<2x1x64xf32> to vector<2x16x64xf32>
    %327 = vector.broadcast %325 : vector<2x16x1xf32> to vector<2x16x64xf32>
    %328 = arith.mulf %326, %327 : vector<2x16x64xf32>
    %329 = arith.addf %319, %328 : vector<2x16x64xf32>
    %330 = vector.extract_strided_slice %135 {offsets = [0, 9, 0], sizes = [2, 1, 16], strides = [1, 1, 1]} : vector<2x16x16xf32> to vector<2x1x16xf32>
    %331 = vector.shape_cast %330 : vector<2x1x16xf32> to vector<2x16xf32>
    %332 = vector.shape_cast %331 : vector<2x16xf32> to vector<2x16x1xf32>
    %333 = vector.broadcast %332 : vector<2x16x1xf32> to vector<2x16x64xf32>
    %334 = arith.mulf %329, %333 : vector<2x16x64xf32>
    %cst_99 = arith.constant dense<0.000000e+00> : vector<2x64xf32>
    %335 = vector.multi_reduction <add>, %334, %cst_99 [1] : vector<2x16x64xf32> to vector<2x64xf32>
    %336 = vector.extract_strided_slice %144 {offsets = [0, 10, 0, 0], sizes = [2, 1, 16, 64], strides = [1, 1, 1, 1]} : vector<2x16x16x64xf32> to vector<2x1x16x64xf32>
    %337 = vector.shape_cast %336 : vector<2x1x16x64xf32> to vector<2x16x64xf32>
    %338 = arith.mulf %337, %329 : vector<2x16x64xf32>
    %339 = vector.extract_strided_slice %145 {offsets = [0, 10, 0], sizes = [2, 1, 64], strides = [1, 1, 1]} : vector<2x16x64xf32> to vector<2x1x64xf32>
    %340 = vector.shape_cast %339 : vector<2x1x64xf32> to vector<2x64xf32>
    %341 = vector.shape_cast %340 : vector<2x64xf32> to vector<2x1x64xf32>
    %342 = vector.extract_strided_slice %133 {offsets = [0, 10, 0], sizes = [2, 1, 16], strides = [1, 1, 1]} : vector<2x16x16xf32> to vector<2x1x16xf32>
    %343 = vector.shape_cast %342 : vector<2x1x16xf32> to vector<2x16xf32>
    %344 = vector.shape_cast %343 : vector<2x16xf32> to vector<2x16x1xf32>
    %345 = vector.broadcast %341 : vector<2x1x64xf32> to vector<2x16x64xf32>
    %346 = vector.broadcast %344 : vector<2x16x1xf32> to vector<2x16x64xf32>
    %347 = arith.mulf %345, %346 : vector<2x16x64xf32>
    %348 = arith.addf %338, %347 : vector<2x16x64xf32>
    %349 = vector.extract_strided_slice %135 {offsets = [0, 10, 0], sizes = [2, 1, 16], strides = [1, 1, 1]} : vector<2x16x16xf32> to vector<2x1x16xf32>
    %350 = vector.shape_cast %349 : vector<2x1x16xf32> to vector<2x16xf32>
    %351 = vector.shape_cast %350 : vector<2x16xf32> to vector<2x16x1xf32>
    %352 = vector.broadcast %351 : vector<2x16x1xf32> to vector<2x16x64xf32>
    %353 = arith.mulf %348, %352 : vector<2x16x64xf32>
    %cst_100 = arith.constant dense<0.000000e+00> : vector<2x64xf32>
    %354 = vector.multi_reduction <add>, %353, %cst_100 [1] : vector<2x16x64xf32> to vector<2x64xf32>
    %355 = vector.extract_strided_slice %144 {offsets = [0, 11, 0, 0], sizes = [2, 1, 16, 64], strides = [1, 1, 1, 1]} : vector<2x16x16x64xf32> to vector<2x1x16x64xf32>
    %356 = vector.shape_cast %355 : vector<2x1x16x64xf32> to vector<2x16x64xf32>
    %357 = arith.mulf %356, %348 : vector<2x16x64xf32>
    %358 = vector.extract_strided_slice %145 {offsets = [0, 11, 0], sizes = [2, 1, 64], strides = [1, 1, 1]} : vector<2x16x64xf32> to vector<2x1x64xf32>
    %359 = vector.shape_cast %358 : vector<2x1x64xf32> to vector<2x64xf32>
    %360 = vector.shape_cast %359 : vector<2x64xf32> to vector<2x1x64xf32>
    %361 = vector.extract_strided_slice %133 {offsets = [0, 11, 0], sizes = [2, 1, 16], strides = [1, 1, 1]} : vector<2x16x16xf32> to vector<2x1x16xf32>
    %362 = vector.shape_cast %361 : vector<2x1x16xf32> to vector<2x16xf32>
    %363 = vector.shape_cast %362 : vector<2x16xf32> to vector<2x16x1xf32>
    %364 = vector.broadcast %360 : vector<2x1x64xf32> to vector<2x16x64xf32>
    %365 = vector.broadcast %363 : vector<2x16x1xf32> to vector<2x16x64xf32>
    %366 = arith.mulf %364, %365 : vector<2x16x64xf32>
    %367 = arith.addf %357, %366 : vector<2x16x64xf32>
    %368 = vector.extract_strided_slice %135 {offsets = [0, 11, 0], sizes = [2, 1, 16], strides = [1, 1, 1]} : vector<2x16x16xf32> to vector<2x1x16xf32>
    %369 = vector.shape_cast %368 : vector<2x1x16xf32> to vector<2x16xf32>
    %370 = vector.shape_cast %369 : vector<2x16xf32> to vector<2x16x1xf32>
    %371 = vector.broadcast %370 : vector<2x16x1xf32> to vector<2x16x64xf32>
    %372 = arith.mulf %367, %371 : vector<2x16x64xf32>
    %cst_101 = arith.constant dense<0.000000e+00> : vector<2x64xf32>
    %373 = vector.multi_reduction <add>, %372, %cst_101 [1] : vector<2x16x64xf32> to vector<2x64xf32>
    %374 = vector.extract_strided_slice %144 {offsets = [0, 12, 0, 0], sizes = [2, 1, 16, 64], strides = [1, 1, 1, 1]} : vector<2x16x16x64xf32> to vector<2x1x16x64xf32>
    %375 = vector.shape_cast %374 : vector<2x1x16x64xf32> to vector<2x16x64xf32>
    %376 = arith.mulf %375, %367 : vector<2x16x64xf32>
    %377 = vector.extract_strided_slice %145 {offsets = [0, 12, 0], sizes = [2, 1, 64], strides = [1, 1, 1]} : vector<2x16x64xf32> to vector<2x1x64xf32>
    %378 = vector.shape_cast %377 : vector<2x1x64xf32> to vector<2x64xf32>
    %379 = vector.shape_cast %378 : vector<2x64xf32> to vector<2x1x64xf32>
    %380 = vector.extract_strided_slice %133 {offsets = [0, 12, 0], sizes = [2, 1, 16], strides = [1, 1, 1]} : vector<2x16x16xf32> to vector<2x1x16xf32>
    %381 = vector.shape_cast %380 : vector<2x1x16xf32> to vector<2x16xf32>
    %382 = vector.shape_cast %381 : vector<2x16xf32> to vector<2x16x1xf32>
    %383 = vector.broadcast %379 : vector<2x1x64xf32> to vector<2x16x64xf32>
    %384 = vector.broadcast %382 : vector<2x16x1xf32> to vector<2x16x64xf32>
    %385 = arith.mulf %383, %384 : vector<2x16x64xf32>
    %386 = arith.addf %376, %385 : vector<2x16x64xf32>
    %387 = vector.extract_strided_slice %135 {offsets = [0, 12, 0], sizes = [2, 1, 16], strides = [1, 1, 1]} : vector<2x16x16xf32> to vector<2x1x16xf32>
    %388 = vector.shape_cast %387 : vector<2x1x16xf32> to vector<2x16xf32>
    %389 = vector.shape_cast %388 : vector<2x16xf32> to vector<2x16x1xf32>
    %390 = vector.broadcast %389 : vector<2x16x1xf32> to vector<2x16x64xf32>
    %391 = arith.mulf %386, %390 : vector<2x16x64xf32>
    %cst_102 = arith.constant dense<0.000000e+00> : vector<2x64xf32>
    %392 = vector.multi_reduction <add>, %391, %cst_102 [1] : vector<2x16x64xf32> to vector<2x64xf32>
    %393 = vector.extract_strided_slice %144 {offsets = [0, 13, 0, 0], sizes = [2, 1, 16, 64], strides = [1, 1, 1, 1]} : vector<2x16x16x64xf32> to vector<2x1x16x64xf32>
    %394 = vector.shape_cast %393 : vector<2x1x16x64xf32> to vector<2x16x64xf32>
    %395 = arith.mulf %394, %386 : vector<2x16x64xf32>
    %396 = vector.extract_strided_slice %145 {offsets = [0, 13, 0], sizes = [2, 1, 64], strides = [1, 1, 1]} : vector<2x16x64xf32> to vector<2x1x64xf32>
    %397 = vector.shape_cast %396 : vector<2x1x64xf32> to vector<2x64xf32>
    %398 = vector.shape_cast %397 : vector<2x64xf32> to vector<2x1x64xf32>
    %399 = vector.extract_strided_slice %133 {offsets = [0, 13, 0], sizes = [2, 1, 16], strides = [1, 1, 1]} : vector<2x16x16xf32> to vector<2x1x16xf32>
    %400 = vector.shape_cast %399 : vector<2x1x16xf32> to vector<2x16xf32>
    %401 = vector.shape_cast %400 : vector<2x16xf32> to vector<2x16x1xf32>
    %402 = vector.broadcast %398 : vector<2x1x64xf32> to vector<2x16x64xf32>
    %403 = vector.broadcast %401 : vector<2x16x1xf32> to vector<2x16x64xf32>
    %404 = arith.mulf %402, %403 : vector<2x16x64xf32>
    %405 = arith.addf %395, %404 : vector<2x16x64xf32>
    %406 = vector.extract_strided_slice %135 {offsets = [0, 13, 0], sizes = [2, 1, 16], strides = [1, 1, 1]} : vector<2x16x16xf32> to vector<2x1x16xf32>
    %407 = vector.shape_cast %406 : vector<2x1x16xf32> to vector<2x16xf32>
    %408 = vector.shape_cast %407 : vector<2x16xf32> to vector<2x16x1xf32>
    %409 = vector.broadcast %408 : vector<2x16x1xf32> to vector<2x16x64xf32>
    %410 = arith.mulf %405, %409 : vector<2x16x64xf32>
    %cst_103 = arith.constant dense<0.000000e+00> : vector<2x64xf32>
    %411 = vector.multi_reduction <add>, %410, %cst_103 [1] : vector<2x16x64xf32> to vector<2x64xf32>
    %412 = vector.extract_strided_slice %144 {offsets = [0, 14, 0, 0], sizes = [2, 1, 16, 64], strides = [1, 1, 1, 1]} : vector<2x16x16x64xf32> to vector<2x1x16x64xf32>
    %413 = vector.shape_cast %412 : vector<2x1x16x64xf32> to vector<2x16x64xf32>
    %414 = arith.mulf %413, %405 : vector<2x16x64xf32>
    %415 = vector.extract_strided_slice %145 {offsets = [0, 14, 0], sizes = [2, 1, 64], strides = [1, 1, 1]} : vector<2x16x64xf32> to vector<2x1x64xf32>
    %416 = vector.shape_cast %415 : vector<2x1x64xf32> to vector<2x64xf32>
    %417 = vector.shape_cast %416 : vector<2x64xf32> to vector<2x1x64xf32>
    %418 = vector.extract_strided_slice %133 {offsets = [0, 14, 0], sizes = [2, 1, 16], strides = [1, 1, 1]} : vector<2x16x16xf32> to vector<2x1x16xf32>
    %419 = vector.shape_cast %418 : vector<2x1x16xf32> to vector<2x16xf32>
    %420 = vector.shape_cast %419 : vector<2x16xf32> to vector<2x16x1xf32>
    %421 = vector.broadcast %417 : vector<2x1x64xf32> to vector<2x16x64xf32>
    %422 = vector.broadcast %420 : vector<2x16x1xf32> to vector<2x16x64xf32>
    %423 = arith.mulf %421, %422 : vector<2x16x64xf32>
    %424 = arith.addf %414, %423 : vector<2x16x64xf32>
    %425 = vector.extract_strided_slice %135 {offsets = [0, 14, 0], sizes = [2, 1, 16], strides = [1, 1, 1]} : vector<2x16x16xf32> to vector<2x1x16xf32>
    %426 = vector.shape_cast %425 : vector<2x1x16xf32> to vector<2x16xf32>
    %427 = vector.shape_cast %426 : vector<2x16xf32> to vector<2x16x1xf32>
    %428 = vector.broadcast %427 : vector<2x16x1xf32> to vector<2x16x64xf32>
    %429 = arith.mulf %424, %428 : vector<2x16x64xf32>
    %cst_104 = arith.constant dense<0.000000e+00> : vector<2x64xf32>
    %430 = vector.multi_reduction <add>, %429, %cst_104 [1] : vector<2x16x64xf32> to vector<2x64xf32>
    %431 = vector.extract_strided_slice %144 {offsets = [0, 15, 0, 0], sizes = [2, 1, 16, 64], strides = [1, 1, 1, 1]} : vector<2x16x16x64xf32> to vector<2x1x16x64xf32>
    %432 = vector.shape_cast %431 : vector<2x1x16x64xf32> to vector<2x16x64xf32>
    %433 = arith.mulf %432, %424 : vector<2x16x64xf32>
    %434 = vector.extract_strided_slice %145 {offsets = [0, 15, 0], sizes = [2, 1, 64], strides = [1, 1, 1]} : vector<2x16x64xf32> to vector<2x1x64xf32>
    %435 = vector.shape_cast %434 : vector<2x1x64xf32> to vector<2x64xf32>
    %436 = vector.shape_cast %435 : vector<2x64xf32> to vector<2x1x64xf32>
    %437 = vector.extract_strided_slice %133 {offsets = [0, 15, 0], sizes = [2, 1, 16], strides = [1, 1, 1]} : vector<2x16x16xf32> to vector<2x1x16xf32>
    %438 = vector.shape_cast %437 : vector<2x1x16xf32> to vector<2x16xf32>
    %439 = vector.shape_cast %438 : vector<2x16xf32> to vector<2x16x1xf32>
    %440 = vector.broadcast %436 : vector<2x1x64xf32> to vector<2x16x64xf32>
    %441 = vector.broadcast %439 : vector<2x16x1xf32> to vector<2x16x64xf32>
    %442 = arith.mulf %440, %441 : vector<2x16x64xf32>
    %443 = arith.addf %433, %442 : vector<2x16x64xf32>
    %444 = vector.extract_strided_slice %135 {offsets = [0, 15, 0], sizes = [2, 1, 16], strides = [1, 1, 1]} : vector<2x16x16xf32> to vector<2x1x16xf32>
    %445 = vector.shape_cast %444 : vector<2x1x16xf32> to vector<2x16xf32>
    %446 = vector.shape_cast %445 : vector<2x16xf32> to vector<2x16x1xf32>
    %447 = vector.broadcast %446 : vector<2x16x1xf32> to vector<2x16x64xf32>
    %448 = arith.mulf %443, %447 : vector<2x16x64xf32>
    %cst_105 = arith.constant dense<0.000000e+00> : vector<2x64xf32>
    %449 = vector.multi_reduction <add>, %448, %cst_105 [1] : vector<2x16x64xf32> to vector<2x64xf32>
    %450 = vector.shape_cast %164 : vector<2x64xf32> to vector<2x1x64xf32>
    %451 = vector.shape_cast %183 : vector<2x64xf32> to vector<2x1x64xf32>
    %452 = vector.shape_cast %202 : vector<2x64xf32> to vector<2x1x64xf32>
    %453 = vector.shape_cast %221 : vector<2x64xf32> to vector<2x1x64xf32>
    %454 = vector.shape_cast %240 : vector<2x64xf32> to vector<2x1x64xf32>
    %455 = vector.shape_cast %259 : vector<2x64xf32> to vector<2x1x64xf32>
    %456 = vector.shape_cast %278 : vector<2x64xf32> to vector<2x1x64xf32>
    %457 = vector.shape_cast %297 : vector<2x64xf32> to vector<2x1x64xf32>
    %458 = vector.shape_cast %316 : vector<2x64xf32> to vector<2x1x64xf32>
    %459 = vector.shape_cast %335 : vector<2x64xf32> to vector<2x1x64xf32>
    %460 = vector.shape_cast %354 : vector<2x64xf32> to vector<2x1x64xf32>
    %461 = vector.shape_cast %373 : vector<2x64xf32> to vector<2x1x64xf32>
    %462 = vector.shape_cast %392 : vector<2x64xf32> to vector<2x1x64xf32>
    %463 = vector.shape_cast %411 : vector<2x64xf32> to vector<2x1x64xf32>
    %464 = vector.shape_cast %430 : vector<2x64xf32> to vector<2x1x64xf32>
    %465 = vector.shape_cast %449 : vector<2x64xf32> to vector<2x1x64xf32>
    %466 = tpu.concatenate %450, %451, %452, %453, %454, %455, %456, %457, %458, %459, %460, %461, %462, %463, %464, %465 in 1 : vector<2x1x64xf32>, vector<2x1x64xf32>, vector<2x1x64xf32>, vector<2x1x64xf32>, vector<2x1x64xf32>, vector<2x1x64xf32>, vector<2x1x64xf32>, vector<2x1x64xf32>, vector<2x1x64xf32>, vector<2x1x64xf32>, vector<2x1x64xf32>, vector<2x1x64xf32>, vector<2x1x64xf32>, vector<2x1x64xf32>, vector<2x1x64xf32>, vector<2x1x64xf32> -> vector<2x16x64xf32>
    %467 = vector.broadcast %124 : vector<1x1x64xf32> to vector<2x16x64xf32>
    %468 = arith.mulf %131, %467 : vector<2x16x64xf32>
    %469 = arith.addf %466, %468 : vector<2x16x64xf32>
    %470 = arith.negf %138 : vector<2x16x64xf32>
    %471 = math.exp %470 : vector<2x16x64xf32>
    %cst_106 = arith.constant 1.000000e+00 : f32
    %472 = vector.broadcast %cst_106 : f32 to vector<2x16x64xf32>
    %473 = arith.addf %472, %471 : vector<2x16x64xf32>
    %474 = arith.divf %472, %473 : vector<2x16x64xf32>
    %475 = arith.mulf %138, %474 : vector<2x16x64xf32>
    %476 = arith.mulf %469, %475 : vector<2x16x64xf32>
    %477 = arith.truncf %476 : vector<2x16x64xf32> to vector<2x16x64xbf16>
    %c0_107 = arith.constant 0 : index
    %478 = arith.index_cast %127 : i32 to index
    %c0_108 = arith.constant 0 : index
    %479 = vector.load %arg22[%c0_107, %478, %c0_108] : memref<2x16x64xbf16, #tpu.memory_space<vmem>>, vector<2x16x64xbf16>
    tpu.vector_store %arg22[%c0_107, %478, %c0_108], %477 {strides = array<i32>} : memref<2x16x64xbf16, #tpu.memory_space<vmem>>, vector<2x16x64xbf16>,
    %c1_i32 = arith.constant 1 : i32
    %c0_109 = arith.constant 0 : index
    %c0_110 = arith.constant 0 : index
    %c0_111 = arith.constant 0 : index
    %480 = vector.load %arg22[%c0_109, %c0_110, %c0_111] : memref<2x16x64xbf16, #tpu.memory_space<vmem>>, vector<2x16x64xbf16>
    %481 = vector.shape_cast %480 : vector<2x16x64xbf16> to vector<32x64xbf16>
    %c0_112 = arith.constant 0 : index
    %c0_113 = arith.constant 0 : index
    %c0_114 = arith.constant 0 : index
    %482 = vector.load %arg13[%c0_112, %c0_113, %c0_114] : memref<1x64x32xbf16, #tpu.memory_space<vmem>>, vector<1x64x32xbf16>
    %483 = vector.shape_cast %482 : vector<1x64x32xbf16> to vector<64x32xbf16>
    %cst_115 = arith.constant dense<0.000000e+00> : vector<32x32xf32>
    %484 = tpu.matmul %481, %483, %cst_115 {dimension_numbers = #tpu.dot_dimension_numbers<[1], [0], [0], [1], [0, 0, 1, 1], [], []>} : vector<32x64xbf16>, vector<64x32xbf16>, vector<32x32xf32> -> vector<32x32xf32>
    %485 = vector.shape_cast %484 : vector<32x32xf32> to vector<2x16x32xf32>
    %c0_116 = arith.constant 0 : index
    %c0_117 = arith.constant 0 : index
    %c0_118 = arith.constant 0 : index
    %486 = vector.load %arg14[%c0_116, %c0_117, %c0_118] : memref<2x16x32xf32, #tpu.memory_space<vmem>>, vector<2x16x32xf32>
    tpu.vector_store %arg14[%c0_116, %c0_117, %c0_118], %485 {strides = array<i32>} : memref<2x16x32xf32, #tpu.memory_space<vmem>>, vector<2x16x32xf32>,
    return
  }
  func.func @transform_0(%arg0: i32, %arg1: i32) -> (i32, i32, i32) {
    %c0_i32 = arith.constant 0 : i32
    %c0_i32_0 = arith.constant 0 : i32
    %c0_i32_1 = arith.constant 0 : i32
    return %arg0, %c0_i32, %c0_i32_0 : i32, i32, i32
  }
  func.func @transform_1(%arg0: i32, %arg1: i32) -> (i32, i32, i32) {
    %c0_i32 = arith.constant 0 : i32
    %c0_i32_0 = arith.constant 0 : i32
    %c0_i32_1 = arith.constant 0 : i32
    return %arg1, %c0_i32, %c0_i32_0 : i32, i32, i32
  }
  func.func @transform_2(%arg0: i32, %arg1: i32) -> (i32, i32, i32) {
    %c0_i32 = arith.constant 0 : i32
    %c0_i32_0 = arith.constant 0 : i32
    %c0_i32_1 = arith.constant 0 : i32
    return %arg1, %c0_i32, %c0_i32_0 : i32, i32, i32
  }
  func.func @transform_3(%arg0: i32, %arg1: i32) -> (i32, i32, i32) {
    %c0_i32 = arith.constant 0 : i32
    %c0_i32_0 = arith.constant 0 : i32
    %c0_i32_1 = arith.constant 0 : i32
    return %arg1, %c0_i32, %c0_i32_0 : i32, i32, i32
  }
  func.func @transform_4(%arg0: i32, %arg1: i32) -> (i32, i32, i32) {
    %c0_i32 = arith.constant 0 : i32
    %c0_i32_0 = arith.constant 0 : i32
    %c0_i32_1 = arith.constant 0 : i32
    return %arg1, %c0_i32, %c0_i32_0 : i32, i32, i32
  }
  func.func @transform_5(%arg0: i32, %arg1: i32) -> (i32, i32, i32) {
    %c0_i32 = arith.constant 0 : i32
    %c0_i32_0 = arith.constant 0 : i32
    %c0_i32_1 = arith.constant 0 : i32
    return %arg1, %c0_i32, %c0_i32_0 : i32, i32, i32
  }
  func.func @transform_6(%arg0: i32, %arg1: i32) -> (i32, i32, i32) {
    %c0_i32 = arith.constant 0 : i32
    %c0_i32_0 = arith.constant 0 : i32
    %c0_i32_1 = arith.constant 0 : i32
    return %arg1, %c0_i32, %c0_i32_0 : i32, i32, i32
  }
  func.func @transform_7(%arg0: i32, %arg1: i32) -> (i32, i32, i32) {
    %c0_i32 = arith.constant 0 : i32
    %c0_i32_0 = arith.constant 0 : i32
    %c0_i32_1 = arith.constant 0 : i32
    return %arg1, %c0_i32, %c0_i32_0 : i32, i32, i32
  }
  func.func @transform_8(%arg0: i32, %arg1: i32) -> (i32, i32, i32) {
    %c0_i32 = arith.constant 0 : i32
    %c0_i32_0 = arith.constant 0 : i32
    %c0_i32_1 = arith.constant 0 : i32
    return %arg1, %c0_i32, %c0_i32_0 : i32, i32, i32
  }
  func.func @transform_9(%arg0: i32, %arg1: i32) -> (i32, i32, i32) {
    %c0_i32 = arith.constant 0 : i32
    %c0_i32_0 = arith.constant 0 : i32
    %c0_i32_1 = arith.constant 0 : i32
    return %arg1, %c0_i32, %c0_i32_0 : i32, i32, i32
  }
  func.func @transform_10(%arg0: i32, %arg1: i32) -> (i32, i32, i32) {
    %c0_i32 = arith.constant 0 : i32
    %c0_i32_0 = arith.constant 0 : i32
    %c0_i32_1 = arith.constant 0 : i32
    return %arg1, %c0_i32, %c0_i32_0 : i32, i32, i32
  }
  func.func @transform_11(%arg0: i32, %arg1: i32) -> (i32, i32, i32) {
    %c0_i32 = arith.constant 0 : i32
    %c0_i32_0 = arith.constant 0 : i32
    %c0_i32_1 = arith.constant 0 : i32
    return %arg1, %c0_i32, %c0_i32_0 : i32, i32, i32
  }
  func.func @transform_12(%arg0: i32, %arg1: i32) -> (i32, i32, i32) {
    %c0_i32 = arith.constant 0 : i32
    %c0_i32_0 = arith.constant 0 : i32
    %c0_i32_1 = arith.constant 0 : i32
    return %arg0, %c0_i32, %c0_i32_0 : i32, i32, i32
  }
}

</mosaic_0001>

<bundles_post_ra>
// kernel: tpu_custom_call.1
= control target key start
LH: loop header
LB: loop body
LE: loop exit
PB: predicated region body
PF: predicated region fallthrough
CT: control target
= control target key end

     0   :  { %s5292_s0 = inlined_call_operand.vmem [shape: f32[2,16,32], index: 0, kind: input, shape index: {}]   ;;  %s5293_s1 = inlined_call_operand.vmem [shape: f32[2,1,32], index: 1, kind: input, shape index: {}]   ;;  %s5294_s2 = inlined_call_operand.vmem [shape: f32[2,1,32], index: 2, kind: input, shape index: {}]   ;;  %s5295_s3 = inlined_call_operand.vmem [shape: bf16[2,32,128], index: 3, kind: input, shape index: {}]   ;;  %s5296_s4 = inlined_call_operand.vmem [shape: f32[2,4,64], index: 4, kind: input, shape index: {}]   ;;  %s5297_s5 = inlined_call_operand.vmem [shape: f32[2,1,64], index: 5, kind: input, shape index: {}]   ;;  %s5298_s6 = inlined_call_operand.vmem [shape: bf16[2,64,34], index: 6, kind: input, shape index: {}]   ;;  %s5299_s7 = inlined_call_operand.vmem [shape: bf16[2,2,64], index: 7, kind: input, shape index: {}]   ;;  %s5300_s8 = inlined_call_operand.vmem [shape: f32[2,1,64], index: 8, kind: input, shape index: {}]   ;;  %s5301_s9 = inlined_call_operand.vmem [shape: f32[2,16,64], index: 9, kind: input, shape index: {}]   ;;  %s5302_s10 = inlined_call_operand.vmem [shape: f32[2,1,64], index: 10, kind: input, shape index: {}]   ;;  %s5303_s11 = inlined_call_operand.vmem [shape: bf16[2,64,32], index: 11, kind: input, shape index: {}]   ;;  %s5304_s12 = inlined_call_operand.hbm [shape: f32[2,16,32], index: 12, kind: output, shape index: {}]  }
   0x1   :  { %5337 = sst [smem:[#allocation43_spill]] %s5295_s3 }
   0x2   :  { %5338 = sst [smem:[#allocation44_spill]] %s5296_s4 }
   0x3   :  { %5339 = sst [smem:[#allocation45_spill]] %s5298_s6 }
   0x4   :  { %5340 = sst [smem:[#allocation46_spill]] %s5304_s12 }
   0x5   :  { %17 = vsyncpa [#allocation11], 0  ;;  %s4031_s21 = smov 0   ;;  %s4033_s22 = smov 0  }
   0x6   :  { %s4035_s23 = smov 0  }
   0x7 LB: > { %5341 = sst [smem:[#allocation13_spill]] %s3952_s22  ;;  %s32_s25 = sadd.s32 1, %s3952_s22  ;;  %s3956_s23 = sphi %s4035_s23, %s23_s23   ;;  %s3952_s22 = sphi %s4033_s22, %s5413_s22   ;;  %s3948_s21 = sphi %s4031_s21, %s5412_s21  }
   0x8   : > { %5342 = sst [smem:[#allocation14_spill]] %s3956_s23  ;;  %p33_p0 = scmp.ge.s32.totalorder %s32_s25, 2 }
   0x9   : > { %p3523_p1 = scmp.ge.s32.totalorder %s3956_s23, 1  ;;  %p474_p2 = scmp.lt.s32.totalorder %s3956_s23, 3 }
   0xa   : > { %s5415_s25 = smov (%p33_p0, %s32_s25), 0 }
   0xb   : > { %5343 = sst [smem:[#allocation15_spill]] %s5415_s25  ;;  %p475_p3 = pnand %p3523_p1, %p474_p2 }
   0xd   : > { %478 = sbr.rel (%p475_p3) target bundleno = 1554 (0x612), region = 68 }
  0x12   : > { %p561_p4 = scmp.lt.s32.totalorder %s3948_s21, 1  ;;  %s5344_s3 = sld [smem:[#allocation43_spill]] }
  0x13   : > { %s5345_s4 = sld [smem:[#allocation44_spill]]  ;;  %p3533_p5 = scmp.ne.s32.totalorder %s3948_s21, 0 }
  0x14   : > { %s4054_s26 = scalar_select %p561_p4, %s3948_s21, 1 }
  0x15   : > { %s5346_s6 = sld [smem:[#allocation45_spill]] }
  0x16   : > { %s3580_s15 = sshll.u32 %s4054_s26, 4  ;;  %s3526_s16 = sshll.u32 %s4054_s26, 2 }
  0x17   : > { %s3581_s22 = sshll.u32 %s4054_s26, 5  ;;  %s586_s17 = scalar_lea.vmem %s5299_s7, %s4054_s26 }
  0x18   : > { %s4069_s19 = scalar_lea.vmem %s5344_s3, %s3580_s15  ;;  %s589_s20 = scalar_lea.vmem %s5300_s8, %s4054_s26 }
  0x19   : > { %s4074_s28 = scalar_lea.vmem %s5345_s4, %s3526_s16  ;;  %s4097_s4 = scalar_lea.vmem %s5301_s9, %s3580_s15 }
  0x1a   : > { %s4103_s29 = scalar_lea.vmem %s5302_s10, %s4054_s26  ;;  %608 = sbr.rel (%p3533_p5) target bundleno = 34 (0x22), region = 72 }
  0x1b   : > { %s4084_s13 = scalar_lea.vmem %s5346_s6, %s3581_s22  ;;  %s4108_s6 = scalar_lea.vmem %s5303_s11, %s3581_s22 }
  0x1f   : > { %v609_v0 = vld [vmem:[%s5292_s0] sm:$0xff]  ;;  %vm613_vm0 = vcmask 261120   ;;  %v610_v1 = vld [vmem:[%s5292_s0 + $0x8] sm:$0xff]  ;;  %v611_v2 = vld [vmem:[%s5292_s0 + $0x10] sm:$0xff] }
  0x20   : > { %614 = vst.msk [vmem:[#allocation2] sm:$0xff] %vm613_vm0, %v609_v0  ;;  %615 = vst.msk [vmem:[#allocation2 + $0x8] sm:$0xff] %vm613_vm0, %v610_v1  ;;  %v612_v3 = vld [vmem:[%s5292_s0 + $0x18] sm:$0xff] }
  0x21   : > { %616 = vst.msk [vmem:[#allocation2 + $0x10] sm:$0xff] %vm613_vm0, %v611_v2  ;;  %617 = vst.msk [vmem:[#allocation2 + $0x18] sm:$0xff] %vm613_vm0, %v612_v3 }
  0x22 PF: > { %p3534_p6 = scmp.le.s32.totalorder %s3948_s21, 0 }
  0x24   : > { %621 = sbr.rel (%p3534_p6) target bundleno = 47 (0x2f), region = 76 }
  0x29   : > { %v622_v4 = vld [vmem:[#allocation2] sm:$0xff]  ;;  %v626_v5 = vld [vmem:[#allocation10] sm:$0xff]  ;;  %vm634_vm1 = vcmask 261120   ;;  %v623_v6 = vld [vmem:[#allocation2 + $0x8] sm:$0xff] }
  0x2a   : > { %v630_v7 = vadd.f32 %v626_v5, %v622_v4  ;;  %v627_v8 = vld [vmem:[#allocation10 + $0x8] sm:$0xff]  ;;  %v624_v9 = vld [vmem:[#allocation2 + $0x10] sm:$0xff]  ;;  %v628_v10 = vld [vmem:[#allocation10 + $0x10] sm:$0xff] }
  0x2b   : > { %v631_v11 = vadd.f32 %v627_v8, %v623_v6  ;;  %v632_v12 = vadd.f32 %v628_v10, %v624_v9  ;;  %v625_v13 = vld [vmem:[#allocation2 + $0x18] sm:$0xff]  ;;  %v629_v14 = vld [vmem:[#allocation10 + $0x18] sm:$0xff] }
  0x2c   : > { %635 = vst.msk [vmem:[#allocation2] sm:$0xff] %vm634_vm1, %v630_v7  ;;  %v633_v15 = vadd.f32 %v629_v14, %v625_v13 }
  0x2d   : > { %636 = vst.msk [vmem:[#allocation2 + $0x8] sm:$0xff] %vm634_vm1, %v631_v11  ;;  %637 = vst.msk [vmem:[#allocation2 + $0x10] sm:$0xff] %vm634_vm1, %v632_v12 }
  0x2e   : > { %638 = vst.msk [vmem:[#allocation2 + $0x18] sm:$0xff] %vm634_vm1, %v633_v15 }
  0x2f PF: > { %vm643_vm2 = vcmask 261120   ;;  %v3697_v44 = vld [vmem:[%s4069_s19 + $0x8] sm:$0xff]   ;;  %v3698_v45 = vld [vmem:[%s4069_s19] sm:$0xff]   ;;  %s5347_s24 = scalar_lea.vmem %s5293_s1, %s4054_s26  ;;  %s5348_s30 = scalar_lea.vmem %s5294_s2, %s4054_s26  ;;  %vm821_vm3 = vcmask 518144   ;;  %v3958_v14 = vmov 0.0   ;;  %v3699_v15 = vld [vmem:[%s4084_s13 + $0x18] sm:$0xff]  }
  0x30   : > { %3620 = vmatprep.subr.bf16.mxu1 %v3697_v44  ;;  %v3535_v60 = vld [vmem:[%s5347_s24] ss:$0 sm:$0xff]  ;;  %822 = vst.msk [vmem:[#allocation3] sm:$0x7] %vm821_vm3, %v3958_v14  ;;  %823 = vst.msk [vmem:[#allocation3 + $0x18] sm:$0x7] %vm821_vm3, %v3958_v14  ;;  %s5350_s23 = scalar_lea.vmem %s5297_s5, %s4054_s26 }
  0x31   : > { %3621 = vmatpush3.bf16.msra.mxu1 %v3697_v44  ;;  %v3536_v1 = vld [vmem:[%s5348_s30] ss:$0 sm:$0xff]  ;;  %vm824_vm4 = vcmask 523264   ;;  %vm816_vm5 = vcmask 519168   ;;  %vm1076_vm6 = vcmask 1040384   ;;  %s3960_s18 = smov 110  }
  0x32   : > { %3622 = vmatprep.subr.bf16.mxu1 %v3698_v45  ;;  %s3961_s16 = smov 126   ;;  %vm1069_vm7 = vcmask 15360   ;;  %vm1038_vm8 = vcmask 130048   ;;  %vm3136_vm9 = vcmask 1041408   ;;  %vm3139_vm10 = vcmask 1042432  }
  0x33   : > { %v639_v16 = vld [vmem:[#allocation2] sm:$0xff]  ;;  %vm3142_vm11 = vcmask 1043456   ;;  %vm3145_vm12 = vcmask 1044480   ;;  %vm3148_vm13 = vcmask 1045504   ;;  %vm3151_vm14 = vcmask 1046528  }
  0x34   : > { %v641_v17 = vld [vmem:[#allocation2 + $0x10] sm:$0xff]  ;;  %v640_v18 = vld [vmem:[#allocation2 + $0x8] sm:$0xff]  ;;  %v644_v19 = vsel %vm643_vm2, %v639_v16, 0.0 }
  0x35   : > { %v650_v20 = vsel %vm643_vm2, %v641_v17, 0.0  ;;  %v642_v21 = vld [vmem:[#allocation2 + $0x18] sm:$0xff]  ;;  %645 = vadd.xlane.f32.xlu0 %v644_v19  ;;  %v647_v22 = vsel %vm643_vm2, %v640_v18, 0.0  ;;  %3623 = vmatpush3.bf16.msra.mxu1 %v3698_v45  ;;  %v841_v19 = vlaneseq }
  0x36   : > { %651 = vadd.xlane.f32.xlu1 %v650_v20  ;;  %v653_v23 = vsel %vm643_vm2, %v642_v21, 0.0  ;;  %3628 = vmatprep.subr.bf16.mxu1 %v3699_v15 }
  0x37   : > { %v4150_v20 = vshrl.u32 %v841_v19, 7 }
  0x39   : > { %648 = vadd.xlane.f32.xlu0 %v647_v22 }
  0x3a   : > { %654 = vadd.xlane.f32.xlu1 %v653_v23  ;;  %v4154_v23 = vsub.s32 0, %v4150_v20 }
  0xbe   : > { %v646_v24 = vpop.xlane.xlu0 %645 }
  0xbf   : > { %v652_v25 = vpop.xlane.xlu1 %651  ;;  %v657_v26 = vmul.f32 0.03125, %v646_v24 }
  0xc0   : > { %v659_v27 = vmul.f32 0.03125, %v652_v25  ;;  %v829_v25 = vld [vmem:[%s4074_s28] sm:$0xf] }
  0xc1   : > { %v661_v28 = vsub.f32 %v639_v16, %v657_v26  ;;  %v3700_v16 = vld [vmem:[%s4084_s13 + $0x10] sm:$0xff]   ;;  %v4159_v26 = vsub.s32 1, %v4150_v20 }
  0xc2   : > { %v663_v29 = vsub.f32 %v641_v17, %v659_v27  ;;  %v649_v30 = vpop.xlane.xlu0 %648  ;;  %v3701_v17 = vld [vmem:[%s4084_s13 + $0x8] sm:$0xff]  }
  0xc3   : > { %v655_v31 = vpop.xlane.xlu1 %654  ;;  %v658_v32 = vmul.f32 0.03125, %v649_v30  ;;  %v665_v34 = vmul.f32 %v661_v28, %v661_v28  ;;  %5349 = vst [vmem:[#allocation16_spill] sm:$0xff] %v4159_v26  ;;  %v844_v30 = vrot.slane %v829_v25, %v4154_v23 }
  0xc4   : > { %v660_v33 = vmul.f32 0.03125, %v655_v31  ;;  %v667_v35 = vmul.f32 %v663_v29, %v663_v29 }
  0xc5   : > { %v662_v36 = vsub.f32 %v640_v18, %v658_v32  ;;  %v669_v38 = vsel %vm643_vm2, %v665_v34, 0.0  ;;  %v3702_v18 = vld [vmem:[%s4084_s13] sm:$0xff]   ;;  %s3959_s13 = smov 64   ;;  %v4164_v32 = vsub.s32 2, %v4150_v20 }
  0xc6   : > { %v664_v37 = vsub.f32 %v642_v21, %v660_v33  ;;  %670 = vadd.xlane.f32.xlu0 %v669_v38  ;;  %v675_v39 = vsel %vm643_vm2, %v667_v35, 0.0  ;;  %v860_v33 = vrot.slane %v829_v25, %v4159_v26  ;;  %v3545_v34 = vld [vmem:[%s5350_s23] ss:$0 sm:$0xff]  ;;  %v4174_v35 = vsub.s32 3, %v4150_v20 }
  0xc7   : > { %v666_v40 = vmul.f32 %v662_v36, %v662_v36 }
  0xc8   : > { %v668_v41 = vmul.f32 %v664_v37, %v664_v37 }
  0xc9   : > { %v672_v42 = vsel %vm643_vm2, %v666_v40, 0.0 }
  0xca   : > { %676 = vadd.xlane.f32.xlu0 %v675_v39  ;;  %673 = vadd.xlane.f32.xlu1 %v672_v42  ;;  %v678_v43 = vsel %vm643_vm2, %v668_v41, 0.0  ;;  %v876_v42 = vrot.slane %v829_v25, %v4164_v32 }
  0xce   : > { %679 = vadd.xlane.f32.xlu1 %v678_v43 }
 0x14f   : > { %v671_v46 = vpop.xlane.xlu0 %670 }
 0x150   : > { %v681_v47 = vmul.f32 0.03125, %v671_v46 }
 0x152   : > { %v685_v48 = vadd.f32 1e-05, %v681_v47 }
 0x153   : > { %v674_v49 = vpop.xlane.xlu1 %673  ;;  %v677_v50 = vpop.xlane.xlu0 %676 }
 0x154   : > { %3711 = vrsqrt.f32 %v685_v48  ;;  %v682_v51 = vmul.f32 0.03125, %v674_v49  ;;  %v683_v52 = vmul.f32 0.03125, %v677_v50  ;;  %v892_v48 = vrot.slane %v829_v25, %v4174_v35 }
 0x156   : > { %v686_v53 = vadd.f32 1e-05, %v682_v51  ;;  %v687_v54 = vadd.f32 1e-05, %v683_v52 }
 0x157   : > { %v680_v55 = vpop.xlane.xlu1 %679 }
 0x158   : > { %3713 = vrsqrt.f32 %v686_v53  ;;  %v684_v56 = vmul.f32 0.03125, %v680_v55 }
 0x159   : > { %3715 = vrsqrt.f32 %v687_v54 }
 0x15a   : > { %v688_v57 = vadd.f32 1e-05, %v684_v56 }
 0x15c   : > { %3717 = vrsqrt.f32 %v688_v57 }
 0x161   : > { %v3712_v58 = vpop.eup %3711 }
 0x162   : > { %v693_v59 = vmul.f32 %v3712_v58, %v661_v28 }
 0x164   : > { %v704_v0 = vmul.f32 %v3535_v60, %v693_v59 }
 0x165   : > { %v3714_v61 = vpop.eup %3713 }
 0x166   : > { %v3716_v62 = vpop.eup %3715  ;;  %v694_v63 = vmul.f32 %v3714_v61, %v662_v36  ;;  %v715_v5 = vadd.f32 %v3536_v1, %v704_v0 }
 0x167   : > { %v695_v2 = vmul.f32 %v3716_v62, %v663_v29 }
 0x168   : > { %v705_v3 = vmul.f32 %v3535_v60, %v694_v63 }
 0x169   : > { %v3718_v4 = vpop.eup %3717  ;;  %v706_v8 = vmul.f32 %v3535_v60, %v695_v2 }
 0x16a   : > { %v716_v6 = vadd.f32 %v3536_v1, %v705_v3  ;;  %v696_v7 = vmul.f32 %v3718_v4, %v664_v37 }
 0x16b   : > { %v717_v11 = vadd.f32 %v3536_v1, %v706_v8 }
 0x16c   : > { %v719_v9 = vpack.c.bf16 %v716_v6, %v715_v5  ;;  %v707_v10 = vmul.f32 %v3535_v60, %v696_v7 }
 0x16e   : > { %3624 = vmatprep.mubr.msk.bf16.mxu1 %vm643_vm2, %v719_v9  ;;  %v718_v12 = vadd.f32 %v3536_v1, %v707_v10 }
 0x170   : > { %v720_v13 = vpack.c.bf16 %v718_v12, %v717_v11 }
 0x172   : > { %3625 = vmatmul.mubr.msk.bf16.vlgmr.msra.gmra.mxu1 %vm643_vm2, %v720_v13 }
 0x173   : > { %3629 = vmatpush3.bf16.msra.mxu1 %v3699_v15 }
 0x174   : > { %3630 = vmatprep.subr.bf16.mxu1 %v3700_v16 }
 0x177   : > { %3631 = vmatpush3.bf16.msra.mxu1 %v3700_v16 }
 0x178   : > { %3632 = vmatprep.subr.bf16.mxu1 %v3701_v17 }
 0x17b   : > { %3633 = vmatpush3.bf16.msra.mxu1 %v3701_v17 }
 0x17c   : > { %3634 = vmatprep.subr.bf16.mxu1 %v3702_v18 }
 0x17f   : > { %3635 = vmatpush3.bf16.msra.mxu1 %v3702_v18 }
 0x232   : > { %v3626_v21 = vpop.f32.mrf.mxu1 }
 0x233   : > { %v3586_v22 = vpack.c.bf16 %v3626_v21, %v3626_v21  ;;  %827 = vst.msk [vmem:[#allocation3 + $0x1b] sm:$0xff] %vm824_vm4, %v3626_v21 }
 0x234   : > { %v777_v24 = vpop.f32.mrf.mxu1 }
 0x235   : > { %825 = vst.msk [vmem:[#allocation3 + $0x3] sm:$0xff] %vm824_vm4, %v777_v24  ;;  %808 = vrot.lane.b32.xlu0 %v3586_v22, %s3959_s13  ;;  %v3584_v28 = vpack.c.bf16 %v777_v24, %v777_v24 }
 0x236   : > { %v3627_v27 = vpop.f32.mrf.mxu1 }
 0x237   : > { %v3587_v29 = vpack.c.bf16 %v3627_v27, %v3627_v27  ;;  %828 = vst.msk [vmem:[#allocation3 + $0x23] sm:$0xff] %vm824_vm4, %v3627_v27 }
 0x238   : > { %v780_v31 = vpop.f32.mrf.mxu1 }
 0x239   : > { %826 = vst.msk [vmem:[#allocation3 + $0xb] sm:$0xff] %vm824_vm4, %v780_v31  ;;  %804 = vrot.lane.b32.xlu0 %v3584_v28, %s3959_s13  ;;  %810 = vrot.lane.b32.xlu1 %v3587_v29, %s3959_s13  ;;  %v3585_v38 = vpack.c.bf16 %v780_v31, %v780_v31 }
 0x23a   : > { %v839_v36 = vld [vmem:[#allocation3 + $0x18] sm:$0xff] }
 0x23b   : > { %v855_v37 = vld [vmem:[#allocation3 + $0x19] sm:$0xff]  ;;  %v847_v39 = vmul.f32 %v844_v30, %v839_v36 }
 0x23c   : > { %v837_v40 = vld [vmem:[#allocation3] sm:$0xff]  ;;  %v863_v45 = vmul.f32 %v860_v33, %v855_v37 }
 0x23d   : > { %v853_v41 = vld [vmem:[#allocation3 + $0x1] sm:$0xff]  ;;  %806 = vrot.lane.b32.xlu1 %v3585_v38, %s3959_s13  ;;  %v845_v43 = vmul.f32 %v844_v30, %v837_v40  ;;  %v851_v44 = vadd.f32 %v3545_v34, %v847_v39 }
 0x23e   : > { %v871_v46 = vld [vmem:[#allocation3 + $0x1a] sm:$0xff]  ;;  %v869_v47 = vld [vmem:[#allocation3 + $0x2] sm:$0xff]  ;;  %v861_v51 = vmul.f32 %v860_v33, %v853_v41 }
 0x23f   : > { %v840_v49 = vld [vmem:[#allocation3 + $0x20] sm:$0xff]  ;;  %v849_v50 = vadd.f32 %v3545_v34, %v845_v43  ;;  %v867_v54 = vadd.f32 %v863_v45, %v851_v44  ;;  %v879_v59 = vmul.f32 %v876_v42, %v871_v46  ;;  %v877_v62 = vmul.f32 %v876_v42, %v869_v47 }
 0x240   : > { %v848_v52 = vmul.f32 %v844_v30, %v840_v49  ;;  %v856_v53 = vld [vmem:[#allocation3 + $0x21] sm:$0xff]  ;;  %v854_v57 = vld [vmem:[#allocation3 + $0x9] sm:$0xff] }
 0x241   : > { %v887_v55 = vld [vmem:[#allocation3 + $0x1b] sm:$0xff]  ;;  %v838_v56 = vld [vmem:[#allocation3 + $0x8] sm:$0xff]  ;;  %v865_v61 = vadd.f32 %v861_v51, %v849_v50  ;;  %v864_v2 = vmul.f32 %v860_v33, %v856_v53  ;;  %v883_v3 = vadd.f32 %v879_v59, %v867_v54  ;;  %v862_v6 = vmul.f32 %v860_v33, %v854_v57 }
 0x242   : > { %v885_v58 = vld [vmem:[#allocation3 + $0x3] sm:$0xff]  ;;  %v846_v60 = vmul.f32 %v844_v30, %v838_v56  ;;  %v852_v1 = vadd.f32 %v3545_v34, %v848_v52  ;;  %v895_v4 = vmul.f32 %v892_v48, %v887_v55  ;;  %v886_v10 = vld [vmem:[#allocation3 + $0xb] sm:$0xff]  ;;  %v1061_v54 = vld [vmem:[%s586_s17] sm:$0x1] }
 0x243   : > { %v872_v63 = vld [vmem:[#allocation3 + $0x22] sm:$0xff]  ;;  %v870_v0 = vld [vmem:[#allocation3 + $0xa] sm:$0xff]  ;;  %v881_v7 = vadd.f32 %v877_v62, %v865_v61  ;;  %v893_v8 = vmul.f32 %v892_v48, %v885_v58  ;;  %v894_v22 = vmul.f32 %v892_v48, %v886_v10  ;;  %3658 = vmatprep.subr.msk.bf16.mxu0 %vm1076_vm6, %v1061_v54  ;;  %v1078_v55 = vsel %vm1076_vm6, %v1061_v54, 0 }
 0x244   : > { %v850_v5 = vadd.f32 %v3545_v34, %v846_v60  ;;  %v888_v9 = vld [vmem:[#allocation3 + $0x23] sm:$0xff]  ;;  %v868_v11 = vadd.f32 %v864_v2, %v852_v1  ;;  %v880_v12 = vmul.f32 %v876_v42, %v872_v63  ;;  %v899_v13 = vadd.f32 %v895_v4, %v883_v3  ;;  %3641 = vmatpush3.bf16.msra.mxu0 %v1078_v55 }
 0x245   : > { %v878_v15 = vmul.f32 %v876_v42, %v870_v0  ;;  %v897_v16 = vadd.f32 %v893_v8, %v881_v7  ;;  %v896_v18 = vmul.f32 %v892_v48, %v888_v9 }
 0x246   : > { %v866_v14 = vadd.f32 %v862_v6, %v850_v5  ;;  %v884_v17 = vadd.f32 %v880_v12, %v868_v11  ;;  %v3548_v19 = vmul.f32 -1.442695, %v899_v13  ;;  %v4208_v11 = vsub.s32 4, %v4150_v20 }
 0x247   : > { %v3546_v24 = vmul.f32 -1.442695, %v897_v16 }
 0x248   : > { %v882_v21 = vadd.f32 %v878_v15, %v866_v14  ;;  %v900_v25 = vadd.f32 %v896_v18, %v884_v17  ;;  %3719 = vpow2.f32 %v3548_v19  ;;  %5351 = vst [vmem:[#allocation17_spill] sm:$0xff] %v4208_v11  ;;  %v4216_v15 = vsub.s32 6, %v4150_v20 }
 0x249   : > { %3721 = vpow2.f32 %v3546_v24  ;;  %v4220_v17 = vsub.s32 7, %v4150_v20 }
 0x24a   : > { %v898_v27 = vadd.f32 %v894_v22, %v882_v21  ;;  %v3549_v28 = vmul.f32 -1.442695, %v900_v25  ;;  %5353 = vst [vmem:[#allocation19_spill] sm:$0xff] %v4216_v15 }
 0x24b   : > { %5354 = vst [vmem:[#allocation20_spill] sm:$0xff] %v4220_v17 }
 0x24c   : > { %v3547_v29 = vmul.f32 -1.442695, %v898_v27  ;;  %3723 = vpow2.f32 %v3549_v28 }
 0x24e   : > { %3725 = vpow2.f32 %v3547_v29 }
 0x255   : > { %v3720_v30 = vpop.eup %3719 }
 0x256   : > { %v3722_v31 = vpop.eup %3721  ;;  %v915_v33 = vadd.f32 1.0, %v3720_v30 }
 0x257   : > { %v913_v34 = vadd.f32 1.0, %v3722_v31 }
 0x258   : > { %3727 = vrcp.f32 %v915_v33 }
 0x259   : > { %v3724_v36 = vpop.eup %3723  ;;  %3729 = vrcp.f32 %v913_v34 }
 0x25a   : > { %v916_v38 = vadd.f32 1.0, %v3724_v36 }
 0x25b   : > { %v3726_v37 = vpop.eup %3725 }
 0x25c   : > { %v914_v39 = vadd.f32 1.0, %v3726_v37  ;;  %3731 = vrcp.f32 %v916_v38  ;;  %v3556_v38 = vld [vmem:[%s589_s20] ss:$0 sm:$0xff] }
 0x25e   : > { %3733 = vrcp.f32 %v914_v39 }
 0x265   : > { %v3728_v40 = vpop.eup %3727 }
 0x266   : > { %v3730_v41 = vpop.eup %3729  ;;  %v927_v42 = vmul.f32 %v3728_v40, %v899_v13  ;;  %v4212_v13 = vsub.s32 5, %v4150_v20 }
 0x267   : > { %v925_v43 = vmul.f32 %v3730_v41, %v897_v16 }
 0x268   : > { %931 = vst.msk [vmem:[#allocation4 + $0x10] sm:$0xff] %vm824_vm4, %v927_v42  ;;  %5352 = vst [vmem:[#allocation18_spill] sm:$0xff] %v4212_v13 }
 0x269   : > { %v3732_v44 = vpop.eup %3731  ;;  %929 = vst.msk [vmem:[#allocation4] sm:$0xff] %vm824_vm4, %v925_v43 }
 0x26a   : > { %v928_v46 = vmul.f32 %v3732_v44, %v900_v25 }
 0x26b   : > { %v3734_v45 = vpop.eup %3733 }
 0x26c   : > { %v926_v47 = vmul.f32 %v3734_v45, %v898_v27  ;;  %932 = vst.msk [vmem:[#allocation4 + $0x18] sm:$0xff] %vm824_vm4, %v928_v46  ;;  %v934_v49 = vpack.c.bf16 %v928_v46, %v927_v42 }
 0x26e   : > { %930 = vst.msk [vmem:[#allocation4 + $0x8] sm:$0xff] %vm824_vm4, %v926_v47  ;;  %v933_v48 = vpack.c.bf16 %v926_v47, %v925_v43 }
 0x270   : > { %3636 = vmatprep.mubr.msk.bf16.mxu1 %vm824_vm4, %v933_v48 }
 0x271   : > { %3637 = vmatmul.mubr.msk.bf16.vlgmr.msra.gmra.mxu1 %vm824_vm4, %v934_v49 }
 0x2a7   : > { %v809_v50 = vpop.permute.xlu0 %808 }
 0x2a8   : > { %819 = vst.msk [vmem:[#allocation5 + $0x8] sm:$0xf] %vm816_vm5, %v809_v50 }
 0x2ab   : > { %v805_v51 = vpop.permute.xlu0 %804  ;;  %v811_v52 = vpop.permute.xlu1 %810 }
 0x2ac   : > { %817 = vst.msk [vmem:[#allocation5] sm:$0xf] %vm816_vm5, %v805_v51  ;;  %820 = vst.msk [vmem:[#allocation5 + $0xc] sm:$0xf] %vm816_vm5, %v811_v52 }
 0x2af   : > { %v807_v53 = vpop.permute.xlu1 %806 }
 0x2b0   : > { %818 = vst.msk [vmem:[#allocation5 + $0x4] sm:$0xf] %vm816_vm5, %v807_v53 }
 0x2b3   : > { %v4234_v37 = vld [vmem:[#allocation5 + $0x8] sm:$0xff]  }
 0x2b4   : > { %v3598_v41 = vunpack.c.l.bf16 %v4234_v37 }
 0x2b6   : > { %v3562_v48 = vmul.f32 -1.442695, %v3598_v41 }
 0x2b8   : > { %3735 = vpow2.f32 %v3562_v48 }
 0x331   : > { %v3638_v56 = vpop.f32.mrf.mxu1 }
 0x332   : > { %1047 = vrot.lane.b32.xlu0 %v3638_v56, %s3960_s18  ;;  %1030 = vrot.lane.b32.xlu1 %v3638_v56, %s3961_s16 }
 0x333   : > { %v1007_v57 = vpop.f32.mrf.mxu1 }
 0x335   : > { %v3639_v58 = vpop.f32.mrf.mxu1 }
 0x336   : > { %1026 = vrot.lane.b32.xlu0 %v1007_v57, %s3961_s16  ;;  %1032 = vrot.lane.b32.xlu1 %v3639_v58, %s3961_s16  ;;  %v1060_v61 = vpack.c.bf16 %v3639_v58, %v3638_v56 }
 0x337   : > { %v1010_v59 = vpop.f32.mrf.mxu1 }
 0x338   : > { %v1059_v60 = vpack.c.bf16 %v1010_v59, %v1007_v57 }
 0x33a   : > { %1043 = vrot.lane.b32.xlu0 %v1007_v57, %s3960_s18  ;;  %3642 = vmatprep.mubr.msk.bf16.mxu0 %vm1069_vm7, %v1059_v60 }
 0x33b   : > { %1049 = vrot.lane.b32.xlu1 %v3639_v58, %s3960_s18  ;;  %3643 = vmatmul.mubr.msk.bf16.vlgmr.msra.gmra.mxu0 %vm1069_vm7, %v1060_v61 }
 0x33f   : > { %1028 = vrot.lane.b32.xlu1 %v1010_v59, %s3961_s16 }
 0x343   : > { %1045 = vrot.lane.b32.xlu1 %v1010_v59, %s3960_s18 }
 0x3a4   : > { %v1048_v62 = vpop.permute.xlu0 %1047  ;;  %v1031_v63 = vpop.permute.xlu1 %1030 }
 0x3a5   : > { %1057 = vst.msk [vmem:[#allocation8 + $0x10] sm:$0xff] %vm1038_vm8, %v1048_v62  ;;  %1041 = vst.msk [vmem:[#allocation7 + $0x10] sm:$0xff] %vm1038_vm8, %v1031_v63 }
 0x3a8   : > { %v1027_v0 = vpop.permute.xlu0 %1026  ;;  %v1033_v1 = vpop.permute.xlu1 %1032 }
 0x3a9   : > { %1039 = vst.msk [vmem:[#allocation7] sm:$0xff] %vm1038_vm8, %v1027_v0  ;;  %1042 = vst.msk [vmem:[#allocation7 + $0x18] sm:$0xff] %vm1038_vm8, %v1033_v1  ;;  %v4260_v0 = vld [vmem:[#allocation5] sm:$0xff]  }
 0x3aa   : > { %5355 = vst [vmem:[#allocation21_spill] sm:$0xff] %v4260_v0 }
 0x3ac   : > { %v1044_v2 = vpop.permute.xlu0 %1043  ;;  %v1188_v3 = vld [vmem:[#allocation7 + $0x10] sm:$0xff] }
 0x3ad   : > { %1055 = vst.msk [vmem:[#allocation8] sm:$0xff] %vm1038_vm8, %v1044_v2  ;;  %v1050_v4 = vpop.permute.xlu1 %1049  ;;  %v1776_v5 = vrot.slane %v1188_v3, %v4154_v23  ;;  %v1862_v7 = vrot.slane %v1188_v3, %v4159_v26  ;;  %v1948_v9 = vrot.slane %v1188_v3, %v4164_v32  ;;  %v2034_v10 = vrot.slane %v1188_v3, %v4174_v35  ;;  %v1192_v19 = vld [vmem:[#allocation8 + $0x10] sm:$0xff] }
 0x3ae   : > { %1058 = vst.msk [vmem:[#allocation8 + $0x18] sm:$0xff] %vm1038_vm8, %v1050_v4  ;;  %v2120_v12 = vrot.slane %v1188_v3, %v4208_v11  ;;  %v2206_v14 = vrot.slane %v1188_v3, %v4212_v13  ;;  %v2292_v16 = vrot.slane %v1188_v3, %v4216_v15  ;;  %v2378_v18 = vrot.slane %v1188_v3, %v4220_v17 }
 0x3af   : > { %1782 = vbcast.lane.b32.xlu1 %v1776_v5, 264  ;;  %1778 = vbcast.lane.b32.xlu0 %v1776_v5, 256  ;;  %v1814_v21 = vrot.slane %v1192_v19, %v4154_v23  ;;  %v1900_v22 = vrot.slane %v1192_v19, %v4159_v26  ;;  %v1986_v24 = vrot.slane %v1192_v19, %v4164_v32  ;;  %v5307_v4 = vunpack.c.l.bf16 %v4260_v0 }
 0x3b0   : > { %v2072_v25 = vrot.slane %v1192_v19, %v4174_v35  ;;  %v2158_v27 = vrot.slane %v1192_v19, %v4208_v11  ;;  %v2244_v28 = vrot.slane %v1192_v19, %v4212_v13  ;;  %v2330_v29 = vrot.slane %v1192_v19, %v4216_v15  ;;  %v1186_v31 = vld [vmem:[#allocation7] sm:$0xff] }
 0x3b1   : > { %v1029_v6 = vpop.permute.xlu1 %1028  ;;  %v2416_v30 = vrot.slane %v1192_v19, %v4220_v17  ;;  %v1765_v33 = vrot.slane %v1186_v31, %v4154_v23  ;;  %v1851_v34 = vrot.slane %v1186_v31, %v4159_v26  ;;  %v1937_v36 = vrot.slane %v1186_v31, %v4164_v32 }
 0x3b2   : > { %1040 = vst.msk [vmem:[#allocation7 + $0x8] sm:$0xff] %vm1038_vm8, %v1029_v6  ;;  %v2023_v39 = vrot.slane %v1186_v31, %v4174_v35  ;;  %v2109_v44 = vrot.slane %v1186_v31, %v4208_v11  ;;  %v2195_v53 = vrot.slane %v1186_v31, %v4212_v13  ;;  %v2281_v61 = vrot.slane %v1186_v31, %v4216_v15 }
 0x3b3   : > { %1868 = vbcast.lane.b32.xlu1 %v1862_v7, 264  ;;  %1864 = vbcast.lane.b32.xlu0 %v1862_v7, 256  ;;  %v2367_v2 = vrot.slane %v1186_v31, %v4220_v17  ;;  %v3560_v6 = vmul.f32 -1.442695, %v5307_v4  ;;  %v3736_v7 = vpop.eup %3735 }
 0x3b4   : > { %v4263_v3 = vld [vmem:[#allocation8] sm:$0xff] }
 0x3b5   : > { %v1046_v8 = vpop.permute.xlu1 %1045  ;;  %v1803_v5 = vrot.slane %v4263_v3, %v4154_v23  ;;  %v2147_v31 = vrot.slane %v4263_v3, %v4208_v11 }
 0x3b6   : > { %1056 = vst.msk [vmem:[#allocation8 + $0x8] sm:$0xff] %vm1038_vm8, %v1046_v8 }
 0x3b7   : > { %1954 = vbcast.lane.b32.xlu1 %v1948_v9, 264  ;;  %1950 = vbcast.lane.b32.xlu0 %v1948_v9, 256  ;;  %v1889_v9 = vrot.slane %v4263_v3, %v4159_v26 }
 0x3bb   : > { %2040 = vbcast.lane.b32.xlu1 %v2034_v10, 264  ;;  %2036 = vbcast.lane.b32.xlu0 %v2034_v10, 256 }
 0x3bf   : > { %2126 = vbcast.lane.b32.xlu1 %v2120_v12, 264  ;;  %2122 = vbcast.lane.b32.xlu0 %v2120_v12, 256 }
 0x3c3   : > { %2212 = vbcast.lane.b32.xlu1 %v2206_v14, 264  ;;  %2208 = vbcast.lane.b32.xlu0 %v2206_v14, 256  ;;  %v1169_v14 = vld [vmem:[%s4097_s4] sm:$0xff] }
 0x3c7   : > { %2298 = vbcast.lane.b32.xlu1 %v2292_v16, 264  ;;  %2294 = vbcast.lane.b32.xlu0 %v2292_v16, 256  ;;  %v3196_v16 = vadd.f32 1.0, %v3736_v7 }
 0x3cb   : > { %2384 = vbcast.lane.b32.xlu1 %v2378_v18, 264  ;;  %2380 = vbcast.lane.b32.xlu0 %v2378_v18, 256 }
 0x3cf   : > { %1820 = vbcast.lane.b32.xlu1 %v1814_v21, 264  ;;  %1816 = vbcast.lane.b32.xlu0 %v1814_v21, 256  ;;  %v1975_v21 = vrot.slane %v4263_v3, %v4164_v32 }
 0x3d3   : > { %1906 = vbcast.lane.b32.xlu1 %v1900_v22, 264  ;;  %1902 = vbcast.lane.b32.xlu0 %v1900_v22, 256 }
 0x3d7   : > { %1992 = vbcast.lane.b32.xlu1 %v1986_v24, 264  ;;  %1988 = vbcast.lane.b32.xlu0 %v1986_v24, 256  ;;  %v1172_v24 = vmul.f32 1.442695, %v1169_v14 }
 0x3db   : > { %2078 = vbcast.lane.b32.xlu1 %v2072_v25, 264  ;;  %2074 = vbcast.lane.b32.xlu0 %v2072_v25, 256 }
 0x3df   : > { %2164 = vbcast.lane.b32.xlu1 %v2158_v27, 264  ;;  %2160 = vbcast.lane.b32.xlu0 %v2158_v27, 256  ;;  %v1170_v27 = vld [vmem:[%s4097_s4 + $0x8] sm:$0xff]  ;;  %s5407_s4 = sld [smem:[#allocation14_spill]] }
 0x3e3   : > { %2250 = vbcast.lane.b32.xlu1 %v2244_v28, 264  ;;  %2246 = vbcast.lane.b32.xlu0 %v2244_v28, 256 }
 0x3e7   : > { %2336 = vbcast.lane.b32.xlu1 %v2330_v29, 264  ;;  %2332 = vbcast.lane.b32.xlu0 %v2330_v29, 256  ;;  %v2061_v29 = vrot.slane %v4263_v3, %v4174_v35 }
 0x3eb   : > { %2422 = vbcast.lane.b32.xlu1 %v2416_v30, 264  ;;  %2418 = vbcast.lane.b32.xlu0 %v2416_v30, 256  ;;  %v1174_v30 = vmul.f32 1.442695, %v1170_v27 }
 0x3ef   : > { %1771 = vbcast.lane.b32.xlu1 %v1765_v33, 264  ;;  %1767 = vbcast.lane.b32.xlu0 %v1765_v33, 256  ;;  %v3962_v33 = vmov 1966171168  }
 0x3f3   : > { %1857 = vbcast.lane.b32.xlu1 %v1851_v34, 264  ;;  %1853 = vbcast.lane.b32.xlu0 %v1851_v34, 256  ;;  %v1208_v34 = vunpack.c.l.s4 %v3962_v33 }
 0x3f5   : > { %v1209_v48 = vunpack.c.0.s8 %v1208_v34 }
 0x3f7   : > { %1943 = vbcast.lane.b32.xlu1 %v1937_v36, 264  ;;  %1939 = vbcast.lane.b32.xlu0 %v1937_v36, 256 }
 0x3fb   : > { %v3644_v40 = vpop.f32.mrf.mxu0  ;;  %2029 = vbcast.lane.b32.xlu1 %v2023_v39, 264  ;;  %2025 = vbcast.lane.b32.xlu0 %v2023_v39, 256 }
 0x3fc   : > { %v4243_v42 = vadd.f32 %v3644_v40, %v3556_v38 }
 0x3fd   : > { %v1114_v43 = vpop.f32.mrf.mxu0 }
 0x3fe   : > { %v1135_v45 = vand.u32 2147483647, %v4243_v42  ;;  %v4247_v46 = vadd.f32 %v3556_v38, %v1114_v43  ;;  %v2233_v43 = vrot.slane %v4263_v3, %v4212_v13 }
 0x3ff   : > { %v3645_v47 = vpop.f32.mrf.mxu0  ;;  %2115 = vbcast.lane.b32.xlu1 %v2109_v44, 264  ;;  %2111 = vbcast.lane.b32.xlu0 %v2109_v44, 256  ;;  %v1131_v44 = vmax.f32 %v4243_v42, 0.0  ;;  %v2319_v42 = vrot.slane %v4263_v3, %v4216_v15 }
 0x400   : > { %v1139_v49 = vsub.f32 0.0, %v1135_v45  ;;  %v1133_v50 = vand.u32 2147483647, %v4247_v46  ;;  %v4252_v51 = vadd.f32 %v3645_v47, %v3556_v38 }
 0x401   : > { %v1117_v52 = vpop.f32.mrf.mxu0 }
 0x402   : > { %v1145_v54 = vmul.f32 1.442695, %v1139_v49  ;;  %v1137_v55 = vsub.f32 0.0, %v1133_v50  ;;  %v1136_v56 = vand.u32 2147483647, %v4252_v51  ;;  %v4256_v57 = vadd.f32 %v3556_v38, %v1117_v52 }
 0x403   : > { %2201 = vbcast.lane.b32.xlu1 %v2195_v53, 264  ;;  %2197 = vbcast.lane.b32.xlu0 %v2195_v53, 256  ;;  %v1129_v53 = vmax.f32 %v4247_v46, 0.0  ;;  %v4298_v46 = vsub.s32 %v1209_v48, %v4150_v20  ;;  %v1191_v48 = vld [vmem:[#allocation8 + $0x8] sm:$0xff] }
 0x404   : > { %3737 = vpow2.f32 %v1145_v54  ;;  %v1141_v58 = vmul.f32 1.442695, %v1137_v55  ;;  %v1140_v59 = vsub.f32 0.0, %v1136_v56  ;;  %v1134_v60 = vand.u32 2147483647, %v4256_v57  ;;  %v1184_v55 = vld [vmem:[#allocation4 + $0x10] sm:$0xff] }
 0x405   : > { %v3559_v56 = vld [vmem:[%s4103_s29] ss:$0 sm:$0xff]  ;;  %v1130_v20 = vmax.f32 %v4256_v57, 0.0  ;;  %v4424_v4 = vrot.slane %v1191_v48, %v4216_v15  ;;  %v4427_v0 = vrot.slane %v1191_v48, %v4220_v17 }
 0x406   : > { %3739 = vpow2.f32 %v1141_v58  ;;  %v1147_v62 = vmul.f32 1.442695, %v1140_v59  ;;  %v1138_v63 = vsub.f32 0.0, %v1134_v60 }
 0x407   : > { %2287 = vbcast.lane.b32.xlu1 %v2281_v61, 264  ;;  %2283 = vbcast.lane.b32.xlu0 %v2281_v61, 256  ;;  %v1189_v61 = vld [vmem:[#allocation7 + $0x18] sm:$0xff]  ;;  %5372 = vst [vmem:[#allocation38_spill] sm:$0xff] %v4424_v4  ;;  %5373 = vst [vmem:[#allocation39_spill] sm:$0xff] %v4427_v0 }
 0x408   : > { %3741 = vpow2.f32 %v1147_v62  ;;  %v1143_v1 = vmul.f32 1.442695, %v1138_v63  ;;  %v1132_v63 = vmax.f32 %v4252_v51, 0.0  ;;  %v1193_v51 = vld [vmem:[#allocation8 + $0x18] sm:$0xff]  ;;  %v4326_v37 = vrot.slane %v1189_v61, %v4208_v11 }
 0x409   : > { %v4332_v57 = vrot.slane %v1189_v61, %v4216_v15  ;;  %v4340_v27 = vrot.slane %v1193_v51, %v4159_v26  ;;  %v4352_v33 = vrot.slane %v1193_v51, %v4208_v11 }
 0x40a   : > { %3743 = vpow2.f32 %v1143_v1 }
 0x40b   : > { %2373 = vbcast.lane.b32.xlu1 %v2367_v2, 264  ;;  %2369 = vbcast.lane.b32.xlu0 %v2367_v2, 256  ;;  %3745 = vpow2.f32 %v3560_v6 }
 0x40f   : > { %1809 = vbcast.lane.b32.xlu1 %v1803_v5, 264  ;;  %1805 = vbcast.lane.b32.xlu0 %v1803_v5, 256  ;;  %v4300_v5 = vmul.f32 %v3559_v56, %v1184_v55 }
 0x411   : > { %v3738_v8 = vpop.eup %3737  ;;  %5356 = vst [vmem:[#allocation22_spill] sm:$0xff] %v4300_v5 }
 0x412   : > { %v1151_v10 = vadd.f32 1.0, %v3738_v8  ;;  %v2464_v8 = vrot.slane %v1189_v61, %v4154_v23 }
 0x413   : > { %v3740_v12 = vpop.eup %3739  ;;  %1895 = vbcast.lane.b32.xlu1 %v1889_v9, 264  ;;  %1891 = vbcast.lane.b32.xlu0 %v1889_v9, 256  ;;  %v4305_v9 = vrot.slane %v1189_v61, %v4159_v26 }
 0x414   : > { %3747 = vlog2.f32 %v1151_v10  ;;  %v1149_v18 = vadd.f32 1.0, %v3740_v12 }
 0x415   : > { %v3742_v19 = vpop.eup %3741 }
 0x416   : > { %3749 = vlog2.f32 %v1149_v18  ;;  %v1152_v22 = vadd.f32 1.0, %v3742_v19  ;;  %v2405_v18 = vrot.slane %v4263_v3, %v4220_v17  ;;  %v4319_v19 = vrot.slane %v1189_v61, %v4164_v32 }
 0x417   : > { %1981 = vbcast.lane.b32.xlu1 %v1975_v21, 264  ;;  %1977 = vbcast.lane.b32.xlu0 %v1975_v21, 256  ;;  %3751 = vrcp.f32 %v3196_v16  ;;  %v3744_v25 = vpop.eup %3743  ;;  %v4323_v21 = vrot.slane %v1189_v61, %v4174_v35 }
 0x418   : > { %3753 = vlog2.f32 %v1152_v22  ;;  %v1150_v28 = vadd.f32 1.0, %v3744_v25  ;;  %v3746_v36 = vpop.eup %3745  ;;  %v1187_v22 = vld [vmem:[#allocation7 + $0x8] sm:$0xff]  ;;  %v4337_v25 = vrot.slane %v1193_v51, %v4154_v23 }
 0x419   : > { %3755 = vpow2.f32 %v1172_v24  ;;  %v3194_v49 = vadd.f32 1.0, %v3746_v36 }
 0x41a   : > { %3757 = vlog2.f32 %v1150_v28 }
 0x41b   : > { %2067 = vbcast.lane.b32.xlu1 %v2061_v29, 264  ;;  %2063 = vbcast.lane.b32.xlu0 %v2061_v29, 256  ;;  %3759 = vpow2.f32 %v1174_v30  ;;  %v4343_v29 = vrot.slane %v1193_v51, %v4164_v32  ;;  %v4346_v30 = vrot.slane %v1193_v51, %v4174_v35 }
 0x41c   : > { %3761 = vrcp.f32 %v3194_v49 }
 0x41f   : > { %2153 = vbcast.lane.b32.xlu1 %v2147_v31, 264  ;;  %2149 = vbcast.lane.b32.xlu0 %v2147_v31, 256  ;;  %v4349_v31 = vrot.slane %v1189_v61, %v4220_v17 }
 0x421   : > { %v3748_v38 = vpop.eup %3747  ;;  %v4280_v39 = vpop.permute.xlu0 %1778 }
 0x422   : > { %v4282_v40 = vpop.permute.xlu1 %1782  ;;  %v1158_v45 = vmul.f32 0.6931472, %v3748_v38 }
 0x423   : > { %v3750_v47 = vpop.eup %3749  ;;  %2239 = vbcast.lane.b32.xlu1 %v2233_v43, 264  ;;  %2235 = vbcast.lane.b32.xlu0 %v2233_v43, 256  ;;  %v4356_v43 = vrot.slane %v1193_v51, %v4212_v13 }
 0x424   : > { %v3752_v50 = vpop.eup %3751  ;;  %v1163_v52 = vadd.f32 %v1158_v45, %v1131_v44  ;;  %v1154_v54 = vmul.f32 0.6931472, %v3750_v47  ;;  %v4359_v44 = vrot.slane %v1193_v51, %v4216_v15  ;;  %v4362_v45 = vrot.slane %v1187_v22, %v4154_v23 }
 0x425   : > { %v3754_v58 = vpop.eup %3753  ;;  %v4289_v59 = vpop.permute.xlu0 %1864  ;;  %v4309_v10 = vmul.f32 %v3752_v50, %v3598_v41  ;;  %v4329_v41 = vrot.slane %v1189_v61, %v4212_v13  ;;  %v4365_v47 = vrot.slane %v1187_v22, %v4159_v26  ;;  %v4402_v51 = vrot.slane %v1191_v48, %v4159_v26 }
 0x426   : > { %v4291_v60 = vpop.permute.xlu1 %1868  ;;  %1167 = vst.msk [vmem:[#allocation6 + $0x10] sm:$0xff] %vm824_vm4, %v1163_v52  ;;  %v1161_v62 = vadd.f32 %v1154_v54, %v1129_v53  ;;  %v1160_v1 = vmul.f32 0.6931472, %v3754_v58  ;;  %v3756_v2 = vpop.eup %3755  ;;  %5358 = vst [vmem:[#allocation24_spill] sm:$0xff] %v4362_v45  ;;  %v4371_v52 = vrot.slane %v1187_v22, %v4164_v32  ;;  %v4374_v53 = vrot.slane %v1187_v22, %v4174_v35 }
 0x427   : > { %2325 = vbcast.lane.b32.xlu1 %v2319_v42, 264  ;;  %2321 = vbcast.lane.b32.xlu0 %v2319_v42, 256  ;;  %v3758_v6 = vpop.eup %3757  ;;  %5357 = vst [vmem:[#allocation23_spill] sm:$0xff] %v4309_v10  ;;  %v4334_v3 = vsub.f32 0.0, %v3756_v2  ;;  %5359 = vst [vmem:[#allocation25_spill] sm:$0xff] %v4365_v47  ;;  %v4381_v58 = vrot.slane %v1187_v22, %v4208_v11  ;;  %v4384_v42 = vrot.slane %v1187_v22, %v4212_v13 }
 0x428   : > { %1165 = vst.msk [vmem:[#allocation6] sm:$0xff] %vm824_vm4, %v1161_v62  ;;  %v1164_v7 = vadd.f32 %v1160_v1, %v1132_v63  ;;  %v1156_v12 = vmul.f32 0.6931472, %v3758_v6  ;;  %v3760_v28 = vpop.eup %3759  ;;  %5360 = vst [vmem:[#allocation26_spill] sm:$0xff] %v4371_v52  ;;  %v4396_v63 = vrot.slane %v1191_v48, %v4154_v23  ;;  %v4399_v1 = vrot.slane %v1187_v22, %v4220_v17 }
 0x429   : > { %v4312_v14 = vpop.permute.xlu0 %1950  ;;  %5361 = vst [vmem:[#allocation27_spill] sm:$0xff] %v4374_v53  ;;  %v4378_v56 = vsub.f32 0.0, %v3760_v28  ;;  %5362 = vst [vmem:[#allocation28_spill] sm:$0xff] %v4381_v58 }
 0x42a   : > { %v4314_v16 = vpop.permute.xlu1 %1954  ;;  %1168 = vst.msk [vmem:[#allocation6 + $0x18] sm:$0xff] %vm824_vm4, %v1164_v7  ;;  %v1162_v24 = vadd.f32 %v1156_v12, %v1130_v20  ;;  %5363 = vst [vmem:[#allocation29_spill] sm:$0xff] %v4384_v42  ;;  %v4405_v20 = vrot.slane %v1191_v48, %v4164_v32 }
 0x42b   : > { %2411 = vbcast.lane.b32.xlu1 %v2405_v18, 264  ;;  %2407 = vbcast.lane.b32.xlu0 %v2405_v18, 256  ;;  %5365 = vst [vmem:[#allocation31_spill] sm:$0xff] %v4396_v63  ;;  %5366 = vst [vmem:[#allocation32_spill] sm:$0xff] %v4399_v1  ;;  %v4429_v1 = vpop.eup %3761 }
 0x42c   : > { %1166 = vst.msk [vmem:[#allocation6 + $0x8] sm:$0xff] %vm824_vm4, %v1162_v24  ;;  %5367 = vst [vmem:[#allocation33_spill] sm:$0xff] %v4402_v51  ;;  %v4412_v24 = vrot.slane %v1191_v48, %v4174_v35 }
 0x42d   : > { %v1180_v34 = vld [vmem:[#allocation6 + $0x10] sm:$0xff]  ;;  %v2037_v36 = vpop.permute.xlu0 %2036  ;;  %5368 = vst [vmem:[#allocation34_spill] sm:$0xff] %v4405_v20  ;;  %5374 = vst [vmem:[#allocation40_spill] sm:$0xff] %v4429_v1 }
 0x42e   : > { %v2041_v38 = vpop.permute.xlu1 %2040  ;;  %v1311_v49 = vrot.slane %v1180_v34, %v4298_v46  ;;  %v4368_v50 = vmul.f32 %v1184_v55, %v1180_v34  ;;  %v4387_v55 = vrot.slane %v1187_v22, %v4216_v15  ;;  %5369 = vst [vmem:[#allocation35_spill] sm:$0xff] %v4412_v24  ;;  %v4415_v22 = vrot.slane %v1191_v48, %v4208_v11 }
 0x42f   : > { %v4376_v54 = vld [vmem:[#allocation6] sm:$0xff]  ;;  %2470 = vbcast.lane.b32.xlu1 %v2464_v8, 264  ;;  %2466 = vbcast.lane.b32.xlu0 %v2464_v8, 256  ;;  %v1304_v8 = vcombine.high %v1180_v34, %v1180_v34  ;;  %v4421_v34 = vrot.slane %v1191_v48, %v4212_v13 }
 0x430   : > { %5364 = vst [vmem:[#allocation30_spill] sm:$0xff] %v4387_v55  ;;  %v4391_v61 = vrot.slane %v4376_v54, %v4298_v46  ;;  %v1791_v62 = vrot.slane %v4368_v50, %v4154_v23  ;;  %v1319_v2 = vcombine.high %v1311_v49, %v1311_v49  ;;  %v1877_v12 = vrot.slane %v4368_v50, %v4159_v26 }
 0x431   : > { %v2123_v6 = vpop.permute.xlu0 %2122  ;;  %v1963_v18 = vrot.slane %v4368_v50, %v4164_v32  ;;  %5370 = vst [vmem:[#allocation36_spill] sm:$0xff] %v4415_v22  ;;  %v2049_v28 = vrot.slane %v4368_v50, %v4174_v35  ;;  %5371 = vst [vmem:[#allocation37_spill] sm:$0xff] %v4421_v34  ;;  %v2135_v20 = vrot.slane %v4368_v50, %v4208_v11 }
 0x432   : > { %v2127_v7 = vpop.permute.xlu1 %2126  ;;  %v4434_v22 = vmul.f32 %v1791_v62, %v4280_v39  ;;  %v2221_v34 = vrot.slane %v4368_v50, %v4212_v13  ;;  %v4442_v4 = vmul.f32 %v1791_v62, %v4282_v40  ;;  %v1327_v1 = vrot.slane %v1311_v49, %v4298_v46 }
 0x433   : > { %2556 = vbcast.lane.b32.xlu1 %v4305_v9, 264  ;;  %2552 = vbcast.lane.b32.xlu0 %v4305_v9, 256  ;;  %v1341_v24 = vrot.slane %v1319_v2, %v4298_v46  ;;  %v1318_v39 = vrot.slane %v1304_v8, %v4298_v46  ;;  %v4448_v51 = vmul.f32 %v1877_v12, %v4289_v59 }
 0x434   : > { %v4451_v63 = vmul.f32 %v1877_v12, %v4291_v60  ;;  %v4454_v9 = vmul.f32 %v1963_v18, %v4312_v14  ;;  %v4457_v40 = vmul.f32 %v1963_v18, %v4314_v16  ;;  %v1469_v49 = vrot.slane %v1327_v1, %v4154_v23 }
 0x435   : > { %v2209_v48 = vpop.permute.xlu0 %2208  ;;  %v1473_v62 = vrot.slane %v1341_v24, %v4154_v23  ;;  %v1349_v2 = vcombine.high %v1327_v1, %v1327_v1  ;;  %v1351_v8 = vcombine.high %v1341_v24, %v1341_v24  ;;  %v4462_v55 = vmul.f32 %v2049_v28, %v2037_v36 }
 0x436   : > { %v2213_v0 = vpop.permute.xlu1 %2212  ;;  %v4464_v59 = vmul.f32 %v2049_v28, %v2041_v38  ;;  %v1334_v60 = vrot.slane %v1318_v39, %v4298_v46  ;;  %v1320_v14 = vcombine.high %v1318_v39, %v1318_v39  ;;  %v4468_v12 = vmul.f32 %v2135_v20, %v2123_v6  ;;  %v1182_v28 = vld [vmem:[#allocation4] sm:$0xff] }
 0x437   : > { %2642 = vbcast.lane.b32.xlu1 %v4319_v19, 264  ;;  %2638 = vbcast.lane.b32.xlu0 %v4319_v19, 256  ;;  %v1594_v10 = vmul.f32 %v1469_v49, %v4334_v3  ;;  %v1595_v42 = vmul.f32 %v1469_v49, %v4378_v56  ;;  %v1596_v1 = vmul.f32 %v1473_v62, %v4334_v3 }
 0x438   : > { %v4473_v24 = vmul.f32 %v2135_v20, %v2127_v7  ;;  %v1597_v36 = vmul.f32 %v1473_v62, %v4378_v56  ;;  %v1477_v38 = vrot.slane %v1349_v2, %v4154_v23  ;;  %v1481_v19 = vrot.slane %v1351_v8, %v4154_v23 }
 0x439   : > { %v2295_v16 = vpop.permute.xlu0 %2294  ;;  %v2307_v6 = vrot.slane %v4368_v50, %v4216_v15  ;;  %v1690_v39 = vmul.f32 1.442695, %v1594_v10  ;;  %v1692_v5 = vmul.f32 1.442695, %v1595_v42  ;;  %v4482_v49 = vmul.f32 %v1182_v28, %v4376_v54 }
 0x43a   : > { %v2299_v18 = vpop.permute.xlu1 %2298  ;;  %v1694_v7 = vmul.f32 1.442695, %v1596_v1  ;;  %v1598_v20 = vmul.f32 %v1477_v38, %v4334_v3  ;;  %v1485_v62 = vrot.slane %v1334_v60, %v4154_v23  ;;  %v1348_v2 = vrot.slane %v1320_v14, %v4298_v46 }
 0x43b   : > { %2728 = vbcast.lane.b32.xlu1 %v4323_v21, 264  ;;  %2724 = vbcast.lane.b32.xlu0 %v4323_v21, 256  ;;  %v4488_v8 = vmul.f32 %v2221_v34, %v2209_v48  ;;  %v2393_v58 = vrot.slane %v4368_v50, %v4220_v17  ;;  %3763 = vpow2.f32 %v1690_v39  ;;  %v1599_v42 = vmul.f32 %v1477_v38, %v4378_v56 }
 0x43c   : > { %v4493_v28 = vmul.f32 %v2221_v34, %v2213_v0  ;;  %3765 = vpow2.f32 %v1692_v5  ;;  %v1696_v21 = vmul.f32 1.442695, %v1597_v36  ;;  %v1600_v1 = vmul.f32 %v1481_v19, %v4334_v3 }
 0x43d   : > { %v2381_v53 = vpop.permute.xlu0 %2380  ;;  %v1601_v14 = vmul.f32 %v1481_v19, %v4378_v56  ;;  %v4500_v48 = vrot.slane %v4482_v49, %v4154_v23  ;;  %v4504_v50 = vrot.slane %v4482_v49, %v4159_v26  ;;  %v4508_v0 = vrot.slane %v4391_v61, %v4298_v46 }
 0x43e   : > { %v2385_v10 = vpop.permute.xlu1 %2384  ;;  %3767 = vpow2.f32 %v1694_v7  ;;  %v1698_v5 = vmul.f32 1.442695, %v1598_v20  ;;  %v1602_v34 = vmul.f32 %v1485_v62, %v4334_v3  ;;  %v1489_v36 = vrot.slane %v1348_v2, %v4154_v23 }
 0x43f   : > { %2814 = vbcast.lane.b32.xlu1 %v4326_v37, 264  ;;  %5375 = vst [vmem:[#allocation41_spill] sm:$0xff] %v4500_v48  ;;  %5376 = vst [vmem:[#allocation42_spill] sm:$0xff] %v4504_v50  ;;  %2810 = vbcast.lane.b32.xlu0 %v4326_v37, 256  ;;  %v1700_v39 = vmul.f32 1.442695, %v1599_v42  ;;  %v1603_v26 = vmul.f32 %v1485_v62, %v4378_v56  ;;  %v1350_v17 = vcombine.high %v1334_v60, %v1334_v60 }
 0x440   : > { %v1352_v52 = vcombine.high %v1348_v2, %v1348_v2  ;;  %v4518_v50 = vmul.f32 %v2307_v6, %v2295_v16  ;;  %3769 = vpow2.f32 %v1696_v21  ;;  %v1702_v47 = vmul.f32 1.442695, %v1600_v1 }
 0x441   : > { %v4513_v38 = vpop.permute.xlu0 %1816  ;;  %v1604_v37 = vmul.f32 %v1489_v36, %v4334_v3  ;;  %v1704_v7 = vmul.f32 1.442695, %v1601_v14  ;;  %v1605_v20 = vmul.f32 %v1489_v36, %v4378_v56  ;;  %v1493_v48 = vrot.slane %v1350_v17, %v4154_v23 }
 0x442   : > { %v4515_v19 = vpop.permute.xlu1 %1820  ;;  %v1497_v45 = vrot.slane %v1352_v52, %v4154_v23  ;;  %v4525_v42 = vmul.f32 %v2307_v6, %v2299_v18  ;;  %v4527_v62 = vmul.f32 %v2393_v58, %v2381_v53  ;;  %3771 = vpow2.f32 %v1698_v5 }
 0x443   : > { %2900 = vbcast.lane.b32.xlu1 %v4329_v41, 264  ;;  %2896 = vbcast.lane.b32.xlu0 %v4329_v41, 256  ;;  %v1706_v60 = vmul.f32 1.442695, %v1602_v34  ;;  %v4530_v16 = vmul.f32 %v2393_v58, %v2385_v10  ;;  %3773 = vpow2.f32 %v1700_v39  ;;  %v1708_v1 = vmul.f32 1.442695, %v1603_v26 }
 0x444   : > { %v1606_v17 = vmul.f32 %v1493_v48, %v4334_v3  ;;  %3775 = vpow2.f32 %v1702_v47  ;;  %v1710_v52 = vmul.f32 1.442695, %v1604_v37  ;;  %v1607_v18 = vmul.f32 %v1493_v48, %v4378_v56 }
 0x445   : > { %v4532_v2 = vpop.permute.xlu0 %1902  ;;  %v4540_v53 = vrot.slane %v4482_v49, %v4164_v32  ;;  %3777 = vpow2.f32 %v1704_v7  ;;  %v1712_v41 = vmul.f32 1.442695, %v1605_v20  ;;  %v1608_v58 = vmul.f32 %v1497_v45, %v4334_v3 }
 0x446   : > { %v4534_v21 = vpop.permute.xlu1 %1906  ;;  %v4546_v6 = vrot.slane %v4482_v49, %v4174_v35  ;;  %3779 = vpow2.f32 %v1706_v60  ;;  %v1714_v26 = vmul.f32 1.442695, %v1606_v17  ;;  %v1609_v47 = vmul.f32 %v1497_v45, %v4378_v56 }
 0x447   : > { %2986 = vbcast.lane.b32.xlu1 %v4332_v57, 264  ;;  %2982 = vbcast.lane.b32.xlu0 %v4332_v57, 256  ;;  %v1405_v10 = vrot.slane %v4508_v0, %v4154_v23  ;;  %3781 = vpow2.f32 %v1708_v1  ;;  %v4558_v5 = vrot.slane %v4482_v49, %v4208_v11  ;;  %v5377_v57 = vcombine.high %v4391_v61, %v4391_v61 }
 0x448   : > { %v1251_v45 = vcombine.high %v4508_v0, %v4508_v0  ;;  %v3764_v36 = vpop.eup %3763  ;;  %3783 = vpow2.f32 %v1710_v52  ;;  %v1716_v39 = vmul.f32 1.442695, %v1607_v18  ;;  %v4568_v37 = vrot.slane %v4482_v49, %v4212_v13 }
 0x449   : > { %v4552_v14 = vpop.permute.xlu0 %1988  ;;  %v1243_v34 = vrot.slane %v5377_v57, %v4298_v46  ;;  %v1562_v7 = vmul.f32 %v1405_v10, %v4334_v3  ;;  %v3766_v20 = vpop.eup %3765  ;;  %v1760_v60 = vmul.f32 0.0, %v3764_v36  ;;  %3785 = vpow2.f32 %v1712_v41 }
 0x44a   : > { %v4554_v48 = vpop.permute.xlu1 %1992  ;;  %v1718_v1 = vmul.f32 1.442695, %v1608_v58  ;;  %v1761_v17 = vmul.f32 0.0, %v3766_v20  ;;  %3787 = vpow2.f32 %v1714_v26  ;;  %v1720_v0 = vmul.f32 1.442695, %v1609_v47 }
 0x44b   : > { %2508 = vbcast.lane.b32.xlu1 %v4337_v25, 264  ;;  %v1409_v61 = vrot.slane %v1243_v34, %v4154_v23  ;;  %2504 = vbcast.lane.b32.xlu0 %v4337_v25, 256  ;;  %v4576_v52 = vrot.slane %v4482_v49, %v4216_v15  ;;  %v3768_v18 = vpop.eup %3767  ;;  %v1798_v57 = vadd.f32 %v4434_v22, %v1760_v60  ;;  %3789 = vpow2.f32 %v1716_v39 }
 0x44c   : > { %v1563_v41 = vmul.f32 %v1405_v10, %v4378_v56  ;;  %v1413_v58 = vrot.slane %v1251_v45, %v4154_v23  ;;  %v1799_v26 = vadd.f32 %v4442_v4, %v1761_v17  ;;  %v1626_v47 = vmul.f32 1.442695, %v1562_v7 }
 0x44d   : > { %v4579_v13 = vpop.permute.xlu0 %2074  ;;  %v1564_v20 = vmul.f32 %v1409_v61, %v4334_v3  ;;  %v3770_v15 = vpop.eup %3769  ;;  %v1824_v22 = vmul.f32 %v4513_v38, %v1798_v57  ;;  %v1846_v60 = vmul.f32 %v3768_v18, %v1798_v57  ;;  %3791 = vpow2.f32 %v1718_v1 }
 0x44e   : > { %v4581_v36 = vpop.permute.xlu1 %2078  ;;  %v1253_v11 = vcombine.high %v1243_v34, %v1243_v34  ;;  %v1825_v10 = vmul.f32 %v4515_v19, %v1799_v26  ;;  %v1847_v45 = vmul.f32 %v3770_v15, %v1799_v26  ;;  %3793 = vpow2.f32 %v1720_v0 }
 0x44f   : > { %2594 = vbcast.lane.b32.xlu1 %v4340_v27, 264  ;;  %2590 = vbcast.lane.b32.xlu0 %v4340_v27, 256  ;;  %v1565_v4 = vmul.f32 %v1409_v61, %v4378_v56  ;;  %v3772_v39 = vpop.eup %3771  ;;  %v1835_v7 = vsel %vm824_vm4, %v1824_v22, 0.0  ;;  %v1884_v17 = vadd.f32 %v4448_v51, %v1846_v60  ;;  %v1628_v18 = vmul.f32 1.442695, %v1563_v41 }
 0x450   : > { %v1566_v34 = vmul.f32 %v1413_v58, %v4334_v3  ;;  %v3774_v1 = vpop.eup %3773  ;;  %v1836_v15 = vsel %vm824_vm4, %v1825_v10, 0.0  ;;  %v1885_v27 = vadd.f32 %v4451_v63, %v1847_v45  ;;  %3795 = vpow2.f32 %v1626_v47 }
 0x451   : > { %v4596_v25 = vpop.permute.xlu0 %2160  ;;  %v1630_v19 = vmul.f32 1.442695, %v1564_v20  ;;  %v3776_v61 = vpop.eup %3775  ;;  %v1837_v0 = vadd.f32 %v1836_v15, %v1835_v7  ;;  %v1910_v57 = vmul.f32 %v4532_v2, %v1884_v17  ;;  %v1932_v26 = vmul.f32 %v3772_v39, %v1884_v17 }
 0x452   : > { %v4598_v38 = vpop.permute.xlu1 %2164  ;;  %v1417_v51 = vrot.slane %v1253_v11, %v4154_v23  ;;  %v3778_v22 = vpop.eup %3777  ;;  %v1911_v41 = vmul.f32 %v4534_v21, %v1885_v27  ;;  %v1933_v60 = vmul.f32 %v3774_v1, %v1885_v27  ;;  %v1632_v10 = vmul.f32 1.442695, %v1565_v4 }
 0x453   : > { %2680 = vbcast.lane.b32.xlu1 %v4343_v29, 264  ;;  %2676 = vbcast.lane.b32.xlu0 %v4343_v29, 256  ;;  %v1567_v63 = vmul.f32 %v1413_v58, %v4378_v56  ;;  %v3780_v47 = vpop.eup %3779  ;;  %v1838_v20 = vrot.slane %v1837_v0, 4  ;;  %v1921_v45 = vsel %vm824_vm4, %v1910_v57, 0.0  ;;  %v1970_v2 = vadd.f32 %v4454_v9, %v1932_v26 }
 0x454   : > { %3797 = vpow2.f32 %v1628_v18  ;;  %v3782_v11 = vpop.eup %3781  ;;  %v1922_v21 = vsel %vm824_vm4, %v1911_v41, 0.0  ;;  %v1971_v17 = vadd.f32 %v4457_v40, %v1933_v60  ;;  %v1634_v29 = vmul.f32 1.442695, %v1566_v34 }
 0x455   : > { %v4611_v39 = vpop.permute.xlu0 %2246  ;;  %3799 = vpow2.f32 %v1630_v19  ;;  %v3784_v4 = vpop.eup %3783  ;;  %v1923_v58 = vadd.f32 %v1922_v21, %v1921_v45  ;;  %v1996_v1 = vmul.f32 %v4552_v14, %v1970_v2  ;;  %v2018_v15 = vmul.f32 %v3776_v61, %v1970_v2 }
 0x456   : > { %v4613_v7 = vpop.permute.xlu1 %2250  ;;  %v1568_v9 = vmul.f32 %v1417_v51, %v4334_v3  ;;  %v3786_v27 = vpop.eup %3785  ;;  %v1997_v57 = vmul.f32 %v4554_v48, %v1971_v17  ;;  %v2019_v18 = vmul.f32 %v3778_v22, %v1971_v17  ;;  %3801 = vpow2.f32 %v1632_v10 }
 0x457   : > { %2766 = vbcast.lane.b32.xlu1 %v4346_v30, 264  ;;  %2762 = vbcast.lane.b32.xlu0 %v4346_v30, 256  ;;  %v1636_v26 = vmul.f32 1.442695, %v1567_v63  ;;  %v4622_v40 = vpop.eup %3787  ;;  %v1839_v34 = vadd.f32 %v1838_v20, %v1837_v0  ;;  %v1924_v19 = vrot.slane %v1923_v58, 4  ;;  %v2007_v41 = vsel %vm824_vm4, %v1996_v1, 0.0 }
 0x458   : > { %v2056_v14 = vadd.f32 %v4462_v55, %v2018_v15  ;;  %v2008_v45 = vsel %vm824_vm4, %v1997_v57, 0.0  ;;  %v2057_v48 = vadd.f32 %v4464_v59, %v2019_v18  ;;  %3803 = vpow2.f32 %v1634_v29  ;;  %v3790_v22 = vpop.eup %3789 }
 0x459   : > { %v4626_v61 = vpop.permute.xlu0 %2332  ;;  %v1569_v30 = vmul.f32 %v1417_v51, %v4378_v56  ;;  %v1925_v10 = vadd.f32 %v1924_v19, %v1923_v58  ;;  %v2009_v63 = vadd.f32 %v2008_v45, %v2007_v41  ;;  %v1638_v20 = vmul.f32 1.442695, %v1568_v9 }
 0x45a   : > { %v4628_v60 = vpop.permute.xlu1 %2336  ;;  %v2082_v0 = vmul.f32 %v4579_v13, %v2056_v14  ;;  %v4635_v55 = vpop.eup %3791  ;;  %v2083_v2 = vmul.f32 %v4581_v36, %v2057_v48  ;;  %v2104_v21 = vmul.f32 %v3780_v47, %v2056_v14  ;;  %v2105_v17 = vmul.f32 %v3782_v11, %v2057_v48 }
 0x45b   : > { %3072 = vbcast.lane.b32.xlu1 %v4349_v31, 264  ;;  %3068 = vbcast.lane.b32.xlu0 %v4349_v31, 256  ;;  %3805 = vpow2.f32 %v1636_v26  ;;  %v4639_v59 = vpop.eup %3793  ;;  %v1840_v51 = vrot.slane %v1839_v34, 2  ;;  %v1926_v29 = vrot.slane %v1925_v10, 2  ;;  %v2010_v58 = vrot.slane %v2009_v63, 4 }
 0x45c   : > { %v2093_v1 = vsel %vm824_vm4, %v2082_v0, 0.0  ;;  %v2094_v9 = vsel %vm824_vm4, %v2083_v2, 0.0  ;;  %v2142_v36 = vadd.f32 %v4468_v12, %v2104_v21  ;;  %v2143_v47 = vadd.f32 %v4473_v24, %v2105_v17 }
 0x45d   : > { %v4642_v13 = vpop.permute.xlu0 %2418  ;;  %v5378_v31 = vcombine.high %v4376_v54, %v4376_v54  ;;  %v4655_v57 = vpop.eup %3795  ;;  %v2011_v18 = vadd.f32 %v2010_v58, %v2009_v63  ;;  %v2095_v26 = vadd.f32 %v2094_v9, %v2093_v1  ;;  %3807 = vpow2.f32 %v1638_v20 }
 0x45e   : > { %v4644_v15 = vpop.permute.xlu1 %2422  ;;  %v4658_v19 = vmul.f32 1.442695, %v1569_v30  ;;  %v2168_v41 = vmul.f32 %v4596_v25, %v2142_v36  ;;  %v2169_v12 = vmul.f32 %v4598_v38, %v2143_v47  ;;  %v2190_v24 = vmul.f32 %v3784_v4, %v2142_v36 }
 0x45f   : > { %v4653_v11 = vrot.slane %v5378_v31, %v4298_v46  ;;  %2852 = vbcast.lane.b32.xlu1 %v4352_v33, 264  ;;  %v2191_v14 = vmul.f32 %v3786_v27, %v2143_v47  ;;  %2848 = vbcast.lane.b32.xlu0 %v4352_v33, 256  ;;  %v1841_v54 = vadd.f32 %v1840_v51, %v1839_v34  ;;  %v2012_v48 = vrot.slane %v2011_v18, 2 }
 0x460   : > { %v1927_v45 = vadd.f32 %v1926_v29, %v1925_v10  ;;  %v2096_v0 = vrot.slane %v2095_v26, 4  ;;  %v2179_v30 = vsel %vm824_vm4, %v2168_v41, 0.0  ;;  %v2180_v25 = vsel %vm824_vm4, %v2169_v12, 0.0 }
 0x461   : > { %v4663_v2 = vpop.permute.xlu0 %1767  ;;  %v4667_v21 = vpop.eup %3797  ;;  %v2228_v38 = vadd.f32 %v4488_v8, %v2190_v24  ;;  %v2229_v4 = vadd.f32 %v4493_v28, %v2191_v14  ;;  %v2013_v33 = vadd.f32 %v2012_v48, %v2011_v18  ;;  %v2181_v10 = vadd.f32 %v2180_v25, %v2179_v30 }
 0x462   : > { %v4665_v63 = vpop.permute.xlu1 %1771  ;;  %v4673_v27 = vpop.eup %3799  ;;  %v2097_v34 = vadd.f32 %v2096_v0, %v2095_v26  ;;  %v4678_v20 = vrot.slane %v4653_v11, %v4298_v46  ;;  %v1842_v58 = vrot.slane %v1841_v54, 1  ;;  %v1928_v1 = vrot.slane %v1927_v45, 1 }
 0x463   : > { %2938 = vbcast.lane.b32.xlu1 %v4356_v43, 264  ;;  %v2254_v17 = vmul.f32 %v4611_v39, %v2228_v38  ;;  %v2255_v51 = vmul.f32 %v4613_v7, %v2229_v4  ;;  %v2276_v29 = vmul.f32 %v4622_v40, %v2228_v38  ;;  %v2277_v8 = vmul.f32 %v3790_v22, %v2229_v4  ;;  %v4684_v28 = vpop.eup %3801 }
 0x464   : > { %2934 = vbcast.lane.b32.xlu0 %v4356_v43, 256  ;;  %v2098_v9 = vrot.slane %v2097_v34, 2  ;;  %v2182_v36 = vrot.slane %v2181_v10, 4  ;;  %v2014_v18 = vrot.slane %v2013_v33, 1  ;;  %3809 = vpow2.f32 %v4658_v19 }
 0x465   : > { %v4686_v47 = vpop.permute.xlu0 %1853  ;;  %v2265_v39 = vsel %vm824_vm4, %v2254_v17, 0.0  ;;  %v2266_v7 = vsel %vm824_vm4, %v2255_v51, 0.0  ;;  %v2314_v40 = vadd.f32 %v4518_v50, %v2276_v29  ;;  %v2315_v43 = vadd.f32 %v4525_v42, %v2277_v8  ;;  %v4694_v22 = vpop.eup %3803  ;;  %v5379_v51 = vld [vmem:[#allocation24_spill] sm:$0xff] }
 0x466   : > { %v4688_v31 = vpop.permute.xlu1 %1857  ;;  %v2099_v26 = vadd.f32 %v2098_v9, %v2097_v34  ;;  %v2183_v41 = vadd.f32 %v2182_v36, %v2181_v10  ;;  %v2267_v12 = vadd.f32 %v2266_v7, %v2265_v39  ;;  %v1929_v42 = vadd.f32 %v1928_v1, %v1927_v45 }
 0x467   : > { %3024 = vbcast.lane.b32.xlu1 %v4359_v44, 264  ;;  %v2340_v24 = vmul.f32 %v4626_v61, %v2314_v40  ;;  %v2341_v14 = vmul.f32 %v4628_v60, %v2315_v43  ;;  %v2362_v48 = vmul.f32 %v4635_v55, %v2314_v40  ;;  %v2363_v0 = vmul.f32 %v4639_v59, %v2315_v43 }
 0x468   : > { %3020 = vbcast.lane.b32.xlu0 %v4359_v44, 256  ;;  %v4702_v50 = vpop.eup %3805  ;;  %v2100_v30 = vrot.slane %v2099_v26, 1  ;;  %v2184_v25 = vrot.slane %v2183_v41, 2  ;;  %v2268_v38 = vrot.slane %v2267_v12, 4  ;;  %v1843_v44 = vadd.f32 %v1842_v58, %v1841_v54 }
 0x469   : > { %v4704_v4 = vpop.permute.xlu0 %1939  ;;  %v2351_v61 = vsel %vm824_vm4, %v2340_v24, 0.0  ;;  %v2352_v60 = vsel %vm824_vm4, %v2341_v14, 0.0  ;;  %v4711_v55 = vadd.f32 %v4527_v62, %v2362_v48  ;;  %v4714_v59 = vadd.f32 %v4530_v16, %v2363_v0  ;;  %v5381_v24 = vld [vmem:[#allocation25_spill] sm:$0xff] }
 0x46a   : > { %v4706_v34 = vpop.permute.xlu1 %1943  ;;  %v2185_v10 = vadd.f32 %v2184_v25, %v2183_v41  ;;  %v2269_v45 = vadd.f32 %v2268_v38, %v2267_v12  ;;  %v2353_v17 = vadd.f32 %v2352_v60, %v2351_v61  ;;  %v4717_v29 = vpop.eup %3807  ;;  %v2015_v8 = vadd.f32 %v2014_v18, %v2013_v33 }
 0x46b   : > { %2459 = vbcast.lane.b32.xlu1 %v5379_v51, 264  ;;  %v2426_v1 = vmul.f32 %v4642_v13, %v4711_v55  ;;  %v2427_v9 = vmul.f32 %v4644_v15, %v4714_v59  ;;  %v1421_v62 = vrot.slane %v4678_v20, %v4154_v23  ;;  %v3135_v16 = vsel %vm1076_vm6, %v1843_v44, %v1929_v42  ;;  %v5380_v15 = vld [vmem:[#allocation41_spill] sm:$0xff] }
 0x46c   : > { %2455 = vbcast.lane.b32.xlu0 %v5379_v51, 256  ;;  %v2101_v54 = vadd.f32 %v2100_v30, %v2099_v26  ;;  %v2270_v58 = vrot.slane %v2269_v45, 2  ;;  %v2354_v36 = vrot.slane %v2353_v17, 4  ;;  %v1792_v40 = vmul.f32 %v5380_v15, %v4663_v2  ;;  %v5382_v30 = vld [vmem:[#allocation42_spill] sm:$0xff] }
 0x46d   : > { %v4727_v39 = vpop.permute.xlu0 %2025  ;;  %v2437_v13 = vsel %vm824_vm4, %v2426_v1, 0.0  ;;  %v2438_v33 = vsel %vm824_vm4, %v2427_v9, 0.0  ;;  %v1793_v43 = vmul.f32 %v5380_v15, %v4665_v63  ;;  %v2186_v18 = vrot.slane %v2185_v10, 1  ;;  %v5383_v51 = vld [vmem:[#allocation26_spill] sm:$0xff] }
 0x46e   : > { %v4729_v7 = vpop.permute.xlu1 %2029  ;;  %v2271_v26 = vadd.f32 %v2270_v58, %v2269_v45  ;;  %v2355_v41 = vadd.f32 %v2354_v36, %v2353_v17  ;;  %v2439_v12 = vadd.f32 %v2438_v33, %v2437_v13  ;;  %v3138_v14 = vsel %vm3136_vm9, %v3135_v16, %v2015_v8 }
 0x46f   : > { %2545 = vbcast.lane.b32.xlu1 %v5381_v24, 264  ;;  %v1758_v48 = vmul.f32 0.0, %v4655_v57  ;;  %v1759_v0 = vmul.f32 0.0, %v4667_v21  ;;  %v3141_v2 = vsel %vm3139_vm10, %v3138_v14, %v2101_v54  ;;  %v1878_v25 = vmul.f32 %v5382_v30, %v4686_v47 }
 0x470   : > { %2541 = vbcast.lane.b32.xlu0 %v5381_v24, 256  ;;  %v2356_v63 = vrot.slane %v2355_v41, 2  ;;  %v2440_v42 = vrot.slane %v2439_v12, 4  ;;  %v2272_v60 = vrot.slane %v2271_v26, 1  ;;  %v1879_v57 = vmul.f32 %v5382_v30, %v4688_v31  ;;  %v5386_v30 = vld [vmem:[#allocation28_spill] sm:$0xff] }
 0x471   : > { %v2112_v38 = vpop.permute.xlu0 %2111  ;;  %v4750_v44 = vadd.f32 %v1792_v40, %v1758_v48  ;;  %v4752_v21 = vadd.f32 %v1793_v43, %v1759_v0  ;;  %v2187_v19 = vadd.f32 %v2186_v18, %v2185_v10  ;;  %v1570_v8 = vmul.f32 %v1421_v62, %v4334_v3  ;;  %v5384_v43 = vld [vmem:[#allocation27_spill] sm:$0xff]  ;;  %v4773_v18 = vld [vmem:[#allocation6 + $0x18] sm:$0xff]  ;;  %v5385_v48 = vld [vmem:[#allocation20_spill] sm:$0xff] }
 0x472   : > { %v4746_v61 = vpop.permute.xlu1 %2115  ;;  %v2357_v45 = vadd.f32 %v2356_v63, %v2355_v41  ;;  %v2441_v17 = vadd.f32 %v2440_v42, %v2439_v12  ;;  %v1571_v31 = vmul.f32 %v1421_v62, %v4378_v56  ;;  %v1222_v9 = vcombine.high %v4653_v11, %v4653_v11 }
 0x473   : > { %2631 = vbcast.lane.b32.xlu1 %v5383_v51, 264  ;;  %v1844_v47 = vmul.f32 %v4673_v27, %v4750_v44  ;;  %v1845_v1 = vmul.f32 %v4684_v28, %v4752_v21  ;;  %v1964_v54 = vmul.f32 %v4540_v53, %v4704_v4  ;;  %v1642_v13 = vmul.f32 1.442695, %v1570_v8 }
 0x474   : > { %2627 = vbcast.lane.b32.xlu0 %v5383_v51, 256  ;;  %v2358_v10 = vrot.slane %v2357_v45, 1  ;;  %v2442_v16 = vrot.slane %v2441_v17, 2  ;;  %v2273_v33 = vadd.f32 %v2272_v60, %v2271_v26  ;;  %v1965_v27 = vmul.f32 %v4540_v53, %v4706_v34 }
 0x475   : > { %v2198_v58 = vpop.permute.xlu0 %2197  ;;  %v4768_v15 = vadd.f32 %v1878_v25, %v1844_v47  ;;  %v4770_v28 = vadd.f32 %v1879_v57, %v1845_v1  ;;  %3811 = vpow2.f32 %v1642_v13  ;;  %v1644_v11 = vmul.f32 1.442695, %v1571_v31 }
 0x476   : > { %v2202_v36 = vpop.permute.xlu1 %2201  ;;  %v2359_v62 = vadd.f32 %v2358_v10, %v2357_v45  ;;  %v2443_v40 = vadd.f32 %v2442_v16, %v2441_v17  ;;  %v1250_v34 = vrot.slane %v1222_v9, %v4298_v46  ;;  %v1252_v26 = vcombine.high %v4678_v20, %v4678_v20  ;;  %v3810_v17 = vpop.eup %3809 }
 0x477   : > { %2717 = vbcast.lane.b32.xlu1 %v5384_v43, 264  ;;  %v1930_v4 = vmul.f32 %v4694_v22, %v4768_v15  ;;  %v1931_v53 = vmul.f32 %v4702_v50, %v4770_v28  ;;  %v3144_v41 = vsel %vm3142_vm11, %v3141_v2, %v2187_v19  ;;  %v4788_v0 = vrot.slane %v4482_v49, %v5385_v48  ;;  %v1185_v22 = vld [vmem:[#allocation4 + $0x18] sm:$0xff] }
 0x478   : > { %2713 = vbcast.lane.b32.xlu0 %v5384_v43, 256  ;;  %v2444_v12 = vrot.slane %v2443_v40, 1  ;;  %3813 = vpow2.f32 %v1644_v11  ;;  %v3147_v63 = vsel %vm3145_vm12, %v3144_v41, %v2273_v33  ;;  %v2050_v50 = vmul.f32 %v4546_v6, %v4727_v39  ;;  %v5390_v41 = vld [vmem:[#allocation30_spill] sm:$0xff] }
 0x479   : > { %v2284_v24 = vpop.permute.xlu0 %2283  ;;  %v4793_v42 = vadd.f32 %v1964_v54, %v1930_v4  ;;  %v4796_v20 = vmul.f32 %v1185_v22, %v4773_v18  ;;  %v4799_v25 = vadd.f32 %v1965_v27, %v1931_v53  ;;  %v1425_v49 = vrot.slane %v1250_v34, %v4154_v23  ;;  %v5388_v54 = vld [vmem:[#allocation29_spill] sm:$0xff] }
 0x47a   : > { %v4784_v14 = vpop.permute.xlu1 %2287  ;;  %v2445_v2 = vadd.f32 %v2444_v12, %v2443_v40  ;;  %v1429_v60 = vrot.slane %v1252_v26, %v4154_v23  ;;  %v3150_v57 = vsel %vm3148_vm13, %v3147_v63, %v2359_v62  ;;  %v2051_v19 = vmul.f32 %v4546_v6, %v4729_v7  ;;  %v5387_v6 = vld [vmem:[#allocation22_spill] sm:$0xff]  ;;  %v5389_v40 = vld [vmem:[#allocation23_spill] sm:$0xff] }
 0x47b   : > { %2803 = vbcast.lane.b32.xlu1 %v5386_v30, 264  ;;  %v4807_v39 = vmul.f32 %v4558_v5, %v2112_v38  ;;  %v1254_v45 = vcombine.high %v1250_v34, %v1250_v34  ;;  %v1572_v1 = vmul.f32 %v1425_v49, %v4334_v3  ;;  %v1573_v31 = vmul.f32 %v1425_v49, %v4378_v56 }
 0x47c   : > { %2799 = vbcast.lane.b32.xlu0 %v5386_v30, 256  ;;  %v3153_v51 = vsel %vm3151_vm14, %v3150_v57, %v2445_v2  ;;  %v1574_v9 = vmul.f32 %v1429_v60, %v4334_v3  ;;  %v4821_v38 = vmul.f32 %v4558_v5, %v4746_v61  ;;  %v4824_v10 = vmul.f32 %v4568_v37, %v2198_v58 }
 0x47d   : > { %v4811_v8 = vpop.permute.xlu0 %2369  ;;  %v3180_v7 = vadd.f32 %v5387_v6, %v3153_v51  ;;  %v2016_v16 = vmul.f32 %v4717_v29, %v4793_v42  ;;  %v2017_v13 = vmul.f32 %v3810_v17, %v4799_v25  ;;  %v1646_v33 = vmul.f32 1.442695, %v1572_v1 }
 0x47e   : > { %v4813_v47 = vpop.permute.xlu1 %2373  ;;  %v1648_v27 = vmul.f32 1.442695, %v1573_v31  ;;  %v1575_v62 = vmul.f32 %v1429_v60, %v4378_v56  ;;  %v4833_v11 = vmul.f32 %v4568_v37, %v2202_v36  ;;  %v1650_v5 = vmul.f32 1.442695, %v1574_v9 }
 0x47f   : > { %2889 = vbcast.lane.b32.xlu1 %v5388_v54, 264  ;;  %v3212_v43 = vmul.f32 %v5389_v40, %v3180_v7  ;;  %v1433_v61 = vrot.slane %v1254_v45, %v4154_v23  ;;  %v4838_v29 = vmul.f32 %v4576_v52, %v2284_v24  ;;  %3815 = vpow2.f32 %v1646_v33  ;;  %v5391_v7 = vld [vmem:[#allocation31_spill] sm:$0xff] }
 0x480   : > { %2885 = vbcast.lane.b32.xlu0 %v5388_v54, 256  ;;  %v1652_v53 = vmul.f32 1.442695, %v1575_v62  ;;  %v4842_v34 = vrot.slane %v4796_v20, %v4154_v23  ;;  %3817 = vpow2.f32 %v1648_v27  ;;  %v2054_v12 = vadd.f32 %v2050_v50, %v2016_v16 }
 0x481   : > { %v1806_v58 = vpop.permute.xlu0 %1805  ;;  %v3590_v26 = vpack.c.bf16 %v3212_v43, %v3212_v43  ;;  %v2055_v22 = vadd.f32 %v2051_v19, %v2017_v13  ;;  %v1576_v24 = vmul.f32 %v1433_v61, %v4334_v3  ;;  %v1577_v63 = vmul.f32 %v1433_v61, %v4378_v56 }
 0x482   : > { %v1810_v4 = vpop.permute.xlu1 %1809  ;;  %v1822_v37 = vmul.f32 %v1806_v58, %v4750_v44  ;;  %v3812_v2 = vpop.eup %3811  ;;  %3819 = vpow2.f32 %v1650_v5  ;;  %v1360_v44 = vrot.slane %v4773_v18, %v4298_v46  ;;  %v4862_v9 = vmul.f32 %v4576_v52, %v4784_v14 }
 0x483   : > { %v1823_v36 = vmul.f32 %v1810_v4, %v4752_v21  ;;  %2975 = vbcast.lane.b32.xlu1 %v5390_v41, 264  ;;  %3232 = vst.msk [vmem:[#allocation9 + $0x8] sm:$0xf] %vm816_vm5, %v3590_v26  ;;  %3821 = vpow2.f32 %v1652_v53  ;;  %v1654_v57 = vmul.f32 1.442695, %v1576_v24  ;;  %v2102_v16 = vmul.f32 %v3812_v2, %v2054_v12  ;;  %v5392_v53 = vld [vmem:[#allocation33_spill] sm:$0xff] }
 0x484   : > { %v1826_v30 = vsel %vm824_vm4, %v1822_v37, 0.0  ;;  %2971 = vbcast.lane.b32.xlu0 %v5390_v41, 256  ;;  %v1656_v19 = vmul.f32 1.442695, %v1577_v63  ;;  %v4858_v1 = vrot.slane %v1360_v44, %v4298_v46  ;;  %v1368_v31 = vcombine.high %v1360_v44, %v1360_v44  ;;  %v5393_v37 = vld [vmem:[#allocation16_spill] sm:$0xff] }
 0x485   : > { %v1827_v49 = vsel %vm824_vm4, %v1823_v36, 0.0  ;;  %v1892_v50 = vpop.permute.xlu0 %1891  ;;  %v3814_v45 = vpop.eup %3813  ;;  %3823 = vpow2.f32 %v1654_v57  ;;  %v4879_v58 = vmul.f32 %v4788_v0, %v4811_v8  ;;  %v2140_v26 = vadd.f32 %v4807_v39, %v2102_v16 }
 0x486   : > { %v1828_v21 = vadd.f32 %v1827_v49, %v1826_v30  ;;  %v1896_v60 = vpop.permute.xlu1 %1895  ;;  %v1908_v17 = vmul.f32 %v1892_v50, %v4768_v15  ;;  %v2103_v54 = vmul.f32 %v3814_v45, %v2055_v22  ;;  %v1501_v15 = vrot.slane %v4858_v1, %v4154_v23 }
 0x487   : > { %v1909_v51 = vmul.f32 %v1896_v60, %v4770_v28  ;;  %2497 = vbcast.lane.b32.xlu1 %v5391_v7, 264  ;;  %3825 = vpow2.f32 %v1656_v19  ;;  %v4871_v14 = vrot.slane %v1368_v31, %v4298_v46  ;;  %v4885_v36 = vrot.slane %v4796_v20, %v5393_v37 }
 0x488   : > { %v1829_v6 = vrot.slane %v1828_v21, 4  ;;  %v1912_v13 = vsel %vm824_vm4, %v1908_v17, 0.0  ;;  %2493 = vbcast.lane.b32.xlu0 %v5391_v7, 256  ;;  %v1610_v5 = vmul.f32 %v1501_v15, %v4334_v3  ;;  %v1611_v61 = vmul.f32 %v1501_v15, %v4378_v56  ;;  %v5394_v17 = vld [vmem:[#allocation34_spill] sm:$0xff] }
 0x489   : > { %v1913_v33 = vsel %vm824_vm4, %v1909_v51, 0.0  ;;  %v1978_v62 = vpop.permute.xlu0 %1977  ;;  %v2141_v41 = vadd.f32 %v4821_v38, %v2103_v54  ;;  %v4897_v57 = vrot.slane %v4871_v14, %v4154_v23  ;;  %v1398_v31 = vcombine.high %v4858_v1, %v4858_v1  ;;  %v5399_v1 = vld [vmem:[#allocation38_spill] sm:$0xff] }
 0x48a   : > { %v1830_v28 = vadd.f32 %v1829_v6, %v1828_v21  ;;  %v1914_v27 = vadd.f32 %v1913_v33, %v1912_v13  ;;  %v1982_v52 = vpop.permute.xlu1 %1981  ;;  %v1994_v40 = vmul.f32 %v1978_v62, %v4793_v42  ;;  %v1722_v24 = vmul.f32 1.442695, %v1610_v5 }
 0x48b   : > { %v1995_v43 = vmul.f32 %v1982_v52, %v4799_v25  ;;  %2583 = vbcast.lane.b32.xlu1 %v5392_v53, 264  ;;  %v1724_v44 = vmul.f32 1.442695, %v1611_v61  ;;  %v4893_v21 = vmul.f32 %v4788_v0, %v4813_v47  ;;  %v5395_v61 = vld [vmem:[#allocation35_spill] sm:$0xff] }
 0x48c   : > { %v1915_v4 = vrot.slane %v1914_v27, 4  ;;  %v1998_v42 = vsel %vm824_vm4, %v1994_v40, 0.0  ;;  %2579 = vbcast.lane.b32.xlu0 %v5392_v53, 256  ;;  %v1831_v8 = vrot.slane %v1830_v28, 2  ;;  %v3816_v39 = vpop.eup %3815  ;;  %3827 = vpow2.f32 %v1722_v24 }
 0x48d   : > { %v1999_v25 = vsel %vm824_vm4, %v1995_v43, 0.0  ;;  %v2064_v30 = vpop.permute.xlu0 %2063  ;;  %v3818_v19 = vpop.eup %3817  ;;  %v2188_v51 = vmul.f32 %v3816_v39, %v2140_v26  ;;  %3829 = vpow2.f32 %v1724_v44 }
 0x48e   : > { %v1916_v63 = vadd.f32 %v1915_v4, %v1914_v27  ;;  %v2000_v2 = vadd.f32 %v1999_v25, %v1998_v42  ;;  %v2068_v49 = vpop.permute.xlu1 %2067  ;;  %v2080_v50 = vmul.f32 %v2064_v30, %v2054_v12  ;;  %v2189_v47 = vmul.f32 %v3818_v19, %v2141_v41 }
 0x48f   : > { %v2081_v60 = vmul.f32 %v2068_v49, %v2055_v22  ;;  %2669 = vbcast.lane.b32.xlu1 %v5394_v17, 264  ;;  %v3820_v12 = vpop.eup %3819  ;;  %v1832_v22 = vadd.f32 %v1831_v8, %v1830_v28  ;;  %v2226_v62 = vadd.f32 %v4824_v10, %v2188_v51  ;;  %v1612_v28 = vmul.f32 %v4897_v57, %v4334_v3 }
 0x490   : > { %v1917_v38 = vrot.slane %v1916_v63, 2  ;;  %v2001_v45 = vrot.slane %v2000_v2, 4  ;;  %v2084_v6 = vsel %vm824_vm4, %v2080_v50, 0.0  ;;  %2665 = vbcast.lane.b32.xlu0 %v5394_v17, 256  ;;  %v3822_v33 = vpop.eup %3821  ;;  %v2227_v52 = vadd.f32 %v4833_v11, %v2189_v47 }
 0x491   : > { %v2085_v0 = vsel %vm824_vm4, %v2081_v60, 0.0  ;;  %v2150_v54 = vpop.permute.xlu0 %2149  ;;  %v1833_v10 = vrot.slane %v1832_v22, 1 }
 0x492   : > { %v2002_v7 = vadd.f32 %v2001_v45, %v2000_v2  ;;  %v2086_v16 = vadd.f32 %v2085_v0, %v2084_v6  ;;  %v2154_v13 = vpop.permute.xlu1 %2153  ;;  %v2166_v15 = vmul.f32 %v2150_v54, %v2140_v26  ;;  %v1918_v40 = vadd.f32 %v1917_v38, %v1916_v63  ;;  %v3824_v25 = vpop.eup %3823  ;;  %v5396_v38 = vld [vmem:[#allocation32_spill] sm:$0xff] }
 0x493   : > { %v2167_v27 = vmul.f32 %v2154_v13, %v2141_v41  ;;  %2755 = vbcast.lane.b32.xlu1 %v5395_v61, 264  ;;  %v2274_v26 = vmul.f32 %v3820_v12, %v2226_v62  ;;  %v2275_v42 = vmul.f32 %v3822_v33, %v2227_v52  ;;  %v1726_v45 = vmul.f32 1.442695, %v1612_v28 }
 0x494   : > { %v2003_v43 = vrot.slane %v2002_v7, 2  ;;  %v2087_v5 = vrot.slane %v2086_v16, 4  ;;  %v2170_v4 = vsel %vm824_vm4, %v2166_v15, 0.0  ;;  %2751 = vbcast.lane.b32.xlu0 %v5395_v61, 256  ;;  %v3826_v2 = vpop.eup %3825  ;;  %v1919_v50 = vrot.slane %v1918_v40, 1 }
 0x495   : > { %v2171_v53 = vsel %vm824_vm4, %v2167_v27, 0.0  ;;  %v2236_v8 = vpop.permute.xlu0 %2235  ;;  %v2312_v44 = vadd.f32 %v4838_v29, %v2274_v26  ;;  %v2313_v39 = vadd.f32 %v4862_v9, %v2275_v42  ;;  %v1400_v9 = vcombine.high %v4871_v14, %v4871_v14 }
 0x496   : > { %v2004_v41 = vadd.f32 %v2003_v43, %v2002_v7  ;;  %v2088_v11 = vadd.f32 %v2087_v5, %v2086_v16  ;;  %v2172_v24 = vadd.f32 %v2171_v53, %v2170_v4  ;;  %v2240_v63 = vpop.permute.xlu1 %2239  ;;  %v2252_v30 = vmul.f32 %v2236_v8, %v2226_v62  ;;  %v5397_v43 = vld [vmem:[#allocation36_spill] sm:$0xff] }
 0x497   : > { %v2253_v49 = vmul.f32 %v2240_v63, %v2227_v52  ;;  %3061 = vbcast.lane.b32.xlu1 %v5396_v38, 264  ;;  %v2360_v6 = vmul.f32 %v3824_v25, %v2312_v44  ;;  %v2361_v0 = vmul.f32 %v3826_v2, %v2313_v39  ;;  %v1834_v54 = vadd.f32 %v1833_v10, %v1832_v22  ;;  %v5398_v2 = vld [vmem:[#allocation37_spill] sm:$0xff] }
 0x498   : > { %v2089_v60 = vrot.slane %v2088_v11, 2  ;;  %v2173_v19 = vrot.slane %v2172_v24, 4  ;;  %v2256_v17 = vsel %vm824_vm4, %v2252_v30, 0.0  ;;  %3057 = vbcast.lane.b32.xlu0 %v5396_v38, 256  ;;  %v2005_v47 = vrot.slane %v2004_v41, 1 }
 0x499   : > { %v2257_v51 = vsel %vm824_vm4, %v2253_v49, 0.0  ;;  %v2322_v29 = vpop.permute.xlu0 %2321  ;;  %v1920_v27 = vadd.f32 %v1919_v50, %v1918_v40  ;;  %v4923_v5 = vadd.f32 %v4879_v58, %v2360_v6  ;;  %v4929_v14 = vadd.f32 %v4893_v21, %v2361_v0  ;;  %v3828_v22 = vpop.eup %3827 }
 0x49a   : > { %v2174_v12 = vadd.f32 %v2173_v19, %v2172_v24  ;;  %v2258_v7 = vadd.f32 %v2257_v51, %v2256_v17  ;;  %v2326_v16 = vpop.permute.xlu1 %2325  ;;  %v2090_v13 = vadd.f32 %v2089_v60, %v2088_v11  ;;  %v2338_v33 = vmul.f32 %v2322_v29, %v2312_v44  ;;  %v3830_v10 = vpop.eup %3829 }
 0x49b   : > { %v2339_v15 = vmul.f32 %v2326_v16, %v2313_v39  ;;  %2841 = vbcast.lane.b32.xlu1 %v5397_v43, 264  ;;  %3831 = vpow2.f32 %v1726_v45  ;;  %v2006_v4 = vadd.f32 %v2005_v47, %v2004_v41  ;;  %v1613_v8 = vmul.f32 %v4897_v57, %v4378_v56 }
 0x49c   : > { %v2175_v62 = vrot.slane %v2174_v12, 2  ;;  %v2259_v52 = vrot.slane %v2258_v7, 4  ;;  %v2342_v61 = vsel %vm824_vm4, %v2338_v33, 0.0  ;;  %2837 = vbcast.lane.b32.xlu0 %v5397_v43, 256  ;;  %v2091_v58 = vrot.slane %v2090_v13, 1 }
 0x49d   : > { %v2343_v28 = vsel %vm824_vm4, %v2339_v15, 0.0  ;;  %v2408_v42 = vpop.permute.xlu0 %2407  ;;  %v2448_v41 = vmul.f32 %v3828_v22, %v4711_v55  ;;  %v2449_v30 = vmul.f32 %v3830_v10, %v4714_v59  ;;  %v1728_v39 = vmul.f32 1.442695, %v1613_v8 }
 0x49e   : > { %v2176_v40 = vadd.f32 %v2175_v62, %v2174_v12  ;;  %v2260_v53 = vadd.f32 %v2259_v52, %v2258_v7  ;;  %v2344_v26 = vadd.f32 %v2343_v28, %v2342_v61  ;;  %v2412_v25 = vpop.permute.xlu1 %2411  ;;  %v2424_v11 = vmul.f32 %v2408_v42, %v4923_v5  ;;  %v5400_v42 = vld [vmem:[#allocation39_spill] sm:$0xff] }
 0x49f   : > { %v2425_v24 = vmul.f32 %v2412_v25, %v4929_v14  ;;  %2927 = vbcast.lane.b32.xlu1 %v5398_v2, 264  ;;  %v1509_v57 = vrot.slane %v1398_v31, %v4154_v23  ;;  %3833 = vpow2.f32 %v1728_v39  ;;  %v3134_v6 = vsel %vm1076_vm6, %v1834_v54, %v1920_v27 }
 0x4a0   : > { %v2261_v63 = vrot.slane %v2260_v53, 2  ;;  %v2345_v21 = vrot.slane %v2344_v26, 4  ;;  %v2428_v49 = vsel %vm824_vm4, %v2424_v11, 0.0  ;;  %2923 = vbcast.lane.b32.xlu0 %v5398_v2, 256  ;;  %v2177_v50 = vrot.slane %v2176_v40, 1  ;;  %v3899_v11 = vld [vmem:[#allocation8 + $0x18] sm:$0xff] }
 0x4a1   : > { %v2429_v44 = vsel %vm824_vm4, %v2425_v24, 0.0  ;;  %v2467_v45 = vpop.permute.xlu0 %2466  ;;  %v1614_v51 = vmul.f32 %v1509_v57, %v4334_v3  ;;  %v1615_v16 = vmul.f32 %v1509_v57, %v4378_v56  ;;  %v1513_v54 = vrot.slane %v1400_v9, %v4154_v23 }
 0x4a2   : > { %v2262_v60 = vadd.f32 %v2261_v63, %v2260_v53  ;;  %v2346_v19 = vadd.f32 %v2345_v21, %v2344_v26  ;;  %v2430_v38 = vadd.f32 %v2429_v44, %v2428_v49  ;;  %v2471_v55 = vpop.permute.xlu1 %2470  ;;  %v2482_v59 = vmul.f32 %v4842_v34, %v2467_v45  ;;  %v4976_v45 = vld [vmem:[%s4103_s29] ss:$0 sm:$0xff] }
 0x4a3   : > { %v2483_v17 = vmul.f32 %v4842_v34, %v2471_v55  ;;  %3013 = vbcast.lane.b32.xlu1 %v5399_v1, 264  ;;  %v1730_v29 = vmul.f32 1.442695, %v1614_v51  ;;  %v2092_v34 = vadd.f32 %v2091_v58, %v2090_v13  ;;  %v3137_v27 = vsel %vm3136_vm9, %v3134_v6, %v2006_v4  ;;  %v3901_v55 = vld [vmem:[#allocation4] sm:$0xff] }
 0x4a4   : > { %v2263_v0 = vrot.slane %v2262_v60, 1  ;;  %v2347_v47 = vrot.slane %v2346_v19, 2  ;;  %v2431_v12 = vrot.slane %v2430_v38, 4  ;;  %3009 = vbcast.lane.b32.xlu0 %v5399_v1, 256  ;;  %v4951_v31 = vadd.f32 %v2482_v59, %v2448_v41 }
 0x4a5   : > { %v4953_v7 = vadd.f32 %v2483_v17, %v2449_v30  ;;  %v2178_v52 = vadd.f32 %v2177_v50, %v2176_v40  ;;  %v2553_v43 = vpop.permute.xlu0 %2552  ;;  %3835 = vpow2.f32 %v1730_v29  ;;  %v1732_v61 = vmul.f32 1.442695, %v1615_v16 }
 0x4a6   : > { %v2348_v33 = vadd.f32 %v2347_v47, %v2346_v19  ;;  %v2432_v15 = vadd.f32 %v2431_v12, %v2430_v38  ;;  %v2557_v62 = vpop.permute.xlu1 %2556  ;;  %v2264_v28 = vadd.f32 %v2263_v0, %v2262_v60  ;;  %v2568_v26 = vmul.f32 %v4885_v36, %v2553_v43  ;;  %v5401_v0 = vld [vmem:[#allocation21_spill] sm:$0xff]  ;;  %v5403_v12 = vld [vmem:[#allocation40_spill] sm:$0xff] }
 0x4a7   : > { %3099 = vbcast.lane.b32.xlu1 %v5400_v42, 264  ;;  %3837 = vpow2.f32 %v1732_v61  ;;  %v1616_v13 = vmul.f32 %v1513_v54, %v4334_v3  ;;  %v1617_v9 = vmul.f32 %v1513_v54, %v4378_v56  ;;  %v1353_v4 = vcombine.high %v4773_v18, %v4773_v18 }
 0x4a8   : > { %v2349_v22 = vrot.slane %v2348_v33, 1  ;;  %v2433_v53 = vrot.slane %v2432_v15, 2  ;;  %3095 = vbcast.lane.b32.xlu0 %v5400_v42, 256  ;;  %v3832_v40 = vpop.eup %3831  ;;  %v3140_v25 = vsel %vm3139_vm10, %v3137_v27, %v2092_v34  ;;  %v3104_v24 = vrot.slane %v3899_v11, %v5385_v48 }
 0x4a9   : > { %v2639_v63 = vpop.permute.xlu0 %2638  ;;  %v2534_v21 = vmul.f32 %v3832_v40, %v4951_v31  ;;  %v1734_v2 = vmul.f32 1.442695, %v1616_v13  ;;  %v1736_v41 = vmul.f32 1.442695, %v1617_v9  ;;  %v3143_v30 = vsel %vm3142_vm11, %v3140_v25, %v2178_v52 }
 0x4aa   : > { %v2434_v10 = vadd.f32 %v2433_v53, %v2432_v15  ;;  %v2643_v58 = vpop.permute.xlu1 %2642  ;;  %v2350_v8 = vadd.f32 %v2349_v22, %v2348_v33  ;;  %v1367_v18 = vrot.slane %v1353_v4, %v4298_v46  ;;  %v3146_v44 = vsel %vm3145_vm12, %v3143_v30, %v2264_v28 }
 0x4ab   : > { %3110 = vbcast.lane.b32.xlu1 %v3104_v24, 264  ;;  %v4971_v39 = vadd.f32 %v2568_v26, %v2534_v21  ;;  %3839 = vpow2.f32 %v1734_v2  ;;  %v3174_v59 = vmul.f32 %v3901_v55, %v4976_v45  ;;  %v2569_v17 = vmul.f32 %v4885_v36, %v2557_v62 }
 0x4ac   : > { %v2435_v49 = vrot.slane %v2434_v10, 1  ;;  %3106 = vbcast.lane.b32.xlu0 %v3104_v24, 256  ;;  %3841 = vpow2.f32 %v1736_v41  ;;  %v1383_v60 = vrot.slane %v1367_v18, %v4298_v46  ;;  %v1369_v19 = vcombine.high %v1367_v18, %v1367_v18  ;;  %v3834_v6 = vpop.eup %3833 }
 0x4ad   : > { %v3149_v38 = vsel %vm3148_vm13, %v3146_v44, %v2350_v8  ;;  %v2725_v51 = vpop.permute.xlu0 %2724  ;;  %v5402_v47 = vunpack.c.l.bf16 %v5401_v0  ;;  %v2651_v15 = vrot.slane %v4796_v20, %v4164_v32  ;;  %v2535_v54 = vmul.f32 %v3834_v6, %v4953_v7  ;;  %v3705_v44 = vld [vmem:[%s4108_s6 + $0x18] sm:$0xff]  }
 0x4ae   : > { %v2436_v57 = vadd.f32 %v2435_v49, %v2434_v10  ;;  %v2729_v50 = vpop.permute.xlu1 %2728  ;;  %v1517_v16 = vrot.slane %v1383_v60, %v4154_v23  ;;  %v4986_v34 = vrot.slane %v1369_v19, %v4298_v46  ;;  %v1399_v36 = vcombine.high %v1383_v60, %v1383_v60  ;;  %3646 = vmatprep.subr.bf16.mxu0 %v3705_v44 }
 0x4af   : > { %v3206_v1 = vmul.f32 %v5403_v12, %v5402_v47  ;;  %v2654_v28 = vmul.f32 %v2651_v15, %v2639_v63  ;;  %v4997_v53 = vadd.f32 %v2569_v17, %v2535_v54  ;;  %v2655_v25 = vmul.f32 %v2651_v15, %v2643_v58  ;;  %3647 = vmatpush3.bf16.msra.mxu0 %v3705_v44 }
 0x4b0   : > { %v3152_v29 = vsel %vm3151_vm14, %v3149_v38, %v2436_v57  ;;  %v1618_v27 = vmul.f32 %v1517_v16, %v4334_v3  ;;  %v1619_v52 = vmul.f32 %v1517_v16, %v4378_v56  ;;  %v1521_v43 = vrot.slane %v4986_v34, %v4154_v23  ;;  %v3706_v57 = vld [vmem:[%s4108_s6 + $0x10] sm:$0xff]   ;;  %v5015_v38 = vld [vmem:[#allocation6 + $0x8] sm:$0xff] }
 0x4b1   : > { %v3178_v33 = vadd.f32 %v3174_v59, %v3152_v29  ;;  %v2811_v22 = vpop.permute.xlu0 %2810  ;;  %v1525_v26 = vrot.slane %v1399_v36, %v4154_v23  ;;  %v2737_v2 = vrot.slane %v4796_v20, %v4174_v35  ;;  %3648 = vmatprep.subr.bf16.mxu0 %v3706_v57  ;;  %v3707_v16 = vld [vmem:[%s4108_s6 + $0x8] sm:$0xff]  }
 0x4b2   : > { %v4991_v62 = vpop.permute.xlu1 %2814  ;;  %v3836_v42 = vpop.eup %3835  ;;  %v1738_v13 = vmul.f32 1.442695, %v1618_v27  ;;  %v1740_v9 = vmul.f32 1.442695, %v1619_v52  ;;  %v1620_v4 = vmul.f32 %v1521_v43, %v4334_v3  ;;  %v1621_v11 = vmul.f32 %v1521_v43, %v4378_v56  ;;  %v5404_v27 = vld [vmem:[#allocation17_spill] sm:$0xff] }
 0x4b3   : > { %v3210_v61 = vmul.f32 %v3206_v1, %v3178_v33  ;;  %v2620_v10 = vmul.f32 %v3836_v42, %v4971_v39  ;;  %v1622_v21 = vmul.f32 %v1525_v26, %v4334_v3  ;;  %v1623_v18 = vmul.f32 %v1525_v26, %v4378_v56  ;;  %3649 = vmatpush3.bf16.msra.mxu0 %v3706_v57 }
 0x4b4   : > { %v3838_v24 = vpop.eup %3837  ;;  %3843 = vpow2.f32 %v1738_v13  ;;  %v1742_v63 = vmul.f32 1.442695, %v1620_v4  ;;  %v1744_v49 = vmul.f32 1.442695, %v1621_v11  ;;  %v2740_v60 = vmul.f32 %v2737_v2, %v2725_v51  ;;  %3650 = vmatprep.subr.bf16.mxu0 %v3707_v16  ;;  %v5405_v13 = vld [vmem:[#allocation18_spill] sm:$0xff] }
 0x4b5   : > { %v3588_v40 = vpack.c.bf16 %v3210_v61, %v3210_v61  ;;  %v2897_v41 = vpop.permute.xlu0 %2896  ;;  %v5009_v58 = vadd.f32 %v2654_v28, %v2620_v10  ;;  %v2621_v30 = vmul.f32 %v3838_v24, %v4997_v53  ;;  %3845 = vpow2.f32 %v1740_v9  ;;  %v3708_v28 = vld [vmem:[%s4108_s6] sm:$0xff]   ;;  %v5406_v10 = vld [vmem:[#allocation19_spill] sm:$0xff]  ;;  %s3963_s6 = smov [#allocation10]  }
 0x4b6   : > { %v5003_v8 = vpop.permute.xlu1 %2900  ;;  %v2741_v59 = vmul.f32 %v2737_v2, %v2729_v50  ;;  %3847 = vpow2.f32 %v1742_v63  ;;  %v1746_v6 = vmul.f32 1.442695, %v1622_v21  ;;  %v1748_v29 = vmul.f32 1.442695, %v1623_v18  ;;  %s3349_s26 = sshll.u32 %s3963_s6, 4  ;;  %s3350_s26 = int_to_ptr.vmem [resolvable:$true] %s3349_s26 }
 0x4b7   : > { %3230 = vst.msk [vmem:[#allocation9] sm:$0xf] %vm816_vm5, %v3588_v40  ;;  %v2659_v19 = vadd.f32 %v2655_v25, %v2621_v30  ;;  %3849 = vpow2.f32 %v1744_v49  ;;  %v1262_v51 = vrot.slane %v5015_v38, %v4298_v46  ;;  %v2823_v52 = vrot.slane %v4796_v20, %v5404_v27  ;;  %3651 = vmatpush3.bf16.msra.mxu0 %v3707_v16  ;;  %s3906_s27 = scalar_lea.vmem %s3350_s26, 512  ;;  %p3913_p11 = scmp.lt.s32.totalorder %s3350_s26, %s3350_s26 }
 0x4b8   : > { %v3840_v55 = vpop.eup %3839  ;;  %3851 = vpow2.f32 %v1746_v6  ;;  %v2909_v9 = vrot.slane %v4796_v20, %v5405_v13  ;;  %3652 = vmatprep.subr.bf16.mxu0 %v3708_v28  ;;  %p3907_p8 = scmp.ne.s32.totalorder %s3350_s26, %s3906_s27  ;;  %p3914_p12 = scmp.lt.s32.totalorder %s3906_s27, %s3906_s27 }
 0x4b9   : > { %v3842_v0 = vpop.eup %3841  ;;  %v5017_v47 = vpop.permute.xlu0 %2982  ;;  %v2706_v12 = vmul.f32 %v3840_v55, %v5009_v58  ;;  %3853 = vpow2.f32 %v1748_v29  ;;  %v5032_v61 = vrot.slane %v1262_v51, %v4298_v46  ;;  %v2826_v42 = vmul.f32 %v2823_v52, %v2811_v22 }
 0x4ba   : > { %v2987_v17 = vpop.permute.xlu1 %2986  ;;  %v2707_v1 = vmul.f32 %v3842_v0, %v2659_v19  ;;  %v2827_v25 = vmul.f32 %v2823_v52, %v4991_v62  ;;  %v1270_v49 = vcombine.high %v1262_v51, %v1262_v51  ;;  %v2913_v62 = vmul.f32 %v2909_v9, %v5003_v8  ;;  %p3915_p13 = por %p3914_p12, %p3913_p11 }
 0x4bb   : > { %v5023_v50 = vadd.f32 %v2740_v60, %v2706_v12  ;;  %v1437_v30 = vrot.slane %v5032_v61, %v4154_v23  ;;  %v2912_v60 = vmul.f32 %v2909_v9, %v2897_v41  ;;  %3653 = vmatpush3.bf16.msra.mxu0 %v3708_v28 }
 0x4bc   : > { %v5025_v15 = vadd.f32 %v2741_v59, %v2707_v1 }
 0x4bd   : > { %v2505_v54 = vpop.permute.xlu0 %2504  ;;  %v1579_v41 = vmul.f32 %v1437_v30, %v4378_v56 }
 0x4be   : > { %v2509_v33 = vpop.permute.xlu1 %2508  ;;  %v2512_v43 = vmul.f32 %v2505_v54, %v4951_v31  ;;  %v2995_v31 = vrot.slane %v4796_v20, %v5406_v10 }
 0x4bf   : > { %v2513_v36 = vmul.f32 %v2509_v33, %v4953_v7 }
 0x4c0   : > { %v2523_v7 = vsel %vm824_vm4, %v2512_v43, 0.0 }
 0x4c1   : > { %v2524_v26 = vsel %vm824_vm4, %v2513_v36, 0.0  ;;  %v3844_v40 = vpop.eup %3843  ;;  %v2591_v24 = vpop.permute.xlu0 %2590 }
 0x4c2   : > { %v2595_v4 = vpop.permute.xlu1 %2594  ;;  %v2525_v11 = vadd.f32 %v2524_v26, %v2523_v7  ;;  %v3846_v21 = vpop.eup %3845  ;;  %v2598_v22 = vmul.f32 %v2591_v24, %v4971_v39  ;;  %v2792_v2 = vmul.f32 %v3844_v40, %v5023_v50  ;;  %v2998_v26 = vmul.f32 %v2995_v31, %v5017_v47 }
 0x4c3   : > { %v2599_v63 = vmul.f32 %v2595_v4, %v4997_v53  ;;  %v2793_v57 = vmul.f32 %v3846_v21, %v5025_v15  ;;  %v2999_v53 = vmul.f32 %v2995_v31, %v2987_v17  ;;  %v3848_v6 = vpop.eup %3847  ;;  %v5057_v17 = vrot.slane %v1270_v49, %v4298_v46 }
 0x4c4   : > { %v2526_v18 = vrot.slane %v2525_v11, 4  ;;  %v2609_v55 = vsel %vm824_vm4, %v2598_v22, 0.0  ;;  %v5051_v39 = vadd.f32 %v2826_v42, %v2792_v2  ;;  %v3850_v8 = vpop.eup %3849 }
 0x4c5   : > { %v2610_v44 = vsel %vm824_vm4, %v2599_v63, 0.0  ;;  %v2677_v1 = vpop.permute.xlu0 %2676  ;;  %v2831_v51 = vadd.f32 %v2827_v25, %v2793_v57  ;;  %v3852_v9 = vpop.eup %3851  ;;  %v1441_v47 = vrot.slane %v5057_v17, %v4154_v23 }
 0x4c6   : > { %v2681_v59 = vpop.permute.xlu1 %2680  ;;  %v2527_v0 = vadd.f32 %v2526_v18, %v2525_v11  ;;  %v2611_v12 = vadd.f32 %v2610_v44, %v2609_v55  ;;  %v2684_v16 = vmul.f32 %v2677_v1, %v5009_v58  ;;  %v2878_v33 = vmul.f32 %v3848_v6, %v5051_v39  ;;  %v3854_v31 = vpop.eup %3853 }
 0x4c7   : > { %v2685_v29 = vmul.f32 %v2681_v59, %v2659_v19  ;;  %v2879_v43 = vmul.f32 %v3850_v8, %v2831_v51  ;;  %v1578_v58 = vmul.f32 %v1437_v30, %v4334_v3  ;;  %v1660_v30 = vmul.f32 1.442695, %v1579_v41 }
 0x4c8   : > { %v2528_v54 = vrot.slane %v2527_v0, 2  ;;  %v2612_v36 = vrot.slane %v2611_v12, 4  ;;  %v2695_v19 = vsel %vm824_vm4, %v2684_v16, 0.0  ;;  %v2916_v42 = vadd.f32 %v2912_v60, %v2878_v33  ;;  %v5080_v33 = vld [vmem:[#allocation4 + $0x8] sm:$0xff] }
 0x4c9   : > { %v2696_v52 = vsel %vm824_vm4, %v2685_v29, 0.0  ;;  %v2763_v25 = vpop.permute.xlu0 %2762  ;;  %v2917_v63 = vadd.f32 %v2913_v62, %v2879_v43  ;;  %v1300_v1 = vcombine.high %v5032_v61, %v5032_v61  ;;  %3855 = vpow2.f32 %v1660_v30 }
 0x4ca   : > { %v2767_v28 = vpop.permute.xlu1 %2766  ;;  %v2529_v7 = vadd.f32 %v2528_v54, %v2527_v0  ;;  %v2613_v4 = vadd.f32 %v2612_v36, %v2611_v12  ;;  %v2697_v40 = vadd.f32 %v2696_v52, %v2695_v19  ;;  %v2770_v24 = vmul.f32 %v2763_v25, %v5023_v50 }
 0x4cb   : > { %v2771_v11 = vmul.f32 %v2767_v28, %v5025_v15  ;;  %v2964_v21 = vmul.f32 %v3852_v9, %v2916_v42  ;;  %v2965_v15 = vmul.f32 %v3854_v31, %v2917_v63  ;;  %v1658_v0 = vmul.f32 1.442695, %v1578_v58 }
 0x4cc   : > { %v2614_v22 = vrot.slane %v2613_v4, 2  ;;  %v2698_v2 = vrot.slane %v2697_v40, 4  ;;  %v2530_v18 = vrot.slane %v2529_v7, 1  ;;  %v2781_v44 = vsel %vm824_vm4, %v2770_v24, 0.0 }
 0x4cd   : > { %v2782_v49 = vsel %vm824_vm4, %v2771_v11, 0.0  ;;  %v5071_v60 = vadd.f32 %v2998_v26, %v2964_v21  ;;  %v5073_v59 = vpop.permute.xlu0 %3068  ;;  %v5075_v6 = vadd.f32 %v2999_v53, %v2965_v15  ;;  %v1581_v12 = vmul.f32 %v1441_v47, %v4378_v56 }
 0x4ce   : > { %v5069_v57 = vpop.permute.xlu1 %3072  ;;  %v2615_v50 = vadd.f32 %v2614_v22, %v2613_v4  ;;  %v2699_v62 = vadd.f32 %v2698_v2, %v2697_v40  ;;  %v2783_v55 = vadd.f32 %v2782_v49, %v2781_v44  ;;  %v2531_v41 = vadd.f32 %v2530_v18, %v2529_v7 }
 0x4cf   : > { %v5084_v36 = vmul.f32 %v5080_v33, %v5015_v38  ;;  %v1580_v53 = vmul.f32 %v1441_v47, %v4334_v3  ;;  %3857 = vpow2.f32 %v1658_v0  ;;  %v1664_v58 = vmul.f32 1.442695, %v1581_v12 }
 0x4d0   : > { %v2616_v29 = vrot.slane %v2615_v50, 1  ;;  %v2700_v8 = vrot.slane %v2699_v62, 2  ;;  %v2784_v16 = vrot.slane %v2783_v55, 4  ;;  %v1445_v9 = vrot.slane %v1300_v1, %v4154_v23 }
 0x4d1   : > { %v2849_v19 = vpop.permute.xlu0 %2848  ;;  %v1662_v21 = vmul.f32 1.442695, %v1580_v53  ;;  %v1302_v47 = vcombine.high %v5057_v17, %v5057_v17  ;;  %3859 = vpow2.f32 %v1664_v58  ;;  %v2475_v0 = vrot.slane %v5084_v36, %v4154_v23 }
 0x4d2   : > { %v2853_v54 = vpop.permute.xlu1 %2852  ;;  %v2617_v52 = vadd.f32 %v2616_v29, %v2615_v50  ;;  %v2701_v43 = vadd.f32 %v2700_v8, %v2699_v62  ;;  %v2785_v26 = vadd.f32 %v2784_v16, %v2783_v55  ;;  %v2856_v61 = vmul.f32 %v2849_v19, %v5051_v39 }
 0x4d3   : > { %v2857_v28 = vmul.f32 %v2853_v54, %v2831_v51  ;;  %v1255_v39 = vcombine.high %v5015_v38, %v5015_v38  ;;  %v1582_v18 = vmul.f32 %v1445_v9, %v4334_v3  ;;  %v1583_v44 = vmul.f32 %v1445_v9, %v4378_v56 }
 0x4d4   : > { %v3155_v7 = vsel %vm1076_vm6, %v2531_v41, %v2617_v52  ;;  %v2702_v4 = vrot.slane %v2701_v43, 1  ;;  %v2786_v40 = vrot.slane %v2785_v26, 2  ;;  %v2867_v11 = vsel %vm824_vm4, %v2856_v61, 0.0 }
 0x4d5   : > { %v2868_v25 = vsel %vm824_vm4, %v2857_v28, 0.0  ;;  %3861 = vpow2.f32 %v1662_v21  ;;  %v1666_v41 = vmul.f32 1.442695, %v1582_v18  ;;  %v1668_v54 = vmul.f32 1.442695, %v1583_v44 }
 0x4d6   : > { %v2939_v24 = vpop.permute.xlu1 %2938  ;;  %v2703_v51 = vadd.f32 %v2702_v4, %v2701_v43  ;;  %v2787_v31 = vadd.f32 %v2786_v40, %v2785_v26  ;;  %v2869_v22 = vadd.f32 %v2868_v25, %v2867_v11  ;;  %v2935_v2 = vpop.permute.xlu0 %2934  ;;  %v1269_v53 = vrot.slane %v1255_v39, %v4298_v46 }
 0x4d7   : > { %v2943_v49 = vmul.f32 %v2939_v24, %v2917_v63  ;;  %v2942_v30 = vmul.f32 %v2935_v2, %v2916_v42  ;;  %v1449_v42 = vrot.slane %v1302_v47, %v4154_v23  ;;  %v1401_v9 = vcombine.high %v4986_v34, %v4986_v34 }
 0x4d8   : > { %v3157_v15 = vsel %vm3136_vm9, %v3155_v7, %v2703_v51  ;;  %v2788_v50 = vrot.slane %v2787_v31, 1  ;;  %v2870_v62 = vrot.slane %v2869_v22, 4  ;;  %v3856_v7 = vpop.eup %3855  ;;  %3863 = vpow2.f32 %v1668_v54 }
 0x4d9   : > { %v2954_v17 = vsel %vm824_vm4, %v2943_v49, 0.0  ;;  %v2953_v55 = vsel %vm824_vm4, %v2942_v30, 0.0  ;;  %v1585_v58 = vmul.f32 %v1449_v42, %v4378_v56  ;;  %v2447_v47 = vmul.f32 %v3856_v7, %v4929_v14 }
 0x4da   : > { %v3025_v38 = vpop.permute.xlu1 %3024  ;;  %v2789_v63 = vadd.f32 %v2788_v50, %v2787_v31  ;;  %v2871_v12 = vadd.f32 %v2870_v62, %v2869_v22  ;;  %v2955_v1 = vadd.f32 %v2954_v17, %v2953_v55  ;;  %v3021_v29 = vpop.permute.xlu0 %3020  ;;  %v5115_v39 = vrot.slane %v1269_v53, %v4298_v46 }
 0x4db   : > { %v3029_v8 = vmul.f32 %v3025_v38, %v5075_v6  ;;  %v3028_v16 = vmul.f32 %v3021_v29, %v5071_v60  ;;  %3865 = vpow2.f32 %v1666_v41  ;;  %v1584_v18 = vmul.f32 %v1449_v42, %v4334_v3 }
 0x4dc   : > { %v3159_v52 = vsel %vm3139_vm10, %v3157_v15, %v2789_v63  ;;  %v2872_v43 = vrot.slane %v2871_v12, 2  ;;  %v2956_v26 = vrot.slane %v2955_v1, 4  ;;  %v3858_v51 = vpop.eup %3857  ;;  %v1529_v44 = vrot.slane %v1401_v9, %v4154_v23 }
 0x4dd   : > { %v3040_v19 = vsel %vm824_vm4, %v3029_v8, 0.0  ;;  %v3039_v28 = vsel %vm824_vm4, %v3028_v16, 0.0  ;;  %v2446_v34 = vmul.f32 %v3858_v51, %v4923_v5  ;;  %v1672_v17 = vmul.f32 1.442695, %v1585_v58 }
 0x4de   : > { %v2460_v61 = vpop.permute.xlu1 %2459  ;;  %v2873_v4 = vadd.f32 %v2872_v43, %v2871_v12  ;;  %v2957_v40 = vadd.f32 %v2956_v26, %v2955_v1  ;;  %v3041_v25 = vadd.f32 %v3040_v19, %v3039_v28  ;;  %v2456_v11 = vpop.permute.xlu0 %2455  ;;  %v2561_v55 = vrot.slane %v5084_v36, %v5393_v37 }
 0x4df   : > { %v2481_v24 = vmul.f32 %v2475_v0, %v2460_v61  ;;  %v2480_v21 = vmul.f32 %v2475_v0, %v2456_v11  ;;  %v1453_v0 = vrot.slane %v5115_v39, %v4154_v23  ;;  %v1271_v5 = vcombine.high %v1269_v53, %v1269_v53  ;;  %v3860_v63 = vpop.eup %3859 }
 0x4e0   : > { %v2874_v31 = vrot.slane %v2873_v4, 1  ;;  %v2958_v22 = vrot.slane %v2957_v40, 2  ;;  %v3042_v2 = vrot.slane %v3041_v25, 4  ;;  %v1670_v41 = vmul.f32 1.442695, %v1584_v18 }
 0x4e1   : > { %v5118_v30 = vadd.f32 %v2481_v24, %v2447_v47  ;;  %v5124_v38 = vadd.f32 %v2480_v21, %v2446_v34  ;;  %v1624_v54 = vmul.f32 %v1529_v44, %v4334_v3  ;;  %3867 = vpow2.f32 %v1672_v17 }
 0x4e2   : > { %v2546_v49 = vpop.permute.xlu1 %2545  ;;  %v2875_v15 = vadd.f32 %v2874_v31, %v2873_v4  ;;  %v2959_v14 = vadd.f32 %v2958_v22, %v2957_v40  ;;  %v3043_v50 = vadd.f32 %v3042_v2, %v3041_v25  ;;  %v2542_v62 = vpop.permute.xlu0 %2541  ;;  %v1587_v61 = vmul.f32 %v1453_v0, %v4378_v56 }
 0x4e3   : > { %v2567_v29 = vmul.f32 %v2561_v55, %v2546_v49  ;;  %v2533_v16 = vmul.f32 %v3860_v63, %v5118_v30  ;;  %v3862_v43 = vpop.eup %3861  ;;  %v2566_v28 = vmul.f32 %v2561_v55, %v2542_v62  ;;  %v1750_v7 = vmul.f32 1.442695, %v1624_v54 }
 0x4e4   : > { %v3161_v12 = vsel %vm3142_vm11, %v3159_v52, %v2875_v15  ;;  %v2960_v42 = vrot.slane %v2959_v14, 1  ;;  %v3044_v1 = vrot.slane %v3043_v50, 2  ;;  %v2532_v53 = vmul.f32 %v3862_v43, %v5124_v38 }
 0x4e5   : > { %v5134_v52 = vrot.slane %v1271_v5, %v4298_v46  ;;  %v1625_v4 = vmul.f32 %v1529_v44, %v4378_v56  ;;  %v5138_v25 = vadd.f32 %v2567_v29, %v2533_v16  ;;  %3869 = vpow2.f32 %v1670_v41  ;;  %v3864_v2 = vpop.eup %3863 }
 0x4e6   : > { %v2632_v8 = vpop.permute.xlu1 %2631  ;;  %v2961_v37 = vadd.f32 %v2960_v42, %v2959_v14  ;;  %v3045_v26 = vadd.f32 %v3044_v1, %v3043_v50  ;;  %v2628_v19 = vpop.permute.xlu0 %2627  ;;  %v1586_v11 = vmul.f32 %v1453_v0, %v4334_v3  ;;  %3871 = vpow2.f32 %v1750_v7 }
 0x4e7   : > { %v1752_v47 = vmul.f32 1.442695, %v1625_v4  ;;  %v2647_v46 = vrot.slane %v5084_v36, %v4164_v32  ;;  %v5143_v51 = vadd.f32 %v2566_v28, %v2532_v53  ;;  %v1676_v31 = vmul.f32 1.442695, %v1587_v61 }
 0x4e8   : > { %v3163_v58 = vsel %vm3145_vm12, %v3161_v12, %v2961_v37  ;;  %v3046_v9 = vrot.slane %v3045_v26, 1  ;;  %v1457_v22 = vrot.slane %v5134_v52, %v4154_v23  ;;  %v3866_v34 = vpop.eup %3865  ;;  %v2619_v15 = vmul.f32 %v3864_v2, %v5138_v25 }
 0x4e9   : > { %3873 = vpow2.f32 %v1752_v47  ;;  %v2653_v18 = vmul.f32 %v2647_v46, %v2632_v8  ;;  %v1674_v14 = vmul.f32 1.442695, %v1586_v11  ;;  %v1301_v32 = vcombine.high %v5115_v39, %v5115_v39 }
 0x4ea   : > { %v2718_v40 = vpop.permute.xlu1 %2717  ;;  %v3047_v24 = vadd.f32 %v3046_v9, %v3045_v26  ;;  %v2714_v21 = vpop.permute.xlu0 %2713  ;;  %v2652_v62 = vmul.f32 %v2647_v46, %v2628_v19  ;;  %v2618_v17 = vmul.f32 %v3866_v34, %v5143_v51  ;;  %3875 = vpow2.f32 %v1676_v31 }
 0x4eb   : > { %v1589_v55 = vmul.f32 %v1457_v22, %v4378_v56  ;;  %v5157_v5 = vadd.f32 %v2653_v18, %v2619_v15  ;;  %3877 = vpow2.f32 %v1674_v14  ;;  %v1588_v63 = vmul.f32 %v1457_v22, %v4334_v3  ;;  %v5193_v18 = vld [vmem:[#allocation5] sm:$0xff]  }
 0x4ec   : > { %v5148_v49 = vsel %vm3148_vm13, %v3163_v58, %v3047_v24  ;;  %v2733_v1 = vrot.slane %v5084_v36, %v4174_v35  ;;  %v5164_v39 = vadd.f32 %v2652_v62, %v2618_v17  ;;  %v1461_v8 = vrot.slane %v1301_v32, %v4154_v23 }
 0x4ed   : > { %v1680_v29 = vmul.f32 1.442695, %v1589_v55  ;;  %v3081_v16 = vrot.slane %v4796_v20, %v5385_v48  ;;  %v1678_v37 = vmul.f32 1.442695, %v1588_v63  ;;  %v1303_v35 = vcombine.high %v5134_v52, %v5134_v52 }
 0x4ee   : > { %v2804_v44 = vpop.permute.xlu1 %2803  ;;  %v2800_v50 = vpop.permute.xlu0 %2799  ;;  %v2739_v41 = vmul.f32 %v2733_v1, %v2718_v40  ;;  %v2738_v61 = vmul.f32 %v2733_v1, %v2714_v21  ;;  %v1591_v20 = vmul.f32 %v1461_v8, %v4378_v56 }
 0x4ef   : > { %v3868_v42 = vpop.eup %3867  ;;  %v3084_v19 = vmul.f32 %v3081_v16, %v5073_v59  ;;  %3879 = vpow2.f32 %v1680_v29  ;;  %v3085_v9 = vmul.f32 %v3081_v16, %v5069_v57  ;;  %v1590_v59 = vmul.f32 %v1461_v8, %v4334_v3 }
 0x4f0   : > { %v2705_v43 = vmul.f32 %v3868_v42, %v5157_v5  ;;  %3881 = vpow2.f32 %v1678_v37  ;;  %v1465_v21 = vrot.slane %v1303_v35, %v4154_v23  ;;  %v2819_v57 = vrot.slane %v5084_v36, %v5404_v27 }
 0x4f1   : > { %v1684_v22 = vmul.f32 1.442695, %v1591_v20  ;;  %v1682_v27 = vmul.f32 1.442695, %v1590_v59 }
 0x4f2   : > { %v5155_v0 = vpop.permute.xlu1 %2889  ;;  %v5160_v12 = vpop.permute.xlu0 %2885  ;;  %v5181_v11 = vadd.f32 %v2739_v41, %v2705_v43  ;;  %v2825_v23 = vmul.f32 %v2819_v57, %v2804_v44  ;;  %v1593_v63 = vmul.f32 %v1465_v21, %v4378_v56  ;;  %v2824_v42 = vmul.f32 %v2819_v57, %v2800_v50 }
 0x4f3   : > { %v3870_v26 = vpop.eup %3869  ;;  %3883 = vpow2.f32 %v1684_v22 }
 0x4f4   : > { %v3872_v53 = vpop.eup %3871  ;;  %v2704_v58 = vmul.f32 %v3870_v26, %v5164_v39  ;;  %3885 = vpow2.f32 %v1682_v27  ;;  %v1688_v20 = vmul.f32 1.442695, %v1593_v63 }
 0x4f5   : > { %v3050_v7 = vmul.f32 %v3872_v53, %v5071_v60  ;;  %v2905_v53 = vrot.slane %v5084_v36, %v5405_v13 }
 0x4f6   : > { %v5169_v54 = vpop.permute.xlu1 %2975  ;;  %v5173_v28 = vpop.permute.xlu0 %2971  ;;  %v2742_v31 = vadd.f32 %v2738_v61, %v2704_v58 }
 0x4f7   : > { %v3874_v4 = vpop.eup %3873  ;;  %v5186_v47 = vadd.f32 %v3084_v19, %v3050_v7  ;;  %v5209_v19 = vld [vmem:[#allocation5 + $0x8] sm:$0xff]   ;;  %v2910_v22 = vmul.f32 %v2905_v53, %v5160_v12 }
 0x4f8   : > { %v3051_v46 = vmul.f32 %v3874_v4, %v5075_v6  ;;  %v3876_v2 = vpop.eup %3875  ;;  %v3599_v35 = vunpack.c.h.bf16 %v5209_v19 }
 0x4f9   : > { %v2791_v32 = vmul.f32 %v3876_v2, %v5181_v11  ;;  %v3878_v62 = vpop.eup %3877 }
 0x4fa   : > { %v2498_v40 = vpop.permute.xlu1 %2497  ;;  %v2494_v24 = vpop.permute.xlu0 %2493  ;;  %v5196_v15 = vadd.f32 %v3085_v9, %v3051_v46  ;;  %v2790_v29 = vmul.f32 %v3878_v62, %v2742_v31 }
 0x4fb   : > { %v2511_v52 = vmul.f32 %v2498_v40, %v5118_v30  ;;  %v2510_v60 = vmul.f32 %v2494_v24, %v5124_v38  ;;  %v3595_v30 = vunpack.c.h.bf16 %v5193_v18  ;;  %v2829_v37 = vadd.f32 %v2825_v23, %v2791_v32 }
 0x4fc   : > { %v2828_v58 = vadd.f32 %v2824_v42, %v2790_v29  ;;  %v3880_v9 = vpop.eup %3879  ;;  %v2911_v40 = vmul.f32 %v2905_v53, %v5155_v0 }
 0x4fd   : > { %v2515_v34 = vsel %vm824_vm4, %v2511_v52, 0.0  ;;  %v2514_v14 = vsel %vm824_vm4, %v2510_v60, 0.0  ;;  %v3561_v16 = vmul.f32 -1.442695, %v3595_v30  ;;  %v2877_v24 = vmul.f32 %v3880_v9, %v2829_v37 }
 0x4fe   : > { %v2584_v6 = vpop.permute.xlu1 %2583  ;;  %v2516_v38 = vadd.f32 %v2515_v34, %v2514_v14  ;;  %v2580_v17 = vpop.permute.xlu0 %2579 }
 0x4ff   : > { %v2597_v55 = vmul.f32 %v2584_v6, %v5138_v25  ;;  %v2596_v1 = vmul.f32 %v2580_v17, %v5143_v51  ;;  %v1592_v25 = vmul.f32 %v1465_v21, %v4334_v3  ;;  %3887 = vpow2.f32 %v3561_v16  ;;  %v3882_v21 = vpop.eup %3881 }
 0x500   : > { %v2517_v8 = vrot.slane %v2516_v38, 4  ;;  %v2876_v34 = vmul.f32 %v3882_v21, %v2828_v58  ;;  %3889 = vpow2.f32 %v1688_v20  ;;  %v3563_v6 = vmul.f32 -1.442695, %v3599_v35  ;;  %v3884_v42 = vpop.eup %3883 }
 0x501   : > { %v2601_v44 = vsel %vm824_vm4, %v2597_v55, 0.0  ;;  %v2600_v41 = vsel %vm824_vm4, %v2596_v1, 0.0  ;;  %v1686_v52 = vmul.f32 1.442695, %v1592_v25  ;;  %v3886_v25 = vpop.eup %3885 }
 0x502   : > { %v2670_v43 = vpop.permute.xlu1 %2669  ;;  %v2518_v26 = vadd.f32 %v2517_v8, %v2516_v38  ;;  %v2602_v56 = vadd.f32 %v2601_v44, %v2600_v41  ;;  %v2666_v50 = vpop.permute.xlu0 %2665  ;;  %v2915_v38 = vadd.f32 %v2911_v40, %v2877_v24  ;;  %v2914_v63 = vadd.f32 %v2910_v22, %v2876_v34 }
 0x503   : > { %v2683_v51 = vmul.f32 %v2670_v43, %v5157_v5  ;;  %v2682_v61 = vmul.f32 %v2666_v50, %v5164_v39  ;;  %3891 = vpow2.f32 %v1686_v52  ;;  %v3077_v40 = vrot.slane %v5084_v36, %v5385_v48 }
 0x504   : > { %v2519_v7 = vrot.slane %v2518_v26, 2  ;;  %v2603_v4 = vrot.slane %v2602_v56, 4  ;;  %v2963_v43 = vmul.f32 %v3884_v42, %v2915_v38  ;;  %3893 = vpow2.f32 %v3563_v6 }
 0x505   : > { %v2687_v3 = vsel %vm824_vm4, %v2683_v51, 0.0  ;;  %v2686_v5 = vsel %vm824_vm4, %v2682_v61, 0.0  ;;  %v2962_v20 = vmul.f32 %v3886_v25, %v2914_v63 }
 0x506   : > { %v2756_v59 = vpop.permute.xlu1 %2755  ;;  %v2520_v46 = vadd.f32 %v2519_v7, %v2518_v26  ;;  %v2604_v13 = vadd.f32 %v2603_v4, %v2602_v56  ;;  %v2688_v57 = vadd.f32 %v2687_v3, %v2686_v5  ;;  %v2752_v39 = vpop.permute.xlu0 %2751 }
 0x507   : > { %v2769_v60 = vmul.f32 %v2756_v59, %v5181_v11  ;;  %v2768_v2 = vmul.f32 %v2752_v39, %v2742_v31  ;;  %v2991_v31 = vrot.slane %v5084_v36, %v5406_v10 }
 0x508   : > { %v2605_v23 = vrot.slane %v2604_v13, 2  ;;  %v2689_v14 = vrot.slane %v2688_v57, 4  ;;  %v2521_v32 = vrot.slane %v2520_v46, 1 }
 0x509   : > { %v2773_v0 = vsel %vm824_vm4, %v2769_v60, 0.0  ;;  %v2772_v27 = vsel %vm824_vm4, %v2768_v2, 0.0  ;;  %v2997_v44 = vmul.f32 %v2991_v31, %v5169_v54  ;;  %v2996_v61 = vmul.f32 %v2991_v31, %v5173_v28 }
 0x50a   : > { %v3062_v62 = vpop.permute.xlu1 %3061  ;;  %v2606_v17 = vadd.f32 %v2605_v23, %v2604_v13  ;;  %v2690_v11 = vadd.f32 %v2689_v14, %v2688_v57  ;;  %v2774_v55 = vadd.f32 %v2773_v0, %v2772_v27  ;;  %v3058_v12 = vpop.permute.xlu0 %3057  ;;  %v2522_v16 = vadd.f32 %v2521_v32, %v2520_v46 }
 0x50b   : > { %v3001_v24 = vadd.f32 %v2997_v44, %v2963_v43  ;;  %v3083_v46 = vmul.f32 %v3077_v40, %v3062_v62  ;;  %v3000_v57 = vadd.f32 %v2996_v61, %v2962_v20  ;;  %v3082_v48 = vmul.f32 %v3077_v40, %v3058_v12 }
 0x50c   : > { %v2607_v1 = vrot.slane %v2606_v17, 1  ;;  %v2691_v29 = vrot.slane %v2690_v11, 2  ;;  %v2775_v8 = vrot.slane %v2774_v55, 4  ;;  %v3888_v3 = vpop.eup %3887 }
 0x50d   : > { %v3890_v39 = vpop.eup %3889 }
 0x50e   : > { %v2842_v41 = vpop.permute.xlu1 %2841  ;;  %v2608_v26 = vadd.f32 %v2607_v1, %v2606_v17  ;;  %v2692_v56 = vadd.f32 %v2691_v29, %v2690_v11  ;;  %v2776_v50 = vadd.f32 %v2775_v8, %v2774_v55  ;;  %v2838_v51 = vpop.permute.xlu0 %2837  ;;  %v3049_v14 = vmul.f32 %v3890_v39, %v3001_v24 }
 0x50f   : > { %v2855_v53 = vmul.f32 %v2842_v41, %v2829_v37  ;;  %v2854_v10 = vmul.f32 %v2838_v51, %v2828_v58  ;;  %v3195_v8 = vadd.f32 1.0, %v3888_v3 }
 0x510   : > { %v3154_v9 = vsel %vm1076_vm6, %v2522_v16, %v2608_v26  ;;  %v2693_v7 = vrot.slane %v2692_v56, 1  ;;  %v2777_v4 = vrot.slane %v2776_v50, 2  ;;  %v3892_v0 = vpop.eup %3891  ;;  %v3087_v55 = vadd.f32 %v3083_v46, %v3049_v14 }
 0x511   : > { %v2859_v54 = vsel %vm824_vm4, %v2855_v53, 0.0  ;;  %v2858_v5 = vsel %vm824_vm4, %v2854_v10, 0.0  ;;  %v3048_v11 = vmul.f32 %v3892_v0, %v3000_v57  ;;  %v3894_v16 = vpop.eup %3893  ;;  %3895 = vrcp.f32 %v3195_v8 }
 0x512   : > { %v2928_v59 = vpop.permute.xlu1 %2927  ;;  %v2694_v52 = vadd.f32 %v2693_v7, %v2692_v56  ;;  %v2778_v37 = vadd.f32 %v2777_v4, %v2776_v50  ;;  %v2860_v21 = vadd.f32 %v2859_v54, %v2858_v5  ;;  %v2924_v28 = vpop.permute.xlu0 %2923 }
 0x513   : > { %v2941_v58 = vmul.f32 %v2928_v59, %v2915_v38  ;;  %v2940_v13 = vmul.f32 %v2924_v28, %v2914_v63  ;;  %v3086_v29 = vadd.f32 %v3082_v48, %v3048_v11 }
 0x514   : > { %v3156_v60 = vsel %vm3136_vm9, %v3154_v9, %v2694_v52  ;;  %v2779_v22 = vrot.slane %v2778_v37, 1  ;;  %v2861_v2 = vrot.slane %v2860_v21, 4  ;;  %v3197_v9 = vadd.f32 1.0, %v3894_v16 }
 0x515   : > { %v2945_v34 = vsel %vm824_vm4, %v2941_v58, 0.0  ;;  %v2944_v36 = vsel %vm824_vm4, %v2940_v13, 0.0 }
 0x516   : > { %v3014_v23 = vpop.permute.xlu1 %3013  ;;  %v2780_v6 = vadd.f32 %v2779_v22, %v2778_v37  ;;  %v2862_v32 = vadd.f32 %v2861_v2, %v2860_v21  ;;  %v2946_v27 = vadd.f32 %v2945_v34, %v2944_v36  ;;  %v3010_v38 = vpop.permute.xlu0 %3009  ;;  %3897 = vrcp.f32 %v3197_v9 }
 0x517   : > { %v3027_v62 = vmul.f32 %v3014_v23, %v3001_v24  ;;  %v3026_v17 = vmul.f32 %v3010_v38, %v3000_v57  ;;  %v3175_v38 = vmul.f32 %v4976_v45, %v5080_v33 }
 0x518   : > { %v3158_v31 = vsel %vm3139_vm10, %v3156_v60, %v2780_v6  ;;  %v2863_v63 = vrot.slane %v2862_v32, 2  ;;  %v2947_v42 = vrot.slane %v2946_v27, 4 }
 0x519   : > { %v3031_v1 = vsel %vm824_vm4, %v3027_v62, 0.0  ;;  %v3030_v12 = vsel %vm824_vm4, %v3026_v17, 0.0 }
 0x51a   : > { %v3100_v44 = vpop.permute.xlu1 %3099  ;;  %v2864_v41 = vadd.f32 %v2863_v63, %v2862_v32  ;;  %v2948_v43 = vadd.f32 %v2947_v42, %v2946_v27  ;;  %v3032_v25 = vadd.f32 %v3031_v1, %v3030_v12  ;;  %v3096_v26 = vpop.permute.xlu0 %3095  ;;  %v3904_v1 = vld [vmem:[%s4103_s29] ss:$0 sm:$0xff]  ;;  %v3905_v12 = vld [vmem:[#allocation4 + $0x18] sm:$0xff]  ;;  %s5408_s29 = sadd.s32 4294967295, %s5407_s4  }
 0x51b   : > { %v3113_v56 = vmul.f32 %v3100_v44, %v3087_v55  ;;  %v3112_v50 = vmul.f32 %v3096_v26, %v3086_v29  ;;  %v3177_v29 = vmul.f32 %v3905_v12, %v3904_v1  ;;  %p5266_p7 = scmp.eq.s32.totalorder %s5408_s29, 1 }
 0x51c   : > { %v2865_v51 = vrot.slane %v2864_v41, 1  ;;  %v2949_v53 = vrot.slane %v2948_v43, 2  ;;  %v3033_v61 = vrot.slane %v3032_v25, 4 }
 0x51d   : > { %v3117_v10 = vsel %vm824_vm4, %v3113_v56, 0.0  ;;  %v3116_v20 = vsel %vm824_vm4, %v3112_v50, 0.0  ;;  %p3908_p9 = pnand %p3907_p8, %p5266_p7 }
 0x51e   : > { %v3111_v7 = vpop.permute.xlu1 %3110  ;;  %v2866_v4 = vadd.f32 %v2865_v51, %v2864_v41  ;;  %v2950_v54 = vadd.f32 %v2949_v53, %v2948_v43  ;;  %v3034_v3 = vadd.f32 %v3033_v61, %v3032_v25  ;;  %v3118_v40 = vadd.f32 %v3117_v10, %v3116_v20  ;;  %v3107_v5 = vpop.permute.xlu0 %3106 }
 0x51f   : > { %v3114_v59 = vmul.f32 %v3107_v5, %v5186_v47  ;;  %v3115_v24 = vmul.f32 %v3111_v7, %v5196_v15  ;;  %v3896_v6 = vpop.eup %3895  ;;  %p3909_p10 = pneg %p3908_p9 }
 0x520   : > { %v3160_v52 = vsel %vm3142_vm11, %v3158_v31, %v2866_v4  ;;  %v2951_v37 = vrot.slane %v2950_v54, 1  ;;  %v3035_v21 = vrot.slane %v3034_v3, 2  ;;  %v3119_v28 = vrot.slane %v3118_v40, 4 }
 0x521   : > { %v3125_v58 = vsel %vm824_vm4, %v3114_v59, 0.0  ;;  %v3126_v46 = vsel %vm824_vm4, %v3115_v24, 0.0  ;;  %v3207_v11 = vmul.f32 %v3896_v6, %v3595_v30  ;;  %p3916_p0 = pnand %p3915_p13, %p3909_p10 }
 0x522   : > { %v2952_v13 = vadd.f32 %v2951_v37, %v2950_v54  ;;  %v3036_v57 = vadd.f32 %v3035_v21, %v3034_v3  ;;  %v3120_v39 = vadd.f32 %v3119_v28, %v3118_v40  ;;  %v3127_v60 = vadd.f32 %v3126_v46, %v3125_v58 }
 0x523   : > { %v3898_v31 = vpop.eup %3897 }
 0x524   : > { %v3162_v22 = vsel %vm3145_vm12, %v3160_v52, %v2952_v13  ;;  %v3037_v2 = vrot.slane %v3036_v57, 1  ;;  %v3121_v47 = vrot.slane %v3120_v39, 2  ;;  %v3128_v34 = vrot.slane %v3127_v60, 4 }
 0x525   : > { %v3209_v45 = vmul.f32 %v3898_v31, %v3599_v35 }
 0x526   : > { %v3038_v15 = vadd.f32 %v3037_v2, %v3036_v57  ;;  %v3122_v48 = vadd.f32 %v3121_v47, %v3120_v39  ;;  %v3129_v36 = vadd.f32 %v3128_v34, %v3127_v60 }
 0x528   : > { %v3164_v23 = vsel %vm3148_vm13, %v3162_v22, %v3038_v15  ;;  %v3123_v14 = vrot.slane %v3122_v48, 1  ;;  %v3130_v0 = vrot.slane %v3129_v36, 2 }
 0x52a   : > { %v3124_v32 = vadd.f32 %v3123_v14, %v3122_v48  ;;  %v3131_v27 = vadd.f32 %v3130_v0, %v3129_v36 }
 0x52c   : > { %v3166_v62 = vsel %vm3151_vm14, %v3164_v23, %v3124_v32  ;;  %v3132_v17 = vrot.slane %v3131_v27, 1 }
 0x52d   : > { %v3179_v55 = vadd.f32 %v3175_v38, %v3166_v62 }
 0x52e   : > { %v3133_v63 = vadd.f32 %v3132_v17, %v3131_v27 }
 0x52f   : > { %v3211_v42 = vmul.f32 %v3207_v11, %v3179_v55 }
 0x530   : > { %v3167_v8 = vsel %vm3151_vm14, %v5148_v49, %v3133_v63 }
 0x531   : > { %v3589_v44 = vpack.c.bf16 %v3211_v42, %v3211_v42  ;;  %v3181_v33 = vadd.f32 %v3177_v29, %v3167_v8 }
 0x533   : > { %3231 = vst.msk [vmem:[#allocation9 + $0x4] sm:$0xf] %vm816_vm5, %v3589_v44  ;;  %v3213_v18 = vmul.f32 %v3209_v45, %v3181_v33 }
 0x535   : > { %v3591_v30 = vpack.c.bf16 %v3213_v18, %v3213_v18 }
 0x537   : > { %3233 = vst.msk [vmem:[#allocation9 + $0xc] sm:$0xf] %vm816_vm5, %v3591_v30 }
 0x53a   : > { %v3709_v16 = vld [vmem:[#allocation9] sm:$0xff]  }
 0x53b   : > { %3654 = vmatprep.mubr.msk.bf16.mxu0 %vm824_vm4, %v3709_v16 }
 0x53e   : > { %v3710_v41 = vld [vmem:[#allocation9 + $0x8] sm:$0xff]  }
 0x53f   : > { %3655 = vmatmul.mubr.msk.bf16.vlgmr.msra.gmra.mxu0 %vm824_vm4, %v3710_v41 }
 0x5ff   : > { %v3656_v43 = vpop.f32.mrf.mxu0 }
 0x600   : > { %3337 = vst.msk [vmem:[#allocation10 + $0x10] sm:$0xff] %vm643_vm2, %v3656_v43 }
 0x601   : > { %v3320_v49 = vpop.f32.mrf.mxu0 }
 0x602   : > { %3335 = vst.msk [vmem:[#allocation10] sm:$0xff] %vm643_vm2, %v3320_v49 }
 0x603   : > { %v3657_v19 = vpop.f32.mrf.mxu0 }
 0x604   : > { %3338 = vst.msk [vmem:[#allocation10 + $0x18] sm:$0xff] %vm643_vm2, %v3657_v19 }
 0x605   : > { %v3323_v35 = vpop.f32.mrf.mxu0 }
 0x606   : > { %3336 = vst.msk [vmem:[#allocation10 + $0x8] sm:$0xff] %vm643_vm2, %v3323_v35 }
 0x607   : > { %3919 = shalt.err (!%p3916_p0)
}
 0x608   : > { %s3964_s21 = smov 128   ;;  %s3965_s19 = smov 8  }
 0x609   : > { %s5410_s12 = sld [smem:[#allocation46_spill]] }
 0x60f   : > { %3660 = dma.vmem_to_hbm [thread:$0]  (%p5266_p7), %s3350_s26, 512, %s5410_s12, [#allocation11], %s3964_s21, %s3964_s21, %s3965_s19  }
 0x610   : > { %3943 = dma.done.wait (%p5266_p7), [#allocation11], 512  }
 0x611   : > { %3945 = vsyncadd (%p5266_p7), [#allocation11], 4294966784 }
 0x612 PF: > { %s5411_s30 = sld [smem:[#allocation14_spill]] }
 0x613   : > { %s5412_s21 = sld [smem:[#allocation13_spill]] }
 0x614   : > { %s5413_s22 = sld [smem:[#allocation15_spill]] }
 0x618   : > { %s23_s23 = sadd.s32 1, %s5411_s30  }
 0x619   : > { %p20_p1 = scmp.ge.s32.totalorder %s23_s23, 4  }
 0x61b   :  { %22 = sbr.rel (!%p20_p1) target bundleno = 7 (0x7), region = 137 }
 0x620   :  { %3365 = vsyncpa [#allocation11], 1 }
 0x621   :  { %3367 = vsyncpa [#allocation11 + $0x1], 1 }

</bundles_post_ra>
